<compile_context>
chip_gen: v5e
topology: v5e:2x2
jax: 0.10.0
libtpu: 0.0.40
codegen_flags: <defaults>
</compile_context>

<pallas_src>
import math
import numpy as np
import jax
import jax.numpy as jnp
from jax import lax
from jax.experimental import pallas as pl
from jax.experimental.pallas import tpu as pltpu

# ---------------- small model dims (scaled-down GeoCLIP) ----------------
N_IMG = 2                      # image batch
IMG_C, IMG_H, IMG_W = 3, 16, 16
PATCH = 4
N_PATCHES = (IMG_H // PATCH) * (IMG_W // PATCH)   # 16
PATCH_DIM = IMG_C * PATCH * PATCH                 # 48
D_CLIP = 64                    # stands in for CLIP's 768-d image feature
D_EMB = 32                     # stands in for GeoCLIP's 512-d shared embedding
M_LOC = 8                      # number of GPS locations
M_PAD = 128                    # locations padded to a full lane width
RFF_DIM = 16                   # stands in for 256 Fourier features per sigma
ENC_DIM = 2 * RFF_DIM
LOC_HIDDEN = 64                # stands in for 1024
SIGMAS = (2.0 ** 0, 2.0 ** 4, 2.0 ** 8)
N_SIGMAS = len(SIGMAS)

VMEM = pl.BlockSpec(memory_space=pltpu.MemorySpace.VMEM)
SMEM = pl.BlockSpec(memory_space=pltpu.MemorySpace.SMEM)


# ---------------- fused Pallas kernel ----------------
def _geoclip_kernel(logit_scale_ref, patches_ref, projT_ref,
                    wp_ref, bp_ref, w1i_ref, b1i_ref, w2i_ref, b2i_ref,
                    btT_ref, w1cT_ref, w1sT_ref, b1T_ref,
                    w2T_ref, b2T_ref, w3T_ref, b3T_ref, whT_ref, bhT_ref,
                    out_ref):
    # ---- image encoder: mean-pool patches, then affine head (exact rewrite) ----
    mp = jnp.mean(patches_ref[...], axis=1)                       # (n, PATCH_DIM)
    feat = jnp.dot(mp, wp_ref[...],
                   preferred_element_type=jnp.float32) + bp_ref[...]
    h = jnp.maximum(
        jnp.dot(feat, w1i_ref[...], preferred_element_type=jnp.float32)
        + b1i_ref[...], 0.0)
    img = (jnp.dot(h, w2i_ref[...], preferred_element_type=jnp.float32)
           + b2i_ref[...])                                        # (n, D_EMB)

    # ---- location encoder (transposed: features on sublanes, locations on lanes) ----
    projT = projT_ref[...]                                        # (2, M_PAD)
    bt = btT_ref[...]                                             # (3*RFF, 2), 2*pi folded in
    # K=2 "matmul" as two VPU broadcast multiply-adds (no MXU pipeline fill).
    vT = bt[:, 0:1] * projT[0:1, :] + bt[:, 1:2] * projT[1:2, :]  # (3*RFF, M_PAD)
    cT = jnp.cos(vT)
    sT = jnp.sin(vT)
    # cos/sin halves of w1 instead of a lane-axis concatenation of [cos, sin].
    h1 = jnp.maximum(
        jnp.dot(w1cT_ref[...], cT, preferred_element_type=jnp.float32)
        + jnp.dot(w1sT_ref[...], sT, preferred_element_type=jnp.float32)
        + b1T_ref[...], 0.0)                                      # (3*H, M_PAD)
    h2 = jnp.maximum(
        jnp.dot(w2T_ref[...], h1, preferred_element_type=jnp.float32)
        + b2T_ref[...], 0.0)
    h3 = jnp.maximum(
        jnp.dot(w3T_ref[...], h2, preferred_element_type=jnp.float32)
        + b3T_ref[...], 0.0)
    # Row-concatenated wh performs the sum over the 3 sigma scales implicitly.
    locT = (jnp.dot(whT_ref[...], h3, preferred_element_type=jnp.float32)
            + bhT_ref[...])                                       # (D_EMB, M_PAD)

    # ---- similarity: L2-normalize + scaled dot (already in (img, locT) form) ----
    img_n = img / jnp.maximum(
        jnp.sqrt(jnp.sum(img * img, axis=1, keepdims=True)), 1e-12)
    locT_n = locT / jnp.maximum(
        jnp.sqrt(jnp.sum(locT * locT, axis=0, keepdims=True)), 1e-12)
    scale = jnp.exp(logit_scale_ref[0])
    out_ref[...] = scale * jnp.dot(img_n, locT_n,
                                   preferred_element_type=jnp.float32)


# ---------------- wrapper ----------------
def patchify(img):
    """(n, C, H, W) NCHW -> (n, num_patches, C*PATCH*PATCH)."""
    n, c, h, w = img.shape
    x = img.reshape(n, c, h // PATCH, PATCH, w // PATCH, PATCH)
    x = x.transpose(0, 2, 4, 1, 3, 5)
    return x.reshape(n, (h // PATCH) * (w // PATCH), c * PATCH * PATCH)


def equal_earth_projection(L):
    """GeoCLIP equal-earth projection; tiny elementwise glue on (m, 2)."""
    A1, A2, A3, A4 = 1.340264, -0.081106, 0.000893, 0.003796
    SF = 66.50336
    lat = jnp.radians(L[:, 0])
    lon = jnp.radians(L[:, 1])
    theta = jnp.arcsin((jnp.sqrt(3.0) / 2.0) * jnp.sin(lat))
    denom = 3.0 * (9.0 * A4 * theta ** 8 + 7.0 * A3 * theta ** 6
                   + 3.0 * A2 * theta ** 2 + A1)
    x = 2.0 * jnp.sqrt(3.0) * lon * jnp.cos(theta) / denom
    y = A4 * theta ** 9 + A3 * theta ** 7 + A2 * theta ** 3 + A1 * theta
    return jnp.stack([x, y], axis=1) * (SF / 180.0)


def geoclip_forward_pallas(image, location, kp, logit_scale):
    patches = patchify(image)                        # (n, P, PATCH_DIM)
    proj = equal_earth_projection(location)          # (m, 2)
    n = patches.shape[0]
    m = proj.shape[0]
    projT = jnp.zeros((2, M_PAD), jnp.float32).at[:, :m].set(proj.T)

    sim_pad = pl.pallas_call(
        _geoclip_kernel,
        out_shape=jax.ShapeDtypeStruct((n, M_PAD), jnp.float32),
        in_specs=[SMEM] + [VMEM] * 18,
        out_specs=VMEM,
    )(logit_scale, patches, projT,
      kp["wp"], kp["bp"], kp["w1i"], kp["b1i"], kp["w2i"], kp["b2i"],
      kp["btT"], kp["w1cT"], kp["w1sT"], kp["b1T"],
      kp["w2T"], kp["b2T"], kp["w3T"], kp["b3T"], kp["whT"], kp["bhT"])
    return sim_pad[:, :m]


@jax.jit
def run_geoclip(image, location, kparams, logit_scale):
    return geoclip_forward_pallas(image, location, kparams, logit_scale)


# ---------------- deterministic parameter init ----------------
def init_params(key):
    ks = jax.random.split(key, 8)

    def nrm(k, shape, scale=0.05):
        return scale * jax.random.normal(k, shape, jnp.float32)

    img = dict(
        wp=nrm(ks[0], (PATCH_DIM, D_CLIP)),
        bp=jnp.zeros((1, D_CLIP), jnp.float32),
        w1=nrm(ks[1], (D_CLIP, D_CLIP)),
        b1=jnp.zeros((1, D_CLIP), jnp.float32),
        w2=nrm(ks[2], (D_CLIP, D_EMB)),
        b2=jnp.zeros((1, D_EMB), jnp.float32),
    )
    sig = jnp.array(SIGMAS, jnp.float32).reshape(N_SIGMAS, 1, 1)
    loc = dict(
        bt=sig * jax.random.normal(ks[3], (N_SIGMAS, 2, RFF_DIM), jnp.float32),
        w1=nrm(ks[4], (N_SIGMAS, ENC_DIM, LOC_HIDDEN)),
        b1=jnp.zeros((N_SIGMAS, 1, LOC_HIDDEN), jnp.float32),
        w2=nrm(ks[5], (N_SIGMAS, LOC_HIDDEN, LOC_HIDDEN)),
        b2=jnp.zeros((N_SIGMAS, 1, LOC_HIDDEN), jnp.float32),
        w3=nrm(ks[6], (N_SIGMAS, LOC_HIDDEN, LOC_HIDDEN)),
        b3=jnp.zeros((N_SIGMAS, 1, LOC_HIDDEN), jnp.float32),
        wh=nrm(ks[7], (N_SIGMAS, LOC_HIDDEN, D_EMB)),
        bh=jnp.zeros((N_SIGMAS, 1, D_EMB), jnp.float32),
    )
    logit_scale = jnp.array([math.log(1.0 / 0.07)], jnp.float32)
    return dict(img=img, loc=loc, logit_scale=logit_scale)


def prepare_kernel_params(params):
    """Fold/transform weights once (host side) into the fused-kernel layout."""
    ip, lp = params["img"], params["loc"]

    def blkdiag(blocks):
        r = sum(b.shape[0] for b in blocks)
        c = sum(b.shape[1] for b in blocks)
        out = jnp.zeros((r, c), jnp.float32)
        ro = co = 0
        for b in blocks:
            out = out.at[ro:ro + b.shape[0], co:co + b.shape[1]].set(b)
            ro += b.shape[0]
            co += b.shape[1]
        return out

    # Fourier weights: transposed, 2*pi folded in, stacked over sigmas (rows).
    btT = (2.0 * math.pi) * jnp.concatenate(
        [lp["bt"][s].T for s in range(N_SIGMAS)], axis=0)            # (3*RFF, 2)
    # w1 split into cos/sin halves, transposed, block-diag over sigmas.
    w1cT = blkdiag([lp["w1"][s][:RFF_DIM, :].T for s in range(N_SIGMAS)])   # (3H, 3RFF)
    w1sT = blkdiag([lp["w1"][s][RFF_DIM:, :].T for s in range(N_SIGMAS)])   # (3H, 3RFF)
    b1T = jnp.concatenate([lp["b1"][s].T for s in range(N_SIGMAS)], axis=0) # (3H, 1)
    w2T = blkdiag([lp["w2"][s].T for s in range(N_SIGMAS)])                 # (3H, 3H)
    b2T = jnp.concatenate([lp["b2"][s].T for s in range(N_SIGMAS)], axis=0)
    w3T = blkdiag([lp["w3"][s].T for s in range(N_SIGMAS)])
    b3T = jnp.concatenate([lp["b3"][s].T for s in range(N_SIGMAS)], axis=0)
    # Head: row-concat over sigmas implements the sum over sigma scales.
    whT = jnp.concatenate([lp["wh"][s].T for s in range(N_SIGMAS)], axis=1) # (D_EMB, 3H)
    bhT = jnp.sum(lp["bh"], axis=0).T                                       # (D_EMB, 1)

    return dict(wp=ip["wp"], bp=ip["bp"], w1i=ip["w1"], b1i=ip["b1"],
                w2i=ip["w2"], b2i=ip["b2"],
                btT=btT, w1cT=w1cT, w1sT=w1sT, b1T=b1T,
                w2T=w2T, b2T=b2T, w3T=w3T, b3T=b3T, whT=whT, bhT=bhT)


# ---------------- plain-JAX reference (for correctness check) ----------------
def reference_forward(image, location, params):
    patches = patchify(image)
    ip = params["img"]
    y = jnp.einsum("npd,de->npe", patches, ip["wp"]) + ip["bp"]
    feat = jnp.mean(y, axis=1)
    h = jax.nn.relu(feat @ ip["w1"] + ip["b1"])
    img_emb = h @ ip["w2"] + ip["b2"]

    lp = params["loc"]
    proj = equal_earth_projection(location)
    loc_emb = jnp.zeros((location.shape[0], D_EMB), jnp.float32)
    for s in range(N_SIGMAS):
        v = (2.0 * math.pi) * (proj @ lp["bt"][s])
        enc = jnp.concatenate([jnp.cos(v), jnp.sin(v)], axis=-1)
        hh = jax.nn.relu(enc @ lp["w1"][s] + lp["b1"][s])
        hh = jax.nn.relu(hh @ lp["w2"][s] + lp["b2"][s])
        hh = jax.nn.relu(hh @ lp["w3"][s] + lp["b3"][s])
        loc_emb = loc_emb + hh @ lp["wh"][s] + lp["bh"][s]

    scale = jnp.exp(params["logit_scale"][0])
    img_n = img_emb / jnp.maximum(
        jnp.linalg.norm(img_emb, axis=1, keepdims=True), 1e-12)
    loc_n = loc_emb / jnp.maximum(
        jnp.linalg.norm(loc_emb, axis=1, keepdims=True), 1e-12)
    return scale * (img_n @ loc_n.T)


if __name__ == "__main__":
    key = jax.random.PRNGKey(0)
    kparam_key, ki, kl1, kl2 = jax.random.split(key, 4)
    params = init_params(kparam_key)
    kparams = prepare_kernel_params(params)

    image = jax.random.normal(ki, (N_IMG, IMG_C, IMG_H, IMG_W), jnp.float32)
    lat = jax.random.uniform(kl1, (M_LOC,), jnp.float32, -90.0, 90.0)
    lon = jax.random.uniform(kl2, (M_LOC,), jnp.float32, -180.0, 180.0)
    location = jnp.stack([lat, lon], axis=1)              # (m, 2) GPS coords

    logits = run_geoclip(image, location, kparams, params["logit_scale"])
    logits = jax.block_until_ready(logits)

    ref = reference_forward(image, location, params)
    assert logits.shape == (N_IMG, M_LOC)
    np.testing.assert_allclose(np.asarray(logits), np.asarray(ref),
                               rtol=2e-3, atol=2e-3)
    print("KERNEL_OK")
</pallas_src>

<mosaic_0001>
module attributes {stable_mosaic.version = 11 : i64} {
  func.func @_geoclip_kernel(%arg0: memref<1xf32, #tpu.memory_space<smem>>, %arg1: memref<2x16x48xf32, #tpu.memory_space<vmem>>, %arg2: memref<2x128xf32, #tpu.memory_space<vmem>>, %arg3: memref<48x64xf32, #tpu.memory_space<vmem>>, %arg4: memref<1x64xf32, #tpu.memory_space<vmem>>, %arg5: memref<64x64xf32, #tpu.memory_space<vmem>>, %arg6: memref<1x64xf32, #tpu.memory_space<vmem>>, %arg7: memref<64x32xf32, #tpu.memory_space<vmem>>, %arg8: memref<1x32xf32, #tpu.memory_space<vmem>>, %arg9: memref<48x2xf32, #tpu.memory_space<vmem>>, %arg10: memref<192x48xf32, #tpu.memory_space<vmem>>, %arg11: memref<192x48xf32, #tpu.memory_space<vmem>>, %arg12: memref<192x1xf32, #tpu.memory_space<vmem>>, %arg13: memref<192x192xf32, #tpu.memory_space<vmem>>, %arg14: memref<192x1xf32, #tpu.memory_space<vmem>>, %arg15: memref<192x192xf32, #tpu.memory_space<vmem>>, %arg16: memref<192x1xf32, #tpu.memory_space<vmem>>, %arg17: memref<32x192xf32, #tpu.memory_space<vmem>>, %arg18: memref<32x1xf32, #tpu.memory_space<vmem>>, %arg19: memref<2x128xf32, #tpu.memory_space<vmem>>) attributes {dimension_semantics = [], scalar_prefetch = 0 : i64, scratch_operands = 0 : i64, tpu.core_type = #tpu.core_type<tc>} {
    %c0 = arith.constant 0 : index
    %c0_0 = arith.constant 0 : index
    %c0_1 = arith.constant 0 : index
    %0 = vector.load %arg1[%c0, %c0_0, %c0_1] : memref<2x16x48xf32, #tpu.memory_space<vmem>>, vector<2x16x48xf32>
    %cst = arith.constant dense<0.000000e+00> : vector<2x48xf32>
    %1 = vector.multi_reduction <add>, %0, %cst [1] : vector<2x16x48xf32> to vector<2x48xf32>
    %cst_2 = arith.constant 1.600000e+01 : f32
    %2 = vector.broadcast %cst_2 : f32 to vector<2x48xf32>
    %3 = arith.divf %1, %2 : vector<2x48xf32>
    %c0_3 = arith.constant 0 : index
    %c0_4 = arith.constant 0 : index
    %4 = vector.load %arg3[%c0_3, %c0_4] : memref<48x64xf32, #tpu.memory_space<vmem>>, vector<48x64xf32>
    %cst_5 = arith.constant dense<0.000000e+00> : vector<2x64xf32>
    %5 = tpu.matmul %3, %4, %cst_5 {dimension_numbers = #tpu.dot_dimension_numbers<[1], [0], [0], [1], [0, 0, 1, 1], [], []>} : vector<2x48xf32>, vector<48x64xf32>, vector<2x64xf32> -> vector<2x64xf32>
    %c0_6 = arith.constant 0 : index
    %c0_7 = arith.constant 0 : index
    %6 = vector.load %arg4[%c0_6, %c0_7] : memref<1x64xf32, #tpu.memory_space<vmem>>, vector<1x64xf32>
    %7 = vector.broadcast %6 : vector<1x64xf32> to vector<2x64xf32>
    %8 = arith.addf %5, %7 : vector<2x64xf32>
    %c0_8 = arith.constant 0 : index
    %c0_9 = arith.constant 0 : index
    %9 = vector.load %arg5[%c0_8, %c0_9] : memref<64x64xf32, #tpu.memory_space<vmem>>, vector<64x64xf32>
    %cst_10 = arith.constant dense<0.000000e+00> : vector<2x64xf32>
    %10 = tpu.matmul %8, %9, %cst_10 {dimension_numbers = #tpu.dot_dimension_numbers<[1], [0], [0], [1], [0, 0, 1, 1], [], []>} : vector<2x64xf32>, vector<64x64xf32>, vector<2x64xf32> -> vector<2x64xf32>
    %c0_11 = arith.constant 0 : index
    %c0_12 = arith.constant 0 : index
    %11 = vector.load %arg6[%c0_11, %c0_12] : memref<1x64xf32, #tpu.memory_space<vmem>>, vector<1x64xf32>
    %12 = vector.broadcast %11 : vector<1x64xf32> to vector<2x64xf32>
    %13 = arith.addf %10, %12 : vector<2x64xf32>
    %cst_13 = arith.constant 0.000000e+00 : f32
    %14 = vector.broadcast %cst_13 : f32 to vector<2x64xf32>
    %15 = arith.maximumf %13, %14 : vector<2x64xf32>
    %c0_14 = arith.constant 0 : index
    %c0_15 = arith.constant 0 : index
    %16 = vector.load %arg7[%c0_14, %c0_15] : memref<64x32xf32, #tpu.memory_space<vmem>>, vector<64x32xf32>
    %cst_16 = arith.constant dense<0.000000e+00> : vector<2x32xf32>
    %17 = tpu.matmul %15, %16, %cst_16 {dimension_numbers = #tpu.dot_dimension_numbers<[1], [0], [0], [1], [0, 0, 1, 1], [], []>} : vector<2x64xf32>, vector<64x32xf32>, vector<2x32xf32> -> vector<2x32xf32>
    %c0_17 = arith.constant 0 : index
    %c0_18 = arith.constant 0 : index
    %18 = vector.load %arg8[%c0_17, %c0_18] : memref<1x32xf32, #tpu.memory_space<vmem>>, vector<1x32xf32>
    %19 = vector.broadcast %18 : vector<1x32xf32> to vector<2x32xf32>
    %20 = arith.addf %17, %19 : vector<2x32xf32>
    %c0_19 = arith.constant 0 : index
    %c0_20 = arith.constant 0 : index
    %21 = vector.load %arg2[%c0_19, %c0_20] : memref<2x128xf32, #tpu.memory_space<vmem>>, vector<2x128xf32>
    %c0_21 = arith.constant 0 : index
    %c0_22 = arith.constant 0 : index
    %22 = vector.load %arg9[%c0_21, %c0_22] : memref<48x2xf32, #tpu.memory_space<vmem>>, vector<48x2xf32>
    %23 = vector.extract_strided_slice %22 {offsets = [0, 0], sizes = [48, 1], strides = [1, 1]} : vector<48x2xf32> to vector<48x1xf32>
    %24 = vector.extract_strided_slice %21 {offsets = [0, 0], sizes = [1, 128], strides = [1, 1]} : vector<2x128xf32> to vector<1x128xf32>
    %25 = vector.broadcast %23 : vector<48x1xf32> to vector<48x128xf32>
    %26 = vector.broadcast %24 : vector<1x128xf32> to vector<48x128xf32>
    %27 = arith.mulf %25, %26 : vector<48x128xf32>
    %28 = vector.extract_strided_slice %22 {offsets = [0, 1], sizes = [48, 1], strides = [1, 1]} : vector<48x2xf32> to vector<48x1xf32>
    %29 = vector.extract_strided_slice %21 {offsets = [1, 0], sizes = [1, 128], strides = [1, 1]} : vector<2x128xf32> to vector<1x128xf32>
    %30 = vector.broadcast %28 : vector<48x1xf32> to vector<48x128xf32>
    %31 = vector.broadcast %29 : vector<1x128xf32> to vector<48x128xf32>
    %32 = arith.mulf %30, %31 : vector<48x128xf32>
    %33 = arith.addf %27, %32 : vector<48x128xf32>
    %34 = math.cos %33 : vector<48x128xf32>
    %35 = math.sin %33 : vector<48x128xf32>
    %c0_23 = arith.constant 0 : index
    %c0_24 = arith.constant 0 : index
    %36 = vector.load %arg10[%c0_23, %c0_24] : memref<192x48xf32, #tpu.memory_space<vmem>>, vector<192x48xf32>
    %cst_25 = arith.constant dense<0.000000e+00> : vector<192x128xf32>
    %37 = tpu.matmul %36, %34, %cst_25 {dimension_numbers = #tpu.dot_dimension_numbers<[1], [0], [0], [1], [0, 0, 1, 1], [], []>} : vector<192x48xf32>, vector<48x128xf32>, vector<192x128xf32> -> vector<192x128xf32>
    %c0_26 = arith.constant 0 : index
    %c0_27 = arith.constant 0 : index
    %38 = vector.load %arg11[%c0_26, %c0_27] : memref<192x48xf32, #tpu.memory_space<vmem>>, vector<192x48xf32>
    %cst_28 = arith.constant dense<0.000000e+00> : vector<192x128xf32>
    %39 = tpu.matmul %38, %35, %cst_28 {dimension_numbers = #tpu.dot_dimension_numbers<[1], [0], [0], [1], [0, 0, 1, 1], [], []>} : vector<192x48xf32>, vector<48x128xf32>, vector<192x128xf32> -> vector<192x128xf32>
    %40 = arith.addf %37, %39 : vector<192x128xf32>
    %c0_29 = arith.constant 0 : index
    %c0_30 = arith.constant 0 : index
    %41 = vector.load %arg12[%c0_29, %c0_30] : memref<192x1xf32, #tpu.memory_space<vmem>>, vector<192x1xf32>
    %42 = vector.broadcast %41 : vector<192x1xf32> to vector<192x128xf32>
    %43 = arith.addf %40, %42 : vector<192x128xf32>
    %cst_31 = arith.constant 0.000000e+00 : f32
    %44 = vector.broadcast %cst_31 : f32 to vector<192x128xf32>
    %45 = arith.maximumf %43, %44 : vector<192x128xf32>
    %c0_32 = arith.constant 0 : index
    %c0_33 = arith.constant 0 : index
    %46 = vector.load %arg13[%c0_32, %c0_33] : memref<192x192xf32, #tpu.memory_space<vmem>>, vector<192x192xf32>
    %cst_34 = arith.constant dense<0.000000e+00> : vector<192x128xf32>
    %47 = tpu.matmul %46, %45, %cst_34 {dimension_numbers = #tpu.dot_dimension_numbers<[1], [0], [0], [1], [0, 0, 1, 1], [], []>} : vector<192x192xf32>, vector<192x128xf32>, vector<192x128xf32> -> vector<192x128xf32>
    %c0_35 = arith.constant 0 : index
    %c0_36 = arith.constant 0 : index
    %48 = vector.load %arg14[%c0_35, %c0_36] : memref<192x1xf32, #tpu.memory_space<vmem>>, vector<192x1xf32>
    %49 = vector.broadcast %48 : vector<192x1xf32> to vector<192x128xf32>
    %50 = arith.addf %47, %49 : vector<192x128xf32>
    %cst_37 = arith.constant 0.000000e+00 : f32
    %51 = vector.broadcast %cst_37 : f32 to vector<192x128xf32>
    %52 = arith.maximumf %50, %51 : vector<192x128xf32>
    %c0_38 = arith.constant 0 : index
    %c0_39 = arith.constant 0 : index
    %53 = vector.load %arg15[%c0_38, %c0_39] : memref<192x192xf32, #tpu.memory_space<vmem>>, vector<192x192xf32>
    %cst_40 = arith.constant dense<0.000000e+00> : vector<192x128xf32>
    %54 = tpu.matmul %53, %52, %cst_40 {dimension_numbers = #tpu.dot_dimension_numbers<[1], [0], [0], [1], [0, 0, 1, 1], [], []>} : vector<192x192xf32>, vector<192x128xf32>, vector<192x128xf32> -> vector<192x128xf32>
    %c0_41 = arith.constant 0 : index
    %c0_42 = arith.constant 0 : index
    %55 = vector.load %arg16[%c0_41, %c0_42] : memref<192x1xf32, #tpu.memory_space<vmem>>, vector<192x1xf32>
    %56 = vector.broadcast %55 : vector<192x1xf32> to vector<192x128xf32>
    %57 = arith.addf %54, %56 : vector<192x128xf32>
    %cst_43 = arith.constant 0.000000e+00 : f32
    %58 = vector.broadcast %cst_43 : f32 to vector<192x128xf32>
    %59 = arith.maximumf %57, %58 : vector<192x128xf32>
    %c0_44 = arith.constant 0 : index
    %c0_45 = arith.constant 0 : index
    %60 = vector.load %arg17[%c0_44, %c0_45] : memref<32x192xf32, #tpu.memory_space<vmem>>, vector<32x192xf32>
    %cst_46 = arith.constant dense<0.000000e+00> : vector<32x128xf32>
    %61 = tpu.matmul %60, %59, %cst_46 {dimension_numbers = #tpu.dot_dimension_numbers<[1], [0], [0], [1], [0, 0, 1, 1], [], []>} : vector<32x192xf32>, vector<192x128xf32>, vector<32x128xf32> -> vector<32x128xf32>
    %c0_47 = arith.constant 0 : index
    %c0_48 = arith.constant 0 : index
    %62 = vector.load %arg18[%c0_47, %c0_48] : memref<32x1xf32, #tpu.memory_space<vmem>>, vector<32x1xf32>
    %63 = vector.broadcast %62 : vector<32x1xf32> to vector<32x128xf32>
    %64 = arith.addf %61, %63 : vector<32x128xf32>
    %65 = arith.mulf %20, %20 : vector<2x32xf32>
    %cst_49 = arith.constant dense<0.000000e+00> : vector<2xf32>
    %66 = vector.multi_reduction <add>, %65, %cst_49 [1] : vector<2x32xf32> to vector<2xf32>
    %67 = vector.shape_cast %66 : vector<2xf32> to vector<2x1xf32>
    %68 = math.sqrt %67 : vector<2x1xf32>
    %cst_50 = arith.constant 9.99999996E-13 : f32
    %69 = vector.broadcast %cst_50 : f32 to vector<2x1xf32>
    %70 = arith.maximumf %68, %69 : vector<2x1xf32>
    %71 = vector.broadcast %70 : vector<2x1xf32> to vector<2x32xf32>
    %72 = arith.divf %20, %71 : vector<2x32xf32>
    %73 = arith.mulf %64, %64 : vector<32x128xf32>
    %cst_51 = arith.constant dense<0.000000e+00> : vector<128xf32>
    %74 = vector.multi_reduction <add>, %73, %cst_51 [0] : vector<32x128xf32> to vector<128xf32>
    %75 = vector.shape_cast %74 : vector<128xf32> to vector<1x128xf32>
    %76 = math.sqrt %75 : vector<1x128xf32>
    %cst_52 = arith.constant 9.99999996E-13 : f32
    %77 = vector.broadcast %cst_52 : f32 to vector<1x128xf32>
    %78 = arith.maximumf %76, %77 : vector<1x128xf32>
    %79 = vector.broadcast %78 : vector<1x128xf32> to vector<32x128xf32>
    %80 = arith.divf %64, %79 : vector<32x128xf32>
    %c0_53 = arith.constant 0 : index
    %81 = memref.load %arg0[%c0_53] : memref<1xf32, #tpu.memory_space<smem>>
    %82 = math.exp %81 : f32
    %cst_54 = arith.constant dense<0.000000e+00> : vector<2x128xf32>
    %83 = tpu.matmul %72, %80, %cst_54 {dimension_numbers = #tpu.dot_dimension_numbers<[1], [0], [0], [1], [0, 0, 1, 1], [], []>} : vector<2x32xf32>, vector<32x128xf32>, vector<2x128xf32> -> vector<2x128xf32>
    %84 = vector.broadcast %82 : f32 to vector<2x128xf32>
    %85 = arith.mulf %84, %83 : vector<2x128xf32>
    %c0_55 = arith.constant 0 : index
    %c0_56 = arith.constant 0 : index
    %86 = vector.load %arg19[%c0_55, %c0_56] : memref<2x128xf32, #tpu.memory_space<vmem>>, vector<2x128xf32>
    tpu.vector_store %arg19[%c0_55, %c0_56], %85 {strides = array<i32>} : memref<2x128xf32, #tpu.memory_space<vmem>>, vector<2x128xf32>,
    return
  }
}

</mosaic_0001>

<bundles_post_ra>
// kernel: run_geoclip.1
= control target key start
LH: loop header
LB: loop body
LE: loop exit
PB: predicated region body
PF: predicated region fallthrough
CT: control target
= control target key end

     0   :  { %s6312_s0 = inlined_call_operand.<no memory space> [shape: f32[1], index: 0, kind: input, shape index: {}]   ;;  %s6313_s1 = inlined_call_operand.vmem [shape: f32[2,16,48], index: 1, kind: input, shape index: {}]   ;;  %s6314_s2 = inlined_call_operand.vmem [shape: f32[2,128], index: 2, kind: input, shape index: {}]   ;;  %s6315_s3 = inlined_call_operand.vmem [shape: f32[48,64], index: 3, kind: input, shape index: {}]   ;;  %s6316_s4 = inlined_call_operand.vmem [shape: f32[1,64], index: 4, kind: input, shape index: {}]   ;;  %s6317_s5 = inlined_call_operand.vmem [shape: f32[64,64], index: 5, kind: input, shape index: {}]   ;;  %s6318_s6 = inlined_call_operand.vmem [shape: f32[1,64], index: 6, kind: input, shape index: {}]   ;;  %s6319_s7 = inlined_call_operand.vmem [shape: f32[64,32], index: 7, kind: input, shape index: {}]   ;;  %s6320_s8 = inlined_call_operand.vmem [shape: f32[1,32], index: 8, kind: input, shape index: {}]   ;;  %s6321_s9 = inlined_call_operand.vmem [shape: f32[48,2], index: 9, kind: input, shape index: {}]   ;;  %s6322_s10 = inlined_call_operand.vmem [shape: f32[192,48], index: 10, kind: input, shape index: {}]   ;;  %s6323_s11 = inlined_call_operand.vmem [shape: f32[192,48], index: 11, kind: input, shape index: {}]   ;;  %s6324_s12 = inlined_call_operand.vmem [shape: f32[192,1], index: 12, kind: input, shape index: {}]   ;;  %s6325_s13 = inlined_call_operand.vmem [shape: f32[192,192], index: 13, kind: input, shape index: {}]   ;;  %s6326_s14 = inlined_call_operand.vmem [shape: f32[192,1], index: 14, kind: input, shape index: {}]   ;;  %s6327_s15 = inlined_call_operand.vmem [shape: f32[192,192], index: 15, kind: input, shape index: {}]   ;;  %s6328_s16 = inlined_call_operand.vmem [shape: f32[192,1], index: 16, kind: input, shape index: {}]   ;;  %s6329_s17 = inlined_call_operand.vmem [shape: f32[32,192], index: 17, kind: input, shape index: {}]   ;;  %s6330_s18 = inlined_call_operand.vmem [shape: f32[32,1], index: 18, kind: input, shape index: {}]   ;;  %s6331_s19 = inlined_call_operand.hbm [shape: f32[2,128], index: 19, kind: output, shape index: {}]  }
   0x1   :  { %6341 = sst [smem:[#allocation14_spill]] %s6312_s0 }
   0x2   :  { %6342 = sst [smem:[#allocation15_spill]] %s6313_s1 }
   0x3   :  { %6343 = sst [smem:[#allocation16_spill]] %s6314_s2 }
   0x4   :  { %6344 = sst [smem:[#allocation17_spill]] %s6315_s3 }
   0x5   :  { %v210_v0 = vld [vmem:[%s6321_s9 + $0x28] sm:$0xff]  ;;  %v209_v1 = vld [vmem:[%s6321_s9 + $0x20] sm:$0xff]  ;;  %v208_v2 = vld [vmem:[%s6321_s9 + $0x18] sm:$0xff]  ;;  %v4075_v3 = vmov 1   ;;  %v4076_v4 = vmov 0   ;;  %s6345_s24 = sld [smem:[#allocation17_spill]] }
   0x6   :  { %4024 = vset.pattern.permute.xlu0 %v4075_v3  ;;  %4028 = vset.pattern.permute.xlu2 %v4076_v4  ;;  %vm68_vm0 = vcmask 392192   ;;  %v4077_v6 = vmov 16.0   ;;  %s6346_s28 = sld [smem:[#allocation15_spill]] }
   0x7   :  { %4026 = vset.pattern.permute.xlu1 %v4076_v4  ;;  %269 = vperm.xlu0 %4024, %v210_v0   ;;  %4037 = vrcp.f32 %v4077_v6 }
   0x8   :  { %233 = vperm.xlu1 %4026, %v209_v1   ;;  %228 = vperm.xlu2 %4028, %v208_v2  }
   0xb   :  { %v101_v5 = vld [vmem:[%s6345_s24 + $0x28] sm:$0xff]  ;;  %v100_v7 = vld [vmem:[%s6345_s24 + $0x20] sm:$0xff]  ;;  %v99_v13 = vld [vmem:[%s6345_s24 + $0x18] sm:$0xff] }
   0xc   :  { %v64_v8 = vld [vmem:[%s6346_s28] sm:$0xff]  ;;  %122 = vmatpush.msra.mxu1 %v101_v5  ;;  %v65_v9 = vld [vmem:[%s6346_s28 + $0x8] sm:$0xff]  ;;  %v66_v10 = vld [vmem:[%s6346_s28 + $0x10] sm:$0xff] }
   0xd   :  { %v67_v11 = vld [vmem:[%s6346_s28 + $0x18] sm:$0xff]  ;;  %v69_v12 = vsel %vm68_vm0, %v64_v8, 0.0  ;;  %v70_v14 = vsel %vm68_vm0, %v65_v9, 0.0  ;;  %v78_v15 = vsel %vm68_vm0, %v66_v10, 0.0  ;;  %v98_v17 = vld [vmem:[%s6345_s24 + $0x10] sm:$0xff] }
   0xe   :  { %v79_v16 = vsel %vm68_vm0, %v67_v11, 0.0  ;;  %123 = vmatpush.msra.mxu1 %v100_v7  ;;  %v71_v18 = vadd.f32 %v70_v14, %v69_v12 }
   0xf   :  { %v80_v19 = vadd.f32 %v79_v16, %v78_v15 }
  0x10   :  { %25 = vsyncpa [#allocation4], 0  ;;  %v4038_v20 = vpop.eup %4037  ;;  %124 = vmatpush.msra.mxu1 %v99_v13  ;;  %v72_v21 = vrot.slane %v71_v18, 4  ;;  %4025 = vset.pattern.permute.xlu0 %v4076_v4  ;;  %v97_v24 = vld [vmem:[%s6345_s24 + $0x8] sm:$0xff]  ;;  %v96_v28 = vld [vmem:[%s6345_s24] sm:$0xff]  ;;  %vm108_vm2 = vcmask 1041409  }
  0x11   :  { %v81_v22 = vrot.slane %v80_v19, 4  ;;  %v88_v23 = vmul.f32 16.0, %v4038_v20  ;;  %4027 = vset.pattern.permute.xlu1 %v4075_v3  ;;  %4029 = vset.pattern.permute.xlu2 %v4075_v3  ;;  %vm92_vm1 = vweird.f32 %v4038_v20  ;;  %v206_v37 = vld [vmem:[%s6321_s9 + $0x8] sm:$0xff]  ;;  %v207_v39 = vld [vmem:[%s6321_s9 + $0x10] sm:$0xff]  ;;  %v205_v46 = vld [vmem:[%s6321_s9] sm:$0xff]  ;;  %s6347_s29 = sld [smem:[#allocation16_spill]] }
  0x12   :  { %125 = vmatpush.msra.mxu1 %v98_v17  ;;  %v73_v25 = vadd.f32 %v72_v21, %v71_v18  ;;  %238 = vperm.xlu0 %4025, %v210_v0   ;;  %v2523_v45 = vld [vmem:[%s6324_s12 + $0x70] sm:$0xff]  ;;  %v2520_v47 = vld [vmem:[%s6324_s12 + $0x58] sm:$0xff]  ;;  %v2521_v50 = vld [vmem:[%s6324_s12 + $0x60] sm:$0xff]  ;;  %vm144_vm10 = vcmask 523264  }
  0x13   :  { %v82_v26 = vadd.f32 %v81_v22, %v80_v19  ;;  %v89_v27 = vsub.f32 1.0, %v88_v23  ;;  %265 = vperm.xlu1 %4027, %v209_v1   ;;  %261 = vperm.xlu2 %4029, %v208_v2   ;;  %v2524_v48 = vld [vmem:[%s6324_s12 + $0x78] sm:$0xff]  ;;  %v2518_v52 = vld [vmem:[%s6324_s12 + $0x48] sm:$0xff]  ;;  %v2529_v53 = vld [vmem:[%s6324_s12 + $0xa0] sm:$0xff] }
  0x14   :  { %v74_v29 = vrot.slane %v73_v25, 2  ;;  %126 = vmatpush.msra.mxu1 %v97_v24  ;;  %v2532_v49 = vld [vmem:[%s6324_s12 + $0xb8] sm:$0xff]  ;;  %v2531_v54 = vld [vmem:[%s6324_s12 + $0xb0] sm:$0xff]  ;;  %v2513_v55 = vld [vmem:[%s6324_s12 + $0x20] sm:$0xff] }
  0x15   :  { %v83_v30 = vrot.slane %v82_v26, 2  ;;  %v90_v31 = vmul.f32 %v4038_v20, %v89_v27  ;;  %v2516_v51 = vld [vmem:[%s6324_s12 + $0x38] sm:$0xff]  ;;  %v2515_v56 = vld [vmem:[%s6324_s12 + $0x30] sm:$0xff]  ;;  %v2526_v57 = vld [vmem:[%s6324_s12 + $0x88] sm:$0xff] }
  0x16   :  { %v75_v32 = vadd.f32 %v74_v29, %v73_v25  ;;  %127 = vmatpush.msra.mxu1 %v96_v28  ;;  %v2528_v58 = vld [vmem:[%s6324_s12 + $0x98] sm:$0xff]  ;;  %v2510_v59 = vld [vmem:[%s6324_s12 + $0x8] sm:$0xff]  ;;  %v2763_v61 = vld [vmem:[%s6326_s14 + $0x70] sm:$0xff] }
  0x17   :  { %v84_v33 = vadd.f32 %v83_v30, %v82_v26  ;;  %v91_v34 = vadd.f32 %v4038_v20, %v90_v31  ;;  %v2512_v60 = vld [vmem:[%s6324_s12 + $0x18] sm:$0xff]  ;;  %v2525_v62 = vld [vmem:[%s6324_s12 + $0x80] sm:$0xff]  ;;  %v2754_v10 = vld [vmem:[%s6326_s14 + $0x28] sm:$0xff] }
  0x18   :  { %v76_v35 = vrot.slane %v75_v32, 1  ;;  %v2760_v63 = vld [vmem:[%s6326_s14 + $0x58] sm:$0xff]  ;;  %v2757_v2 = vld [vmem:[%s6326_s14 + $0x40] sm:$0xff]  ;;  %v138_v13 = vld [vmem:[%s6317_s5 + $0x30] sm:$0xff] }
  0x19   :  { %v85_v36 = vrot.slane %v84_v33, 1  ;;  %v93_v38 = vsel %vm92_vm1, %v4038_v20, %v91_v34  ;;  %v2764_v0 = vld [vmem:[%s6326_s14 + $0x78] sm:$0xff]  ;;  %v2761_v5 = vld [vmem:[%s6326_s14 + $0x60] sm:$0xff]  ;;  %v2758_v14 = vld [vmem:[%s6326_s14 + $0x48] sm:$0xff] }
  0x1a   :  { %v77_v40 = vadd.f32 %v76_v35, %v75_v32  ;;  %218 = vperm.xlu0 %4025, %v206_v37   ;;  %v139_v9 = vld [vmem:[%s6317_s5 + $0x38] sm:$0xff]  ;;  %v137_v16 = vld [vmem:[%s6317_s5 + $0x28] sm:$0xff]  ;;  %v136_v19 = vld [vmem:[%s6317_s5 + $0x20] sm:$0xff] }
  0x1b   :  { %v86_v41 = vadd.f32 %v85_v36, %v84_v33  ;;  %4030 = vset.pattern.permute.xlu1 %v4076_v4  ;;  %257 = vperm.xlu2 %4029, %v207_v39   ;;  %v135_v20 = vld [vmem:[%s6317_s5 + $0x18] sm:$0xff]  ;;  %v134_v23 = vld [vmem:[%s6317_s5 + $0x10] sm:$0xff]  ;;  %v133_v25 = vld [vmem:[%s6317_s5 + $0x8] sm:$0xff] }
  0x1c   :  { %v94_v42 = vmul.f32 %v93_v38, %v77_v40  ;;  %223 = vperm.xlu1 %4030, %v207_v39   ;;  %156 = vmatpush.msrb.mxu1 %v139_v9  ;;  %v2772_v21 = vld [vmem:[%s6326_s14 + $0xb8] sm:$0xff]  ;;  %v2755_v24 = vld [vmem:[%s6326_s14 + $0x30] sm:$0xff]  ;;  %v132_v30 = vld [vmem:[%s6317_s5] sm:$0xff]  ;;  %v4082_v9 = vmov 920167782  }
  0x1d   :  { %v95_v43 = vmul.f32 %v93_v38, %v86_v41  ;;  %v2750_v34 = vld [vmem:[%s6326_s14 + $0x8] sm:$0xff]  ;;  %v2752_v38 = vld [vmem:[%s6326_s14 + $0x18] sm:$0xff] }
  0x1e   :  { %157 = vmatpush.msrb.mxu1 %v138_v13 }
  0x1f   :  { %v109_v44 = vsel %vm108_vm2, %v95_v43, %v94_v42 }
  0x20   :  { %3860 = vmatmul.msk.f32.vlgmr.msra.gmra.mxu1 %vm68_vm0, %v109_v44 }
  0x21   :  { %158 = vmatpush.msrb.mxu1 %v137_v16 }
  0x22   :  { %2605 = vperm.xlu0 %4025, %v2523_v45  }
  0x23   :  { %4032 = vset.pattern.permute.xlu2 %v4076_v4  ;;  %159 = vmatpush.msrb.mxu1 %v136_v19 }
  0x24   :  { %4031 = vset.pattern.permute.xlu1 %v4075_v3  ;;  %213 = vperm.xlu2 %4032, %v205_v46   ;;  %v204_v3 = vld [vmem:[%s6347_s29] sm:$0x3]  ;;  %s3851_s29 = sshll.u32 %s6331_s19, 4  ;;  %s3852_s29 = int_to_ptr.hbm [resolvable:$true] %s3851_s29 }
  0x25   :  { %253 = vperm.xlu1 %4031, %v206_v37   ;;  %v4314_v6 = vperm.slane %v204_v3, 0  ;;  %v4316_v7 = vperm.slane %v204_v3, 1  ;;  %160 = vmatpush.msrb.mxu1 %v135_v20  ;;  %v4083_v20 = vmov 1326507024  }
  0x27   :  { %161 = vmatpush.msrb.mxu1 %v134_v23 }
  0x29   :  { %162 = vmatpush.msrb.mxu1 %v133_v25 }
  0x2a   :  { %2590 = vperm.xlu0 %4025, %v2520_v47  }
  0x2b   :  { %163 = vmatpush.msrb.mxu1 %v132_v30 }
  0x2c   :  { %2610 = vperm.xlu2 %4032, %v2524_v48  }
  0x2d   :  { %249 = vperm.xlu1 %4031, %v205_v46  }
  0x32   :  { %2650 = vperm.xlu0 %4025, %v2532_v49  }
  0x34   :  { %2595 = vperm.xlu2 %4032, %v2521_v50   ;;  %v2769_v50 = vld [vmem:[%s6326_s14 + $0xa0] sm:$0xff] }
  0x35   :  { %4033 = vset.pattern.permute.xlu1 %v4076_v4 }
  0x3a   :  { %2570 = vperm.xlu0 %4025, %v2516_v51  }
  0x3c   :  { %2580 = vperm.xlu2 %4032, %v2518_v52   ;;  %v2771_v52 = vld [vmem:[%s6326_s14 + $0xb0] sm:$0xff] }
  0x42   :  { %2635 = vperm.xlu0 %4025, %v2529_v53  }
  0x44   :  { %2645 = vperm.xlu2 %4032, %v2531_v54  }
  0x4a   :  { %2555 = vperm.xlu0 %4025, %v2513_v55  }
  0x4c   :  { %2565 = vperm.xlu2 %4032, %v2515_v56  }
  0x52   :  { %2620 = vperm.xlu0 %4025, %v2526_v57  }
  0x54   :  { %2630 = vperm.xlu2 %4032, %v2528_v58   ;;  %v2522_v58 = vld [vmem:[%s6324_s12 + $0x68] sm:$0xff] }
  0x55   :  { %2600 = vperm.xlu1 %4033, %v2522_v58  }
  0x5a   :  { %2540 = vperm.xlu0 %4025, %v2510_v59  }
  0x5c   :  { %2550 = vperm.xlu2 %4032, %v2512_v60  }
  0x62   :  { %2845 = vperm.xlu0 %4025, %v2763_v61   ;;  %v229_v1 = vpop.permute.xlu2 %228  ;;  %v6336_v61 = vmov 683565275  }
  0x63   :  { %v245_v11 = vmul.f32 %v4314_v6, %v229_v1  ;;  %v6338_v1 = vmov 2131351028  }
  0x64   :  { %2615 = vperm.xlu2 %4032, %v2525_v62  }
  0x6a   :  { %2830 = vperm.xlu0 %4025, %v2760_v63   ;;  %v4079_v63 = vmov 2475754826  }
  0x6c   :  { %2850 = vperm.xlu2 %4032, %v2764_v0  }
  0x6d   :  { %v262_v8 = vpop.permute.xlu2 %261 }
  0x6e   :  { %v276_v12 = vmul.f32 %v4316_v7, %v262_v8 }
  0x70   :  { %v4335_v18 = vadd.f32 %v276_v12, %v245_v11 }
  0x72   :  { %2815 = vperm.xlu0 %4025, %v2757_v2   ;;  %v750_v22 = vand.u32 2139095040, %v4335_v18 }
  0x74   :  { %2835 = vperm.xlu2 %4032, %v2761_v5   ;;  %v751_v27 = vshrl.u32 %v750_v22, 23  ;;  %v4081_v5 = vmov 2102212464  }
  0x75   :  { %v258_v40 = vpop.permute.xlu2 %257 }
  0x76   :  { %v3872_v35 = vadd.s32 4294967169, %v751_v27  ;;  %v275_v43 = vmul.f32 %v4316_v7, %v258_v40 }
  0x78   :  { %v757_v42 = vadd.s32 1, %v3872_v35 }
  0x79   :  { %v270_v15 = vpop.permute.xlu0 %269 }
  0x7a   :  { %2800 = vperm.xlu0 %4025, %v2754_v10   ;;  %v234_v17 = vpop.permute.xlu1 %233  ;;  %v278_v26 = vmul.f32 %v4316_v7, %v270_v15  ;;  %vm758_vm3 = vcmp.gt.s32.totalorder %v757_v42, 0 }
  0x7b   :  { %v246_v36 = vmul.f32 %v4314_v6, %v234_v17  ;;  %v4386_v55 = vsel %vm758_vm3, %v757_v42, 0  ;;  %v2766_v17 = vld [vmem:[%s6326_s14 + $0x88] sm:$0xff] }
  0x7c   :  { %2820 = vperm.xlu2 %4032, %v2758_v14   ;;  %v4401_v3 = vand.u32 31, %v4386_v55 }
  0x82   :  { %2890 = vperm.xlu0 %4025, %v2772_v21  }
  0x84   :  { %2805 = vperm.xlu2 %4032, %v2755_v24   ;;  %v239_v28 = vpop.permute.xlu0 %238 }
  0x85   :  { %v266_v29 = vpop.permute.xlu1 %265  ;;  %v247_v31 = vmul.f32 %v4314_v6, %v239_v28 }
  0x86   :  { %v277_v32 = vmul.f32 %v4316_v7, %v266_v29 }
  0x87   :  { %v4362_v33 = vadd.f32 %v278_v26, %v247_v31  ;;  %v2749_v26 = vld [vmem:[%s6326_s14] sm:$0xff] }
  0x88   :  { %v4372_v39 = vadd.f32 %v277_v32, %v246_v36  ;;  %v2519_v32 = vld [vmem:[%s6324_s12 + $0x50] sm:$0xff] }
  0x89   :  { %v1058_v37 = vand.u32 2139095040, %v4362_v33  ;;  %v1055_v48 = vand.u32 2147483647, %v4362_v33  ;;  %2585 = vperm.xlu1 %4033, %v2519_v32  }
  0x8a   :  { %2780 = vperm.xlu0 %4025, %v2750_v34   ;;  %v904_v46 = vand.u32 2139095040, %v4372_v39  ;;  %v6334_v42 = vand.u32 2147483647, %v4372_v39 }
  0x8b   :  { %v1059_v41 = vshrl.u32 %v1058_v37, 23  ;;  %v1062_v56 = vand.u32 8388607, %v1055_v48 }
  0x8c   :  { %2790 = vperm.xlu2 %4032, %v2752_v38   ;;  %v905_v54 = vshrl.u32 %v904_v46, 23  ;;  %v4450_v38 = vsub.s32 32, %v4401_v3  ;;  %v214_v46 = vpop.permute.xlu2 %213 }
  0x8d   :  { %v3878_v44 = vadd.s32 4294967169, %v1059_v41  ;;  %v1063_v13 = vor.u32 8388608, %v1062_v56  ;;  %v3229_v56 = vld [vmem:[%s6328_s16 + $0x70] sm:$0xff] }
  0x8e   :  { %v224_v45 = vpop.permute.xlu1 %223  ;;  %v3875_v11 = vadd.s32 4294967169, %v905_v54  ;;  %v4034_v54 = vld [vmem:[%s6316_s4] ss:$0 sm:$0xff]  ;;  %s4084_s4 = smov [#allocation3]  }
  0x8f   :  { %v244_v47 = vmul.f32 %v4314_v6, %v224_v45  ;;  %v1065_v49 = vadd.s32 1, %v3878_v44  ;;  %v4436_v31 = vshll.u32 %v1063_v13, 8  ;;  %v4464_v44 = vshll.u32 %v4082_v9, %v4401_v3  ;;  %v2767_v13 = vld [vmem:[%s6326_s14 + $0x90] sm:$0xff]  ;;  %s3849_s27 = sshll.u32 %s4084_s4, 4  ;;  %s3850_s27 = int_to_ptr.vmem [resolvable:$true] %s3849_s27 }
  0x90   :  { %v911_v29 = vadd.s32 1, %v3875_v11 }
  0x91   :  { %v4381_v51 = vadd.f32 %v275_v43, %v244_v47  ;;  %vm1066_vm4 = vcmp.gt.s32.totalorder %v1065_v49, 0  ;;  %v4460_v43 = vshll.u32 %v4081_v5, %v4401_v3 }
  0x92   :  { %v1067_v53 = vsel %vm1066_vm4, %v1065_v49, 0  ;;  %2875 = vperm.xlu0 %4025, %v2769_v50   ;;  %vm912_vm9 = vcmp.gt.s32.totalorder %v911_v29, 0  ;;  %v4473_v49 = vand.u32 65535, %v4436_v31 }
  0x93   :  { %v1069_v57 = vand.u32 31, %v1067_v53  ;;  %v4393_v59 = vshrl.u32 %v1067_v53, 5  ;;  %v596_v22 = vand.u32 2139095040, %v4381_v51  ;;  %v219_v53 = vpop.permute.xlu0 %218 }
  0x94   :  { %2885 = vperm.xlu2 %4032, %v2771_v52   ;;  %v243_v11 = vmul.f32 %v4314_v6, %v219_v53 }
  0x95   :  { %v4395_v60 = vsub.s32 32, %v1069_v57  ;;  %v1072_v62 = vshll.u32 %v6336_v61, %v1069_v57  ;;  %v1075_v0 = vshll.u32 %v4079_v63, %v1069_v57  ;;  %v1078_v2 = vshll.u32 %v6338_v1, %v1069_v57 }
  0x96   :  { %v1081_v8 = vshll.u32 %v4081_v5, %v1069_v57  ;;  %v1084_v10 = vshll.u32 %v4082_v9, %v1069_v57  ;;  %vm1087_vm5 = vcmp.lt.s32.totalorder %v4393_v59, 1  ;;  %vm1090_vm6 = vcmp.lt.s32.totalorder %v4393_v59, 4 }
  0x97   :  { %v254_v12 = vpop.permute.xlu1 %253  ;;  %v1073_v14 = vshrl.u32 %v4079_v63, %v4395_v60  ;;  %v1076_v15 = vshrl.u32 %v6338_v1, %v4395_v60  ;;  %v1079_v16 = vshrl.u32 %v4081_v5, %v4395_v60  ;;  %v1082_v19 = vshrl.u32 %v4082_v9, %v4395_v60 }
  0x98   :  { %v1085_v21 = vshrl.u32 %v4083_v20, %v4395_v60  ;;  %vm1089_vm7 = vcmp.lt.s32.totalorder %v4393_v59, 3  ;;  %vm1088_vm8 = vcmp.lt.s32.totalorder %v4393_v59, 2  ;;  %v597_v37 = vshrl.u32 %v596_v22, 23 }
  0x99   :  { %v4420_v23 = vor.u32 %v1073_v14, %v1072_v62  ;;  %v4422_v24 = vor.u32 %v1076_v15, %v1075_v0  ;;  %v4424_v25 = vor.u32 %v1079_v16, %v1078_v2  ;;  %v1083_v27 = vor.u32 %v1082_v19, %v1081_v8  ;;  %v2517_v14 = vld [vmem:[%s6324_s12 + $0x40] sm:$0xff] }
  0x9a   :  { %v1086_v28 = vor.u32 %v1085_v21, %v1084_v10  ;;  %2860 = vperm.xlu0 %4025, %v2766_v17   ;;  %v242_v57 = vmul.f32 %v4314_v6, %v214_v46  ;;  %v3869_v58 = vadd.s32 4294967169, %v597_v37  ;;  %v274_v62 = vmul.f32 %v4316_v7, %v254_v12  ;;  %2575 = vperm.xlu1 %4033, %v2517_v14  }
  0x9b   :  { %v1099_v30 = vsel %vm1087_vm5, %v4422_v24, %v4424_v25  ;;  %v1095_v34 = vsel %vm1087_vm5, %v4420_v23, %v4422_v24  ;;  %v1096_v35 = vsel %vm1090_vm6, %v1083_v27, 920167782  ;;  %v913_v10 = vsel %vm912_vm9, %v911_v29, 0 }
  0x9c   :  { %v1100_v36 = vsel %vm1090_vm6, %v1086_v28, 1326507024  ;;  %2775 = vperm.xlu2 %4032, %v2749_v26   ;;  %v1097_v40 = vsel %vm1089_vm7, %v4424_v25, %v1096_v35  ;;  %v4496_v12 = vand.u32 8388607, %v6334_v42  ;;  %v4499_v15 = vshrl.u32 %v4436_v31, 16 }
  0x9d   :  { %v1101_v41 = vsel %vm1089_vm7, %v1083_v27, %v1100_v36  ;;  %v4470_v47 = vsel %vm1088_vm8, %v1095_v34, %v1097_v40  ;;  %v129_v0 = vpop.f32.mrf.mxu1  ;;  %v603_v6 = vadd.s32 1, %v3869_v58  ;;  %v4504_v21 = vadd.f32 %v274_v62, %v243_v11 }
  0x9e   :  { %v1102_v45 = vsel %vm1088_vm8, %v1099_v30, %v1101_v41  ;;  %v1129_v17 = vshrl.u32 %v4470_v47, 16  ;;  %v130_v22 = vadd.f32 %v4034_v54, %v129_v0  ;;  %v1128_v27 = vand.u32 65535, %v4470_v47  ;;  %v3230_v0 = vld [vmem:[%s6328_s16 + $0x78] sm:$0xff]  ;;  %v2514_v47 = vld [vmem:[%s6324_s12 + $0x28] sm:$0xff] }
  0x9f   :  { %v1106_v50 = vand.u32 65535, %v1102_v45  ;;  %v1107_v52 = vshrl.u32 %v1102_v45, 16  ;;  %v250_v2 = vpop.permute.xlu1 %249  ;;  %v4508_v28 = vand.u32 31, %v913_v10  ;;  %vm604_vm11 = vcmp.gt.s32.totalorder %v603_v6, 0  ;;  %v3226_v45 = vld [vmem:[%s6328_s16 + $0x58] sm:$0xff] }
  0xa0   :  { %v273_v26 = vmul.f32 %v4316_v7, %v250_v2  ;;  %v4513_v32 = vsel %vm604_vm11, %v603_v6, 0  ;;  %v442_v34 = vand.u32 2139095040, %v4504_v21  ;;  %3861 = vmatmul.msk.f32.vlgmr.msrb.gmra.mxu1 %vm144_vm10, %v130_v22  ;;  %v4520_v7 = vmul.u32 %v1129_v17, %v4473_v49  ;;  %v2530_v2 = vld [vmem:[%s6324_s12 + $0xa8] sm:$0xff] }
  0xa1   :  { %v4484_v8 = vmul.u32 %v1107_v52, %v4473_v49  ;;  %v1108_v16 = vmul.u32 %v1106_v50, %v4473_v49  ;;  %v4511_v29 = vmul.u32 %v1106_v50, %v4499_v15  ;;  %v4523_v35 = vand.u32 31, %v4513_v32 }
  0xa2   :  { %3311 = vperm.xlu0 %4025, %v3229_v56   ;;  %v4525_v36 = vadd.f32 %v273_v26, %v242_v57  ;;  %v909_v37 = vor.u32 8388608, %v4496_v12  ;;  %v4528_v40 = vshrl.u32 %v913_v10, 5  ;;  %v443_v41 = vshrl.u32 %v442_v34, 23  ;;  %2640 = vperm.xlu1 %4033, %v2530_v2  }
  0xa3   :  { %v1112_v19 = vshll.u32 %v4484_v8, 16  ;;  %v1114_v46 = vshll.u32 %v4511_v29, 16  ;;  %v1071_v53 = vshrl.u32 %v6336_v61, %v4395_v60  ;;  %v1111_v54 = vmul.u32 %v1107_v52, %v4499_v15 }
  0xa4   :  { %2865 = vperm.xlu2 %4032, %v2767_v13   ;;  %v4539_v56 = vsub.s32 32, %v4508_v28  ;;  %v4542_v57 = vsub.s32 32, %v4523_v35  ;;  %v3866_v58 = vadd.s32 4294967169, %v443_v41  ;;  %v288_v62 = vand.u32 2139095040, %v4525_v36 }
  0xa5   :  { %vm1116_vm12 = vc.u32 %v1108_v16, %v1112_v19  ;;  %v1118_v30 = vadd.s32 %v1112_v19, %v1108_v16  ;;  %v4552_v60 = vmul.u32 %v1128_v27, %v4499_v15  ;;  %v4556_v52 = vshll.u32 %v4082_v9, %v4523_v35 }
  0xa6   :  { %v1117_v50 = vsel %vm1116_vm12, 1, %v4076_v4  ;;  %v4560_v10 = vshrl.u32 %v4083_v20, %v4542_v57  ;;  %v1134_v13 = vshll.u32 %v4520_v7, 16  ;;  %v449_v14 = vadd.s32 1, %v3866_v58 }
  0xa7   :  { %vm1120_vm13 = vc.u32 %v1118_v30, %v1114_v46  ;;  %v1119_v11 = vadd.s32 %v1117_v50, %v1111_v54  ;;  %v289_v12 = vshrl.u32 %v288_v62, 23  ;;  %v1130_v6 = vmul.u32 %v1128_v27, %v4473_v49  ;;  %v3223_v54 = vld [vmem:[%s6328_s16 + $0x40] sm:$0xff] }
  0xa8   :  { %v1121_v16 = vsel %vm1120_vm13, 1, %v4076_v4  ;;  %v1091_v19 = vsel %vm1087_vm5, %v1071_v53, %v4420_v23  ;;  %v1092_v22 = vsel %vm1090_vm6, %v4424_v25, 2102212464  ;;  %v930_v26 = vshll.u32 %v4082_v9, %v4508_v28 }
  0xa9   :  { %v931_v34 = vshrl.u32 %v4083_v20, %v4539_v56  ;;  %vm450_vm14 = vcmp.gt.s32.totalorder %v449_v14, 0  ;;  %v3863_v49 = vadd.s32 4294967169, %v289_v12  ;;  %vm1138_vm15 = vc.u32 %v1130_v6, %v1134_v13 }
  0xaa   :  { %3296 = vperm.xlu0 %4025, %v3226_v45   ;;  %v4577_v27 = vsel %vm450_vm14, %v449_v14, 0  ;;  %v1123_v23 = vadd.s32 %v1121_v16, %v1119_v11  ;;  %v1136_v41 = vshll.u32 %v4552_v60, 16  ;;  %v1140_v25 = vadd.s32 %v1134_v13, %v1130_v6  ;;  %v3227_v13 = vld [vmem:[%s6328_s16 + $0x60] sm:$0xff]  ;;  %2560 = vperm.xlu1 %4033, %v2514_v47  }
  0xab   :  { %v1093_v45 = vsel %vm1089_vm7, %v4422_v24, %v1092_v22  ;;  %v928_v46 = vshrl.u32 %v4082_v9, %v4539_v56  ;;  %v4586_v50 = vand.u32 31, %v4577_v27  ;;  %v295_v53 = vadd.s32 1, %v3863_v49 }
  0xac   :  { %3316 = vperm.xlu2 %4032, %v3230_v0   ;;  %v1133_v58 = vmul.u32 %v1129_v17, %v4499_v15  ;;  %v1113_v62 = vshrl.u32 %v4484_v8, 16  ;;  %v1139_v0 = vsel %vm1138_vm15, 1, %v4076_v4  ;;  %vm1142_vm1 = vc.u32 %v1140_v25, %v1136_v41 }
  0xad   :  { %v927_v24 = vshll.u32 %v4081_v5, %v4508_v28  ;;  %v932_v2 = vor.u32 %v931_v34, %v930_v26  ;;  %v4599_v11 = vsub.s32 32, %v4586_v50  ;;  %v4607_v15 = vshll.u32 %v909_v37, 8 }
  0xae   :  { %vm296_vm2 = vcmp.gt.s32.totalorder %v295_v53, 0  ;;  %v1124_v8 = vadd.s32 %v1123_v23, %v1113_v62  ;;  %v1141_v17 = vadd.s32 %v1139_v0, %v1133_v58  ;;  %v1143_v14 = vsel %vm1142_vm1, 1, %v4076_v4 }
  0xaf   :  { %v1094_v12 = vsel %vm1088_vm8, %v1091_v19, %v1093_v45  ;;  %v4614_v16 = vshll.u32 %v4082_v9, %v4586_v50  ;;  %v4618_v6 = vshrl.u32 %v4083_v20, %v4599_v11  ;;  %v4620_v22 = vsel %vm296_vm2, %v295_v53, 0 }
  0xb0   :  { %v929_v37 = vor.u32 %v928_v46, %v927_v24  ;;  %v4623_v26 = vand.u32 31, %v4620_v22  ;;  %v1115_v34 = vshrl.u32 %v4511_v29, 16  ;;  %v1145_v59 = vadd.s32 %v1143_v14, %v1141_v17 }
  0xb1   :  { %vm936_vm3 = vcmp.lt.s32.totalorder %v4528_v40, 4  ;;  %v1135_v49 = vshrl.u32 %v4520_v7, 16  ;;  %v919_v23 = vshrl.u32 %v4079_v63, %v4539_v56  ;;  %v918_v29 = vshll.u32 %v6336_v61, %v4508_v28 }
  0xb2   :  { %3281 = vperm.xlu0 %4025, %v3223_v54   ;;  %v946_v45 = vsel %vm936_vm3, %v932_v2, 1326507024  ;;  %v4635_v46 = vsub.s32 32, %v4623_v26  ;;  %v4637_v53 = vadd.s32 %v1124_v8, %v1115_v34  ;;  %v3220_v54 = vld [vmem:[%s6328_s16 + $0x28] sm:$0xff]  ;;  %v1137_v7 = vshrl.u32 %v4552_v60, 16 }
  0xb3   :  { %v4645_v58 = vadd.s32 %v1140_v25, %v1136_v41  ;;  %v1146_v62 = vadd.s32 %v1145_v59, %v1135_v49  ;;  %v921_v0 = vshll.u32 %v4079_v63, %v4508_v28  ;;  %v4651_v24 = vshll.u32 %v4082_v9, %v4623_v26  ;;  %v3224_v41 = vld [vmem:[%s6328_s16 + $0x48] sm:$0xff]  ;;  %v2527_v25 = vld [vmem:[%s6324_s12 + $0x90] sm:$0xff]  ;;  %v176_v59 = vld [vmem:[%s6319_s7 + $0x38] sm:$0xff] }
  0xb4   :  { %3301 = vperm.xlu2 %4032, %v3227_v13   ;;  %v4655_v2 = vshrl.u32 %v4083_v20, %v4635_v46  ;;  %v4657_v13 = vor.u32 %v919_v23, %v918_v29  ;;  %v922_v47 = vshrl.u32 %v6338_v1, %v4539_v56  ;;  %v942_v60 = vsel %vm936_vm3, %v929_v37, 920167782  ;;  %192 = vmatpush.msra.mxu2 %v176_v59 }
  0xb5   :  { %v1147_v8 = vadd.s32 %v1146_v62, %v1137_v7  ;;  %v924_v17 = vshll.u32 %v6338_v1, %v4508_v28  ;;  %v925_v14 = vshrl.u32 %v4081_v5, %v4539_v56  ;;  %vm1150_vm4 = vc.u32 %v4637_v53, %v4645_v58  ;;  %2625 = vperm.xlu1 %4033, %v2527_v25   ;;  %v175_v62 = vld [vmem:[%s6319_s7 + $0x30] sm:$0xff] }
  0xb6   :  { %v4680_v49 = vor.u32 %v922_v47, %v921_v0  ;;  %vm935_vm5 = vcmp.lt.s32.totalorder %v4528_v40, 3  ;;  %vm933_vm6 = vcmp.lt.s32.totalorder %v4528_v40, 1  ;;  %v1148_v7 = vmul.u32 %v4436_v31, %v1094_v12  ;;  %193 = vmatpush.msra.mxu2 %v175_v62 }
  0xb7   :  { %v1151_v28 = vadd.s32 1, %v1147_v8  ;;  %v926_v23 = vor.u32 %v925_v14, %v924_v17  ;;  %v947_v29 = vsel %vm935_vm5, %v929_v37, %v946_v45  ;;  %vm934_vm7 = vcmp.lt.s32.totalorder %v4528_v40, 2  ;;  %v174_v45 = vld [vmem:[%s6319_s7 + $0x28] sm:$0xff]  ;;  %v3235_v40 = vld [vmem:[%s6328_s16 + $0xa0] sm:$0xff] }
  0xb8   :  { %v941_v0 = vsel %vm933_vm6, %v4657_v13, %v4680_v49  ;;  %v4704_v12 = vshrl.u32 %v4083_v20, %v4450_v38  ;;  %v3238_v20 = vld [vmem:[%s6328_s16 + $0xb8] sm:$0xff]  ;;  %194 = vmatpush.msra.mxu2 %v174_v45  ;;  %v950_v17 = vand.u32 65535, %v4607_v15  ;;  %v951_v14 = vshrl.u32 %v4607_v15, 16 }
  0xb9   :  { %v1152_v47 = vsel %vm1150_vm4, %v1151_v28, %v1147_v8  ;;  %v943_v37 = vsel %vm935_vm5, %v926_v23, %v942_v60  ;;  %v945_v31 = vsel %vm933_vm6, %v4680_v49, %v926_v23  ;;  %v172_v45 = vld [vmem:[%s6319_s7 + $0x18] sm:$0xff]  ;;  %v938_v30 = vsel %vm936_vm3, %v926_v23, 2102212464 }
  0xba   :  { %3266 = vperm.xlu0 %4025, %v3220_v54   ;;  %v774_v54 = vshrl.u32 %v4082_v9, %v4450_v38  ;;  %v1153_v25 = vadd.s32 %v1152_v47, %v1148_v7  ;;  %v944_v60 = vsel %vm934_vm7, %v941_v0, %v943_v37  ;;  %v948_v8 = vsel %vm934_vm7, %v945_v31, %v947_v29  ;;  %v3221_v7 = vld [vmem:[%s6328_s16 + $0x30] sm:$0xff] }
  0xbb   :  { %v952_v59 = vand.u32 65535, %v948_v8  ;;  %v953_v28 = vshrl.u32 %v948_v8, 16  ;;  %v975_v34 = vshrl.u32 %v944_v60, 16  ;;  %v2511_v29 = vld [vmem:[%s6324_s12 + $0x10] sm:$0xff]  ;;  %v974_v37 = vand.u32 65535, %v944_v60 }
  0xbc   :  { %3286 = vperm.xlu2 %4032, %v3224_v41   ;;  %v173_v41 = vld [vmem:[%s6319_s7 + $0x20] sm:$0xff]  ;;  %v1154_v62 = vadd.s32 536870912, %v1153_v25  ;;  %v4732_v31 = vshrl.u32 %v4386_v55, 5  ;;  %v4742_v42 = vor.u32 %v774_v54, %v4460_v43  ;;  %v917_v23 = vshrl.u32 %v6336_v61, %v4539_v56 }
  0xbd   :  { %195 = vmatpush.msra.mxu2 %v173_v41  ;;  %v4727_v0 = vmul.u32 %v953_v28, %v950_v17  ;;  %v4729_v47 = vmul.u32 %v952_v59, %v951_v14  ;;  %v4739_v19 = vmul.u32 %v975_v34, %v950_v17  ;;  %v778_v41 = vor.u32 %v4704_v12, %v4464_v44 }
  0xbe   :  { %v4737_v8 = vshrl.u32 %v1154_v62, 30  ;;  %v954_v60 = vmul.u32 %v952_v59, %v950_v17  ;;  %2545 = vperm.xlu1 %4033, %v2511_v29   ;;  %v957_v43 = vmul.u32 %v953_v28, %v951_v14  ;;  %v976_v59 = vmul.u32 %v974_v37, %v950_v17  ;;  %v169_v29 = vld [vmem:[%s6319_s7] sm:$0xff]  ;;  %v3216_v17 = vld [vmem:[%s6328_s16 + $0x8] sm:$0xff] }
  0xbf   :  { %196 = vmatpush.msra.mxu2 %v172_v45  ;;  %v958_v55 = vshll.u32 %v4727_v0, 16  ;;  %v980_v54 = vshll.u32 %v4739_v19, 16  ;;  %v960_v44 = vshll.u32 %v4729_v47, 16  ;;  %vm782_vm9 = vcmp.lt.s32.totalorder %v4732_v31, 4 }
  0xc0   :  { %v1156_v62 = vshll.u32 %v4737_v8, 30  ;;  %v937_v56 = vsel %vm933_vm6, %v917_v23, %v4657_v13  ;;  %v4789_v13 = vsel %vm782_vm9, %v4742_v42, 920167782  ;;  %vm1057_vm15 = vcmp.lt.s32.totalorder %v4362_v33, 0 }
  0xc1   :  { %vm962_vm8 = vc.u32 %v954_v60, %v958_v55  ;;  %v964_v12 = vadd.s32 %v958_v55, %v954_v60  ;;  %vm984_vm12 = vc.u32 %v976_v59, %v980_v54  ;;  %v3218_v55 = vld [vmem:[%s6328_s16 + $0x18] sm:$0xff]  ;;  %vm779_vm3 = vcmp.lt.s32.totalorder %v4732_v31, 1 }
  0xc2   :  { %3356 = vperm.xlu0 %4025, %v3238_v20   ;;  %v171_v20 = vld [vmem:[%s6319_s7 + $0x10] sm:$0xff]  ;;  %v4761_v45 = vsub.s32 %v1153_v25, %v1156_v62  ;;  %v963_v28 = vsel %vm962_vm8, 1, %v4076_v4  ;;  %v2509_v62 = vld [vmem:[%s6324_s12] sm:$0xff]  ;;  %vm781_vm4 = vcmp.lt.s32.totalorder %v4732_v31, 3  ;;  %vm4861_vm6 = vcmp.le.f32.partialorder %v1055_v48, 0.7853982 }
  0xc3   :  { %197 = vmatpush.msra.mxu2 %v171_v20  ;;  %v978_v20 = vmul.u32 %v974_v37, %v951_v14  ;;  %v965_v60 = vadd.s32 %v963_v28, %v957_v43  ;;  %vm966_vm11 = vc.u32 %v964_v12, %v960_v44  ;;  %v939_v37 = vsel %vm935_vm5, %v4680_v49, %v938_v30 }
  0xc4   :  { %3271 = vperm.xlu2 %4032, %v3221_v7   ;;  %v170_v7 = vld [vmem:[%s6319_s7 + $0x8] sm:$0xff]  ;;  %vm1158_vm13 = vcmp.lt.s32.totalorder %v4761_v45, 0  ;;  %v1159_v25 = vsub.s32 0, %v4761_v45  ;;  %v967_v43 = vsel %vm966_vm11, 1, %v4076_v4  ;;  %v979_v44 = vmul.u32 %v975_v34, %v951_v14 }
  0xc5   :  { %198 = vmatpush.msra.mxu2 %v170_v7  ;;  %v985_v12 = vsel %vm984_vm12, 1, %v4076_v4  ;;  %v986_v7 = vadd.s32 %v980_v54, %v976_v59  ;;  %v4793_v30 = vsel %vm782_vm9, %v778_v41, 1326507024  ;;  %v982_v23 = vshll.u32 %v978_v20, 16 }
  0xc6   :  { %v1160_v49 = vsel %vm1158_vm13, %v1159_v25, %v4761_v45  ;;  %v959_v28 = vshrl.u32 %v4727_v0, 16  ;;  %v969_v34 = vadd.s32 %v967_v43, %v965_v60  ;;  %v987_v14 = vadd.s32 %v985_v12, %v979_v44  ;;  %2535 = vperm.xlu1 %4033, %v2509_v62  }
  0xc7   :  { %199 = vmatpush.msra.mxu2 %v169_v29  ;;  %v1161_v29 = vclz %v1160_v49  ;;  %v4798_v54 = vshrl.u32 %v4513_v32, 5  ;;  %v619_v59 = vshll.u32 %v4081_v5, %v4523_v35  ;;  %v940_v41 = vsel %vm934_vm7, %v937_v56, %v939_v37 }
  0xc8   :  { %vm988_vm14 = vc.u32 %v986_v7, %v982_v23  ;;  %v961_v25 = vshrl.u32 %v4729_v47, 16  ;;  %v970_v49 = vadd.s32 %v969_v34, %v959_v28  ;;  %v620_v32 = vshrl.u32 %v4082_v9, %v4542_v57  ;;  %v2762_v28 = vld [vmem:[%s6326_s14 + $0x68] sm:$0xff] }
  0xc9   :  { %v989_v0 = vsel %vm988_vm14, 1, %v4076_v4  ;;  %v981_v60 = vshrl.u32 %v4739_v19, 16  ;;  %v1149_v47 = vadd.s32 %v4645_v58, %v4637_v53  ;;  %v994_v37 = vmul.u32 %v4607_v15, %v940_v41 }
  0xca   :  { %3246 = vperm.xlu0 %4025, %v3216_v17   ;;  %v3879_v17 = vadd.s32 4294967294, %v1161_v29  ;;  %v991_v43 = vadd.s32 %v989_v0, %v987_v14  ;;  %v4816_v56 = vadd.s32 %v970_v49, %v961_v25  ;;  %v983_v44 = vshrl.u32 %v978_v20, 16  ;;  %v3237_v29 = vld [vmem:[%s6328_s16 + $0xb0] sm:$0xff] }
  0xcb   :  { %v4819_v12 = vadd.s32 %v986_v7, %v982_v23  ;;  %v1179_v58 = vsub.s32 4, %v4737_v8  ;;  %v764_v15 = vshll.u32 %v6336_v61, %v4401_v3  ;;  %v768_v25 = vshrl.u32 %v6338_v1, %v4450_v38 }
  0xcc   :  { %3256 = vperm.xlu2 %4032, %v3218_v55   ;;  %v6335_v55 = vand.u32 2147483647, %v4335_v18  ;;  %vm3880_vm1 = vcmp.lt.s32.totalorder %v3879_v17, 0  ;;  %v992_v19 = vadd.s32 %v991_v43, %v981_v60  ;;  %v770_v0 = vshll.u32 %v6338_v1, %v4401_v3 }
  0xcd   :  { %v1164_v62 = vsel %vm3880_vm1, 0, %v3879_v17  ;;  %vm996_vm2 = vc.u32 %v4816_v56, %v4819_v12  ;;  %v767_v17 = vshll.u32 %v4079_v63, %v4401_v3  ;;  %v771_v60 = vshrl.u32 %v4081_v5, %v4450_v38  ;;  %v3232_v3 = vld [vmem:[%s6328_s16 + $0x88] sm:$0xff] }
  0xce   :  { %v1165_v34 = vsub.s32 32, %v1164_v62  ;;  %v1169_v53 = vsub.s32 4294967266, %v1164_v62  ;;  %v1166_v20 = vshll.u32 %v4761_v45, %v1164_v62  ;;  %v993_v7 = vadd.s32 %v992_v19, %v983_v44  ;;  %2840 = vperm.xlu1 %4033, %v2762_v28  }
  0xcf   :  { %v754_v23 = vand.u32 8388607, %v6335_v55  ;;  %v765_v45 = vshrl.u32 %v4079_v63, %v4450_v38  ;;  %v772_v19 = vor.u32 %v771_v60, %v770_v0  ;;  %v1180_v28 = vsel %vm1057_vm15, %v1179_v58, %v4737_v8 }
  0xd0   :  { %v1167_v14 = vshrl.u32 %v1149_v47, %v1165_v34  ;;  %v1170_v41 = vadd.s32 127, %v1169_v53  ;;  %v997_v49 = vadd.s32 1, %v993_v7  ;;  %v4845_v47 = vor.u32 %v768_v25, %v767_v17 }
  0xd1   :  { %v755_v44 = vor.u32 8388608, %v754_v23  ;;  %vm780_vm5 = vcmp.lt.s32.totalorder %v4732_v31, 2  ;;  %v793_v23 = vsel %vm781_vm4, %v4742_v42, %v4793_v30  ;;  %v4872_v8 = vor.u32 %v620_v32, %v619_v59 }
  0xd2   :  { %3341 = vperm.xlu0 %4025, %v3235_v40   ;;  %v1168_v43 = vor.u32 %v1167_v14, %v1166_v20  ;;  %v1171_v40 = vshll.u32 %v1170_v41, 23  ;;  %v998_v62 = vsel %vm996_vm2, %v997_v49, %v993_v7  ;;  %v766_v20 = vor.u32 %v765_v45, %v764_v15 }
  0xd3   :  { %v999_v34 = vadd.s32 %v998_v62, %v994_v37  ;;  %v791_v7 = vsel %vm779_vm3, %v4845_v47, %v772_v19  ;;  %v3215_v37 = vld [vmem:[%s6328_s16] sm:$0xff]  ;;  %vm628_vm7 = vcmp.lt.s32.totalorder %v4798_v54, 4  ;;  %v1182_v15 = vsel %vm4861_vm6, 0, %v1180_v28  ;;  %v3642_v28 = vld [vmem:[%s6330_s18 + $0x8] sm:$0xff] }
  0xd4   :  { %3351 = vperm.xlu2 %4032, %v3237_v29   ;;  %v1172_v29 = vor.u32 4788187, %v1171_v40  ;;  %v1175_v58 = vcvt.s32.f32 %v1168_v43  ;;  %v794_v41 = vsel %vm780_vm5, %v791_v7, %v793_v23  ;;  %v4882_v17 = vshll.u32 %v755_v44, 8 }
  0xd5   :  { %v1000_v14 = vadd.s32 536870912, %v999_v34  ;;  %v798_v59 = vand.u32 65535, %v794_v41  ;;  %v799_v32 = vshrl.u32 %v794_v41, 16  ;;  %v787_v25 = vsel %vm779_vm3, %v766_v20, %v4845_v47 }
  0xd6   :  { %v1173_v48 = vand.u32 2147483647, %v1172_v29  ;;  %v789_v49 = vsel %vm781_vm4, %v772_v19, %v4789_v13  ;;  %v796_v45 = vand.u32 65535, %v4882_v17  ;;  %v4894_v0 = vshrl.u32 %v4882_v17, 16 }
  0xd7   :  { %v4884_v30 = vshrl.u32 %v1000_v14, 30  ;;  %v4899_v60 = vsel %vm628_vm7, %v4872_v8, 920167782  ;;  %v6350_v62 = vor.u32 %v4560_v10, %v4556_v52  ;;  %v4910_v13 = vshrl.u32 %v4577_v27, 5 }
  0xd8   :  { %v1176_v42 = vmul.f32 %v1175_v58, %v1173_v48  ;;  %v4912_v29 = vmul.u32 %v799_v32, %v796_v45  ;;  %v790_v52 = vsel %vm780_vm5, %v787_v25, %v789_v49  ;;  %v800_v10 = vmul.u32 %v798_v59, %v796_v45 }
  0xd9   :  { %v1002_v40 = vshll.u32 %v4884_v30, 30  ;;  %v4907_v44 = vsel %vm628_vm7, %v6350_v62, 1326507024  ;;  %v4931_v48 = vmul.u32 %v798_v59, %v4894_v0  ;;  %v784_v41 = vsel %vm782_vm9, %v772_v19, 2102212464 }
  0xda   :  { %3326 = vperm.xlu0 %4025, %v3232_v3   ;;  %v1177_v43 = vxor.u32 2147483648, %v1176_v42  ;;  %v2128_v3 = vadd.s32 3, %v1182_v15  ;;  %v804_v58 = vshll.u32 %v4912_v29, 16  ;;  %v820_v59 = vand.u32 65535, %v790_v52 }
  0xdb   :  { %v4919_v23 = vsub.s32 %v999_v34, %v1002_v40  ;;  %v3233_v34 = vld [vmem:[%s6328_s16 + $0x90] sm:$0xff]  ;;  %v821_v25 = vshrl.u32 %v790_v52, 16  ;;  %v4959_v52 = vsel %vm781_vm4, %v4845_v47, %v784_v41  ;;  %vm903_vm4 = vcmp.lt.s32.totalorder %v4372_v39, 0 }
  0xdc   :  { %3241 = vperm.xlu2 %4032, %v3215_v37   ;;  %v1178_v7 = vsel %vm1057_vm15, %v1177_v43, %v1176_v42  ;;  %v4928_v37 = vand.u32 3, %v1182_v15  ;;  %v763_v15 = vshrl.u32 %v6336_v61, %v4450_v38  ;;  %v803_v42 = vmul.u32 %v799_v32, %v4894_v0 }
  0xdd   :  { %v4926_v27 = vsel %vm4861_vm6, %v4362_v33, %v1178_v7  ;;  %vm1004_vm8 = vcmp.lt.s32.totalorder %v4919_v23, 0  ;;  %v1005_v53 = vsub.s32 0, %v4919_v23  ;;  %vm808_vm11 = vc.u32 %v800_v10, %v804_v58 }
  0xde   :  { %v1183_v14 = vmul.f32 %v4926_v27, %v4926_v27  ;;  %v4947_v62 = vand.u32 3, %v2128_v3  ;;  %v995_v7 = vadd.s32 %v4819_v12, %v4816_v56  ;;  %v4954_v32 = vsel %vm779_vm3, %v763_v15, %v766_v20  ;;  %v3641_v20 = vld [vmem:[%s6330_s18] sm:$0xff] }
  0xdf   :  { %v1006_v40 = vsel %vm1004_vm8, %v1005_v53, %v4919_v23  ;;  %v809_v3 = vsel %vm808_vm11, 1, %v4076_v4  ;;  %v810_v53 = vadd.s32 %v804_v58, %v800_v10  ;;  %v822_v61 = vmul.u32 %v820_v59, %v796_v45 }
  0xe0   :  { %v1184_v49 = vmul.f32 -0.001358992, %v1183_v14  ;;  %v1191_v43 = vmul.f32 -0.00019511016, %v1183_v14  ;;  %v1007_v38 = vclz %v1006_v40  ;;  %v811_v40 = vadd.s32 %v809_v3, %v803_v42 }
  0xe1   :  { %v4962_v1 = vmul.u32 %v821_v25, %v796_v45  ;;  %v805_v15 = vshrl.u32 %v4912_v29, 16  ;;  %v4969_v47 = vmul.u32 %v820_v59, %v4894_v0  ;;  %vm2134_vm13 = vcmp.eq.s32.totalorder %v4947_v62, 2 }
  0xe2   :  { %3652 = vperm.xlu0 %4025, %v3642_v28   ;;  %v806_v28 = vshll.u32 %v4931_v48, 16  ;;  %v1185_v55 = vadd.f32 0.041655596, %v1184_v49  ;;  %v1192_v19 = vadd.f32 0.008332121, %v1191_v43  ;;  %vm1204_vm14 = vcmp.eq.s32.totalorder %v4928_v37, 2 }
  0xe3   :  { %vm2131_vm15 = vcmp.eq.s32.totalorder %v4947_v62, 0  ;;  %vm1201_vm1 = vcmp.eq.s32.totalorder %v4928_v37, 0  ;;  %v807_v29 = vshrl.u32 %v4931_v48, 16  ;;  %vm2130_vm2 = vcmp.lt.s32.totalorder %v4947_v62, 2 }
  0xe4   :  { %3331 = vperm.xlu2 %4032, %v3233_v34   ;;  %v3876_v34 = vadd.s32 4294967294, %v1007_v38  ;;  %v1186_v56 = vmul.f32 %v1185_v55, %v1183_v14  ;;  %v1193_v12 = vmul.f32 %v1192_v19, %v1183_v14  ;;  %vm812_vm12 = vc.u32 %v810_v53, %v806_v28 }
  0xe5   :  { %v813_v45 = vsel %vm812_vm12, 1, %v4076_v4  ;;  %vm1200_vm3 = vcmp.lt.s32.totalorder %v4928_v37, 2  ;;  %v825_v38 = vmul.u32 %v821_v25, %v4894_v0  ;;  %v826_v28 = vshll.u32 %v4962_v1, 16 }
  0xe6   :  { %vm3877_vm9 = vcmp.lt.s32.totalorder %v3876_v34, 0  ;;  %v1187_v41 = vadd.f32 -0.4999988, %v1186_v56  ;;  %v1194_v49 = vadd.f32 -0.16666654, %v1193_v12  ;;  %v815_v42 = vadd.s32 %v813_v45, %v811_v40 }
  0xe7   :  { %v1010_v55 = vsel %vm3877_vm9, 0, %v3876_v34  ;;  %vm1198_vm6 = vweird.f32 %v4362_v33  ;;  %v828_v56 = vshll.u32 %v4969_v47, 16  ;;  %vm830_vm8 = vc.u32 %v822_v61, %v826_v28 }
  0xe8   :  { %v1011_v10 = vsub.s32 32, %v1010_v55  ;;  %v1015_v58 = vsub.s32 4294967266, %v1010_v55  ;;  %v1188_v59 = vmul.f32 %v1187_v41, %v1183_v14  ;;  %v1195_v43 = vmul.f32 %v1194_v49, %v1183_v14 }
  0xe9   :  { %v1012_v19 = vshll.u32 %v4919_v23, %v1010_v55  ;;  %v816_v3 = vadd.s32 %v815_v42, %v805_v15  ;;  %v6351_v12 = vand.u32 2147483647, %v4372_v39  ;;  %v831_v23 = vsel %vm830_vm8, 1, %v4076_v4 }
  0xea   :  { %v1013_v34 = vshrl.u32 %v995_v7, %v1011_v10  ;;  %v1016_v48 = vadd.s32 127, %v1015_v58  ;;  %v1189_v53 = vadd.f32 1.0, %v1188_v59  ;;  %v1196_v14 = vadd.f32 1.0, %v1195_v43 }
  0xeb   :  { %vm4987_vm11 = vcmp.le.f32.partialorder %v6351_v12, 0.7853982  ;;  %v832_v41 = vadd.s32 %v826_v28, %v822_v61  ;;  %v833_v49 = vadd.s32 %v831_v23, %v825_v38  ;;  %v4994_v45 = vadd.s32 %v816_v3, %v807_v29 }
  0xec   :  { %3647 = vperm.xlu2 %4032, %v3641_v20   ;;  %v1014_v0 = vor.u32 %v1013_v34, %v1012_v19  ;;  %v1017_v25 = vshll.u32 %v1016_v48, 23  ;;  %v1025_v20 = vsub.s32 4, %v4884_v30  ;;  %v1197_v7 = vmul.f32 %v1196_v14, %v4926_v27 }
  0xed   :  { %v1205_v15 = vxor.u32 2147483648, %v1189_v53  ;;  %v827_v10 = vshrl.u32 %v4962_v1, 16  ;;  %v829_v58 = vshrl.u32 %v4969_v47, 16  ;;  %vm834_vm9 = vc.u32 %v832_v41, %v828_v56 }
  0xee   :  { %v1018_v55 = vor.u32 4788187, %v1017_v25  ;;  %v1202_v42 = vxor.u32 2147483648, %v1197_v7  ;;  %v1021_v59 = vcvt.s32.f32 %v1014_v0  ;;  %v593_v43 = vand.u32 2147483647, %v4381_v51 }
  0xef   :  { %v2136_v19 = vsel %vm2134_vm13, %v1205_v15, %v1197_v7  ;;  %v1206_v27 = vsel %vm1204_vm14, %v1205_v15, %v1197_v7  ;;  %v835_v38 = vsel %vm834_vm9, 1, %v4076_v4  ;;  %v5008_v47 = vadd.s32 %v832_v41, %v828_v56 }
  0xf0   :  { %v1019_v61 = vand.u32 2147483647, %v1018_v55  ;;  %v2133_v29 = vsel %vm2131_vm15, %v1189_v53, %v1202_v42  ;;  %v1203_v1 = vsel %vm1201_vm1, %v1189_v53, %v1202_v42  ;;  %v837_v28 = vadd.s32 %v835_v38, %v833_v49 }
  0xf1   :  { %v2137_v34 = vsel %vm2130_vm2, %v2133_v29, %v2136_v19  ;;  %v1207_v48 = vsel %vm1200_vm3, %v1203_v1, %v1206_v27  ;;  %v1026_v14 = vsel %vm903_vm4, %v1025_v20, %v4884_v30  ;;  %v600_v0 = vand.u32 8388607, %v593_v43 }
  0xf2   :  { %v1022_v3 = vmul.f32 %v1021_v59, %v1019_v61  ;;  %v2138_v12 = vsel %vm1198_vm6, nan, %v2137_v34  ;;  %v1208_v53 = vsel %vm1198_vm6, nan, %v1207_v48  ;;  %v838_v56 = vadd.s32 %v837_v28, %v827_v10 }
  0xf3   :  { %v465_v62 = vshll.u32 %v4081_v5, %v4586_v50  ;;  %v466_v37 = vshrl.u32 %v4082_v9, %v4599_v11  ;;  %2269 = vmatpush.msra.mxu1 %v2138_v12  ;;  %4000 = vmatpush.msra.mxu3 %v2138_v12  ;;  %v786_v30 = vsel %vm780_vm5, %v4954_v32, %v4959_v52  ;;  %v1028_v33 = vsel %vm4987_vm11, 0, %v1026_v14 }
  0xf4   :  { %v1023_v25 = vxor.u32 2147483648, %v1022_v3  ;;  %2430 = vmatpush.msra.mxu0 %v1208_v53  ;;  %4006 = vmatpush.msrb.mxu2 %v1208_v53  ;;  %v839_v20 = vadd.s32 %v838_v56, %v829_v58  ;;  %vm842_vm12 = vc.u32 %v4994_v45, %v5008_v47  ;;  %v613_v23 = vshll.u32 %v4079_v63, %v4523_v35 }
  0xf5   :  { %vm474_vm13 = vcmp.lt.s32.totalorder %v4910_v13, 4  ;;  %v6354_v31 = vmov 2131351028   ;;  %v617_v15 = vshrl.u32 %v4081_v5, %v4542_v57  ;;  %v840_v49 = vmul.u32 %v4882_v17, %v786_v30 }
  0xf6   :  { %v1024_v7 = vsel %vm903_vm4, %v1023_v25, %v1022_v3  ;;  %v614_v32 = vshrl.u32 %v6354_v31, %v4542_v57  ;;  %v616_v52 = vshll.u32 %v6354_v31, %v4523_v35  ;;  %v843_v55 = vadd.s32 1, %v839_v20 }
  0xf7   :  { %v5049_v41 = vsel %vm4987_vm11, %v4372_v39, %v1024_v7  ;;  %v601_v10 = vor.u32 8388608, %v600_v0  ;;  %vm627_vm5 = vcmp.lt.s32.totalorder %v4798_v54, 3  ;;  %v1973_v19 = vadd.s32 3, %v1028_v33 }
  0xf8   :  { %v1029_v58 = vmul.f32 %v5049_v41, %v5049_v41  ;;  %v5054_v42 = vor.u32 %v614_v32, %v613_v23  ;;  %v5056_v59 = vor.u32 %v617_v15, %v616_v52  ;;  %v844_v40 = vsel %vm842_vm12, %v843_v55, %v839_v20 }
  0xf9   :  { %v611_v27 = vshrl.u32 %v4079_v63, %v4542_v57  ;;  %v639_v17 = vsel %vm627_vm5, %v4872_v8, %v4907_v44  ;;  %v845_v29 = vadd.s32 %v844_v40, %v840_v49  ;;  %vm625_vm14 = vcmp.lt.s32.totalorder %v4798_v54, 1 }
  0xfa   :  { %v1030_v61 = vmul.f32 -0.001358992, %v1029_v58  ;;  %v1037_v38 = vmul.f32 -0.00019511016, %v1029_v58  ;;  %v5070_v1 = vshrl.u32 %v4620_v22, 5  ;;  %v637_v48 = vsel %vm625_vm14, %v5054_v42, %v5056_v59 }
  0xfb   :  { %v6355_v28 = vmov 683565275   ;;  %v5078_v3 = vshll.u32 %v601_v10, 8  ;;  %v846_v44 = vadd.s32 536870912, %v845_v29  ;;  %vm626_vm15 = vcmp.lt.s32.totalorder %v4798_v54, 2 }
  0xfc   :  { %v610_v34 = vshll.u32 %v6355_v28, %v4523_v35  ;;  %v1031_v14 = vadd.f32 0.041655596, %v1030_v61  ;;  %v1038_v8 = vadd.f32 0.008332121, %v1037_v38  ;;  %v5081_v12 = vor.u32 %v466_v37, %v465_v62 }
  0xfd   :  { %v1045_v53 = vand.u32 3, %v1028_v33  ;;  %v640_v56 = vsel %vm626_vm15, %v637_v48, %v639_v17  ;;  %v1974_v25 = vand.u32 3, %v1973_v19  ;;  %v5085_v30 = vshrl.u32 %v846_v44, 30 }
  0xfe   :  { %v612_v22 = vor.u32 %v611_v27, %v610_v34  ;;  %v1032_v35 = vmul.f32 %v1031_v14, %v1029_v58  ;;  %v1039_v0 = vmul.f32 %v1038_v8, %v1029_v58  ;;  %v6356_v20 = vor.u32 %v4618_v6, %v4614_v16 }
  0xff   :  { %v5095_v62 = vand.u32 65535, %v5078_v3  ;;  %v644_v37 = vand.u32 65535, %v640_v56  ;;  %v645_v33 = vshrl.u32 %v640_v56, 16  ;;  %v5099_v7 = vshll.u32 %v4081_v5, %v4623_v26 }
 0x100   :  { %v5092_v23 = vsel %vm474_vm13, %v6356_v20, 1326507024  ;;  %v1033_v32 = vadd.f32 -0.4999988, %v1032_v35  ;;  %v1040_v52 = vadd.f32 -0.16666654, %v1039_v0  ;;  %v633_v16 = vsel %vm625_vm14, %v612_v22, %v5054_v42 }
 0x101   :  { %v848_v15 = vshll.u32 %v5085_v30, 30  ;;  %vm1047_vm1 = vcmp.eq.s32.totalorder %v1045_v53, 0  ;;  %vm1050_vm2 = vcmp.eq.s32.totalorder %v1045_v53, 2  ;;  %v5106_v6 = vmul.u32 %v645_v33, %v5095_v62 }
 0x102   :  { %v1034_v49 = vmul.f32 %v1033_v32, %v1029_v58  ;;  %v1041_v55 = vmul.f32 %v1040_v52, %v1029_v58  ;;  %vm1975_vm3 = vcmp.lt.s32.totalorder %v1974_v25, 2  ;;  %vm1046_vm4 = vcmp.lt.s32.totalorder %v1045_v53, 2 }
 0x103   :  { %v5108_v10 = vsub.s32 %v845_v29, %v848_v15  ;;  %v635_v19 = vsel %vm627_vm5, %v5056_v59, %v4899_v60  ;;  %vm1044_vm6 = vweird.f32 %v4372_v39  ;;  %vm1976_vm8 = vcmp.eq.s32.totalorder %v1974_v25, 0 }
 0x104   :  { %v5116_v40 = vshrl.u32 %v5078_v3, 16  ;;  %v646_v27 = vmul.u32 %v644_v37, %v5095_v62  ;;  %v650_v17 = vshll.u32 %v5106_v6, 16  ;;  %v1035_v58 = vadd.f32 1.0, %v1034_v49 }
 0x105   :  { %v1042_v61 = vadd.f32 1.0, %v1041_v55  ;;  %vm850_vm11 = vcmp.lt.s32.totalorder %v5108_v10, 0  ;;  %v851_v38 = vsub.s32 0, %v5108_v10  ;;  %v609_v29 = vshrl.u32 %v6355_v28, %v4542_v57 }
 0x106   :  { %v636_v60 = vsel %vm626_vm15, %v633_v16, %v635_v19  ;;  %v648_v34 = vmul.u32 %v644_v37, %v5116_v40  ;;  %vm654_vm9 = vc.u32 %v646_v27, %v650_v17  ;;  %v1051_v14 = vxor.u32 2147483648, %v1035_v58 }
 0x107   :  { %v1043_v48 = vmul.f32 %v1042_v61, %v5049_v41  ;;  %vm1979_vm12 = vcmp.eq.s32.totalorder %v1974_v25, 2  ;;  %v852_v8 = vsel %vm850_vm11, %v851_v38, %v5108_v10  ;;  %v841_v44 = vadd.s32 %v5008_v47, %v4994_v45 }
 0x108   :  { %v853_v56 = vclz %v852_v8  ;;  %v5133_v35 = vsel %vm625_vm14, %v609_v29, %v612_v22  ;;  %v655_v57 = vsel %vm654_vm9, 1, %v4076_v4  ;;  %v649_v20 = vmul.u32 %v645_v33, %v5116_v40 }
 0x109   :  { %v1048_v0 = vxor.u32 2147483648, %v1043_v48  ;;  %v666_v37 = vand.u32 65535, %v636_v60  ;;  %v667_v32 = vshrl.u32 %v636_v60, 16  ;;  %v1981_v41 = vsel %vm1979_vm12, %v1051_v14, %v1043_v48 }
 0x10a   :  { %v1052_v52 = vsel %vm1050_vm2, %v1051_v14, %v1043_v48  ;;  %v3873_v15 = vadd.s32 4294967294, %v853_v56  ;;  %v652_v16 = vshll.u32 %v648_v34, 16  ;;  %vm749_vm11 = vcmp.lt.s32.totalorder %v4335_v18, 0 }
 0x10b   :  { %v1978_v49 = vsel %vm1976_vm8, %v1035_v58, %v1048_v0  ;;  %v1049_v45 = vsel %vm1047_vm1, %v1035_v58, %v1048_v0  ;;  %v656_v47 = vadd.s32 %v650_v17, %v646_v27  ;;  %v657_v22 = vadd.s32 %v655_v57, %v649_v20 }
 0x10c   :  { %v1982_v55 = vsel %vm1975_vm3, %v1978_v49, %v1981_v41  ;;  %v1053_v19 = vsel %vm1046_vm4, %v1049_v45, %v1052_v52  ;;  %vm3874_vm14 = vcmp.lt.s32.totalorder %v3873_v15, 0  ;;  %v630_v33 = vsel %vm628_vm7, %v5056_v59, 2102212464 }
 0x10d   :  { %v1983_v61 = vsel %vm1044_vm6, nan, %v1982_v55  ;;  %v856_v38 = vsel %vm3874_vm14, 0, %v3873_v15  ;;  %v871_v29 = vsub.s32 4, %v5085_v30  ;;  %vm658_vm1 = vc.u32 %v656_v47, %v652_v16 }
 0x10e   :  { %2270 = vmatpush.msra.mxu1 %v1983_v61  ;;  %4001 = vmatpush.msra.mxu3 %v1983_v61  ;;  %v1054_v25 = vsel %vm1044_vm6, nan, %v1053_v19  ;;  %v857_v27 = vsub.s32 32, %v856_v38  ;;  %v861_v53 = vsub.s32 4294967266, %v856_v38  ;;  %v659_v17 = vsel %vm658_vm1, 1, %v4076_v4 }
 0x10f   :  { %2431 = vmatpush.msra.mxu0 %v1054_v25  ;;  %4007 = vmatpush.msrb.mxu2 %v1054_v25  ;;  %v651_v59 = vshrl.u32 %v5106_v6, 16  ;;  %v661_v58 = vadd.s32 %v659_v17, %v657_v22  ;;  %v669_v60 = vmul.u32 %v667_v32, %v5095_v62  ;;  %v670_v48 = vmul.u32 %v666_v37, %v5116_v40 }
 0x110   :  { %v858_v14 = vshll.u32 %v5108_v10, %v856_v38  ;;  %v859_v8 = vshrl.u32 %v841_v44, %v857_v27  ;;  %v862_v56 = vadd.s32 127, %v861_v53  ;;  %v439_v39 = vand.u32 2147483647, %v4504_v21 }
 0x111   :  { %v653_v57 = vshrl.u32 %v648_v34, 16  ;;  %v662_v0 = vadd.s32 %v661_v58, %v651_v59  ;;  %v668_v20 = vmul.u32 %v666_v37, %v5095_v62  ;;  %v672_v41 = vshll.u32 %v669_v60, 16 }
 0x112   :  { %v860_v52 = vor.u32 %v859_v8, %v858_v14  ;;  %v863_v15 = vshll.u32 %v862_v56, 23  ;;  %v631_v6 = vsel %vm627_vm5, %v5054_v42, %v630_v33  ;;  %v671_v16 = vmul.u32 %v667_v32, %v5116_v40  ;;  %v2759_v42 = vld [vmem:[%s6326_s14 + $0x50] sm:$0xff] }
 0x113   :  { %v6357_v49 = vand.u32 2147483647, %v4335_v18  ;;  %v663_v44 = vadd.s32 %v662_v0, %v653_v57  ;;  %v674_v34 = vshll.u32 %v670_v48, 16  ;;  %vm676_vm2 = vc.u32 %v668_v20, %v672_v41  ;;  %2825 = vperm.xlu1 %4033, %v2759_v42  }
 0x114   :  { %v678_v45 = vadd.s32 %v672_v41, %v668_v20  ;;  %v864_v62 = vor.u32 4788187, %v863_v15  ;;  %v872_v37 = vsel %vm749_vm11, %v871_v29, %v5085_v30  ;;  %v677_v40 = vsel %vm676_vm2, 1, %v4076_v4 }
 0x115   :  { %vm5164_vm7 = vcmp.le.f32.partialorder %v6357_v49, 0.7853982  ;;  %v446_v32 = vand.u32 8388607, %v439_v39  ;;  %v673_v47 = vshrl.u32 %v669_v60, 16  ;;  %v679_v22 = vadd.s32 %v677_v40, %v671_v16 }
 0x116   :  { %vm680_vm5 = vc.u32 %v678_v45, %v674_v34  ;;  %v682_v55 = vadd.s32 %v678_v45, %v674_v34  ;;  %v865_v19 = vand.u32 2147483647, %v864_v62  ;;  %v867_v33 = vcvt.s32.f32 %v860_v52 }
 0x117   :  { %v675_v61 = vshrl.u32 %v670_v48, 16  ;;  %v681_v38 = vsel %vm680_vm5, 1, %v4076_v4  ;;  %v457_v25 = vshrl.u32 %v4079_v63, %v4599_v11  ;;  %v447_v53 = vor.u32 8388608, %v446_v32 }
 0x118   :  { %v683_v30 = vadd.s32 %v681_v38, %v679_v22  ;;  %v5178_v29 = vadd.s32 %v682_v55, %v663_v44  ;;  %vm688_vm3 = vc.u32 %v663_v44, %v682_v55  ;;  %v868_v27 = vmul.f32 %v867_v33, %v865_v19 }
 0x119   :  { %v459_v17 = vshll.u32 %v4079_v63, %v4586_v50  ;;  %v460_v59 = vshrl.u32 %v6354_v31, %v4599_v11  ;;  %v456_v60 = vshll.u32 %v6355_v28, %v4586_v50  ;;  %v462_v48 = vshll.u32 %v6354_v31, %v4586_v50 }
 0x11a   :  { %v684_v58 = vadd.s32 %v683_v30, %v673_v47  ;;  %v463_v14 = vshrl.u32 %v4081_v5, %v4599_v11  ;;  %v869_v8 = vxor.u32 2147483648, %v868_v27  ;;  %v632_v56 = vsel %vm626_vm15, %v5133_v35, %v631_v6 }
 0x11b   :  { %v5195_v57 = vor.u32 %v460_v59, %v459_v17  ;;  %vm473_vm4 = vcmp.lt.s32.totalorder %v4910_v13, 3  ;;  %v5198_v20 = vor.u32 %v457_v25, %v456_v60  ;;  %v480_v52 = vsel %vm474_vm13, %v5081_v12, 920167782 }
 0x11c   :  { %v685_v0 = vadd.s32 %v684_v58, %v675_v61  ;;  %v464_v41 = vor.u32 %v463_v14, %v462_v48  ;;  %v485_v50 = vsel %vm473_vm4, %v5081_v12, %v5092_v23  ;;  %v312_v54 = vshrl.u32 %v4082_v9, %v4635_v46 }
 0x11d   :  { %v870_v35 = vsel %vm749_vm11, %v869_v8, %v868_v27  ;;  %v874_v15 = vsel %vm5164_vm7, 0, %v872_v37  ;;  %vm471_vm15 = vcmp.lt.s32.totalorder %v4910_v13, 1  ;;  %v5219_v23 = vshll.u32 %v447_v53, 8 }
 0x11e   :  { %v5216_v6 = vsel %vm5164_vm7, %v4335_v18, %v870_v35  ;;  %v689_v16 = vadd.s32 1, %v685_v0  ;;  %v686_v9 = vmul.u32 %v5078_v3, %v632_v56  ;;  %vm472_vm6 = vcmp.lt.s32.totalorder %v4910_v13, 2 }
 0x11f   :  { %v875_v12 = vmul.f32 %v5216_v6, %v5216_v6  ;;  %v483_v49 = vsel %vm471_vm15, %v5195_v57, %v464_v41  ;;  %v1818_v34 = vadd.s32 3, %v874_v15  ;;  %v479_v45 = vsel %vm471_vm15, %v5198_v20, %v5195_v57 }
 0x120   :  { %v690_v10 = vsel %vm688_vm3, %v689_v16, %v685_v0  ;;  %v486_v62 = vsel %vm472_vm6, %v483_v49, %v485_v50  ;;  %v481_v40 = vsel %vm473_vm4, %v464_v41, %v480_v52  ;;  %v488_v32 = vand.u32 65535, %v5219_v23 }
 0x121   :  { %v876_v37 = vmul.f32 -0.001358992, %v875_v12  ;;  %v883_v42 = vmul.f32 -0.00019511016, %v875_v12  ;;  %v691_v3 = vadd.s32 %v690_v10, %v686_v9  ;;  %v5239_v47 = vshrl.u32 %v5219_v23, 16 }
 0x122   :  { %v490_v44 = vand.u32 65535, %v486_v62  ;;  %v491_v22 = vshrl.u32 %v486_v62, 16  ;;  %vm320_vm8 = vcmp.lt.s32.totalorder %v5070_v1, 4  ;;  %v5243_v61 = vor.u32 %v312_v54, %v5099_v7 }
 0x123   :  { %v877_v55 = vadd.f32 0.041655596, %v876_v37  ;;  %v884_v19 = vadd.f32 0.008332121, %v883_v42  ;;  %v692_v33 = vadd.s32 536870912, %v691_v3  ;;  %v891_v38 = vand.u32 3, %v874_v15 }
 0x124   :  { %v5245_v30 = vmul.u32 %v491_v22, %v488_v32  ;;  %v5248_v25 = vmul.u32 %v490_v44, %v5239_v47  ;;  %v482_v59 = vsel %vm472_vm6, %v479_v45, %v481_v40  ;;  %v6360_v58 = vor.u32 %v4655_v2, %v4651_v24 }
 0x125   :  { %v878_v27 = vmul.f32 %v877_v55, %v875_v12  ;;  %v885_v53 = vmul.f32 %v884_v19, %v875_v12  ;;  %v5250_v17 = vshrl.u32 %v692_v33, 30  ;;  %v1819_v60 = vand.u32 3, %v1818_v34 }
 0x126   :  { %v5259_v7 = vsel %vm320_vm8, %v6360_v58, 1326507024  ;;  %v492_v48 = vmul.u32 %v490_v44, %v488_v32  ;;  %v496_v14 = vshll.u32 %v5245_v30, 16  ;;  %v455_v50 = vshrl.u32 %v6355_v28, %v4599_v11 }
 0x127   :  { %v879_v8 = vadd.f32 -0.4999988, %v878_v27  ;;  %v886_v56 = vadd.f32 -0.16666654, %v885_v53  ;;  %v694_v0 = vshll.u32 %v5250_v17, 30  ;;  %vm893_vm9 = vcmp.eq.s32.totalorder %v891_v38, 0 }
 0x128   :  { %vm896_vm12 = vcmp.eq.s32.totalorder %v891_v38, 2  ;;  %v498_v52 = vshll.u32 %v5248_v25, 16  ;;  %vm500_vm11 = vc.u32 %v492_v48, %v496_v14  ;;  %v502_v24 = vadd.s32 %v496_v14, %v492_v48 }
 0x129   :  { %v513_v2 = vshrl.u32 %v482_v59, 16  ;;  %v880_v54 = vmul.f32 %v879_v8, %v875_v12  ;;  %v887_v35 = vmul.f32 %v886_v56, %v875_v12  ;;  %vm892_vm14 = vcmp.lt.s32.totalorder %v891_v38, 2 }
 0x12a   :  { %v5266_v15 = vsub.s32 %v691_v3, %v694_v0  ;;  %v476_v16 = vsel %vm474_vm13, %v464_v41, 2102212464  ;;  %vm890_vm1 = vweird.f32 %v4335_v18  ;;  %v495_v9 = vmul.u32 %v491_v22, %v5239_v47 }
 0x12b   :  { %v501_v11 = vsel %vm500_vm11, 1, %v4076_v4  ;;  %vm5273_vm7 = vc.u32 %v502_v24, %v498_v52  ;;  %v512_v34 = vand.u32 65535, %v482_v59  ;;  %v881_v10 = vadd.f32 1.0, %v880_v54 }
 0x12c   :  { %v888_v45 = vadd.f32 1.0, %v887_v35  ;;  %vm696_vm2 = vcmp.lt.s32.totalorder %v5266_v15, 0  ;;  %v697_v12 = vsub.s32 0, %v5266_v15  ;;  %vm1820_vm5 = vcmp.lt.s32.totalorder %v1819_v60, 2 }
 0x12d   :  { %v475_v41 = vsel %vm471_vm15, %v455_v50, %v5198_v20  ;;  %v477_v62 = vsel %vm473_vm4, %v5195_v57, %v476_v16  ;;  %v5285_v37 = vmul.u32 %v513_v2, %v488_v32  ;;  %v897_v3 = vxor.u32 2147483648, %v881_v10 }
 0x12e   :  { %v889_v42 = vmul.f32 %v888_v45, %v5216_v6  ;;  %v698_v40 = vsel %vm696_vm2, %v697_v12, %v5266_v15  ;;  %v503_v44 = vadd.s32 %v501_v11, %v495_v9  ;;  %vm1821_vm13 = vcmp.eq.s32.totalorder %v1819_v60, 0 }
 0x12f   :  { %vm1824_vm3 = vcmp.eq.s32.totalorder %v1819_v60, 2  ;;  %v699_v22 = vclz %v698_v40  ;;  %v505_v55 = vsel %vm5273_vm7, 1, %v4076_v4  ;;  %v5294_v19 = vsel %vm472_vm6, %v475_v41, %v477_v62  ;;  %v3644_v40 = vld [vmem:[%s6330_s18 + $0x18] sm:$0xff] }
 0x130   :  { %v894_v20 = vxor.u32 2147483648, %v889_v42  ;;  %v497_v57 = vshrl.u32 %v5245_v30, 16  ;;  %v514_v33 = vmul.u32 %v512_v34, %v488_v32  ;;  %v1826_v6 = vsel %vm1824_vm3, %v897_v3, %v889_v42  ;;  %3662 = vperm.xlu2 %4032, %v3644_v40  }
 0x131   :  { %v3870_v27 = vadd.s32 4294967294, %v699_v22  ;;  %v516_v53 = vmul.u32 %v512_v34, %v5239_v47  ;;  %v518_v59 = vshll.u32 %v5285_v37, 16  ;;  %v898_v14 = vsel %vm896_vm12, %v897_v3, %v889_v42 }
 0x132   :  { %v1823_v58 = vsel %vm1821_vm13, %v881_v10, %v894_v20  ;;  %v895_v48 = vsel %vm893_vm9, %v881_v10, %v894_v20  ;;  %v507_v8 = vadd.s32 %v505_v55, %v503_v44  ;;  %v499_v30 = vshrl.u32 %v5248_v25, 16  ;;  %v2756_v44 = vld [vmem:[%s6326_s14 + $0x38] sm:$0xff] }
 0x133   :  { %v1827_v56 = vsel %vm1820_vm5, %v1823_v58, %v1826_v6  ;;  %v899_v13 = vsel %vm892_vm14, %v895_v48, %v898_v14  ;;  %vm3871_vm4 = vcmp.lt.s32.totalorder %v3870_v27, 0  ;;  %v517_v52 = vmul.u32 %v513_v2, %v5239_v47  ;;  %2810 = vperm.xlu1 %4033, %v2756_v44  }
 0x134   :  { %v1828_v32 = vsel %vm890_vm1, nan, %v1827_v56  ;;  %v702_v0 = vsel %vm3871_vm4, 0, %v3870_v27  ;;  %v508_v50 = vadd.s32 %v507_v8, %v497_v57  ;;  %v900_v24 = vsel %vm890_vm1, nan, %v899_v13 }
 0x135   :  { %2271 = vmatpush.msra.mxu1 %v1828_v32  ;;  %4002 = vmatpush.msra.mxu3 %v1828_v32  ;;  %vm595_vm15 = vcmp.lt.s32.totalorder %v4381_v51, 0  ;;  %v703_v60 = vsub.s32 32, %v702_v0  ;;  %v707_v38 = vsub.s32 4294967266, %v702_v0  ;;  %v520_v54 = vshll.u32 %v516_v53, 16 }
 0x136   :  { %2432 = vmatpush.msra.mxu0 %v900_v24  ;;  %4008 = vmatpush.msrb.mxu2 %v900_v24  ;;  %v509_v25 = vadd.s32 %v508_v50, %v499_v30  ;;  %vm522_vm6 = vc.u32 %v514_v33, %v518_v59  ;;  %v524_v35 = vadd.s32 %v518_v59, %v514_v33  ;;  %v285_v16 = vand.u32 2147483647, %v4525_v36 }
 0x137   :  { %v704_v9 = vshll.u32 %v5266_v15, %v702_v0  ;;  %v705_v47 = vshrl.u32 %v5178_v29, %v703_v60  ;;  %v708_v2 = vadd.s32 127, %v707_v38  ;;  %v523_v18 = vsel %vm522_vm6, 1, %v4076_v4 }
 0x138   :  { %v717_v11 = vsub.s32 4, %v5250_v17  ;;  %v525_v49 = vadd.s32 %v523_v18, %v517_v52  ;;  %vm526_vm9 = vc.u32 %v524_v35, %v520_v54  ;;  %v528_v34 = vadd.s32 %v524_v35, %v520_v54 }
 0x139   :  { %v706_v10 = vor.u32 %v705_v47, %v704_v9  ;;  %v709_v45 = vshll.u32 %v708_v2, 23  ;;  %v527_v12 = vsel %vm526_vm9, 1, %v4076_v4  ;;  %v292_v41 = vand.u32 8388607, %v285_v16 }
 0x13a   :  { %v519_v62 = vshrl.u32 %v5285_v37, 16  ;;  %v529_v15 = vadd.s32 %v527_v12, %v525_v49  ;;  %v5319_v42 = vadd.s32 %v528_v34, %v509_v25  ;;  %vm534_vm12 = vc.u32 %v509_v25, %v528_v34 }
 0x13b   :  { %v710_v29 = vor.u32 4788187, %v709_v45  ;;  %v713_v3 = vcvt.s32.f32 %v706_v10  ;;  %v521_v22 = vshrl.u32 %v516_v53, 16  ;;  %v302_v55 = vshll.u32 %v6355_v28, %v4623_v26 }
 0x13c   :  { %v530_v37 = vadd.s32 %v529_v15, %v519_v62  ;;  %v293_v20 = vor.u32 8388608, %v292_v41  ;;  %v303_v57 = vshrl.u32 %v4079_v63, %v4635_v46  ;;  %v305_v33 = vshll.u32 %v4079_v63, %v4623_v26 }
 0x13d   :  { %v711_v6 = vand.u32 2147483647, %v710_v29  ;;  %v306_v27 = vshrl.u32 %v6354_v31, %v4635_v46  ;;  %v308_v53 = vshll.u32 %v6354_v31, %v4623_v26  ;;  %v309_v59 = vshrl.u32 %v4081_v5, %v4635_v46 }
 0x13e   :  { %v718_v58 = vsel %vm595_vm15, %v717_v11, %v5250_v17  ;;  %v531_v48 = vadd.s32 %v530_v37, %v521_v22  ;;  %v5342_v14 = vor.u32 %v303_v57, %v302_v55  ;;  %vm319_vm11 = vcmp.lt.s32.totalorder %v5070_v1, 3 }
 0x13f   :  { %v714_v63 = vmul.f32 %v713_v3, %v711_v6  ;;  %v5345_v8 = vor.u32 %v306_v27, %v305_v33  ;;  %v5347_v56 = vor.u32 %v309_v59, %v308_v53  ;;  %v331_v26 = vsel %vm319_vm11, %v5243_v61, %v5259_v7 }
 0x140   :  { %v326_v5 = vsel %vm320_vm8, %v5243_v61, 920167782  ;;  %vm594_vm14 = vcmp.le.f32.partialorder %v593_v43, 0.7853982  ;;  %v532_v31 = vmul.u32 %v5219_v23, %v5294_v19  ;;  %v535_v17 = vadd.s32 1, %v531_v48 }
 0x141   :  { %v715_v13 = vxor.u32 2147483648, %v714_v63  ;;  %v720_v30 = vsel %vm594_vm14, 0, %v718_v58  ;;  %vm317_vm1 = vcmp.lt.s32.totalorder %v5070_v1, 1  ;;  %v5361_v32 = vshll.u32 %v293_v20, 8 }
 0x142   :  { %v536_v0 = vsel %vm534_vm12, %v535_v17, %v531_v48  ;;  %vm318_vm7 = vcmp.lt.s32.totalorder %v5070_v1, 2  ;;  %v325_v61 = vsel %vm317_vm1, %v5342_v14, %v5345_v8  ;;  %v329_v43 = vsel %vm317_vm1, %v5345_v8, %v5347_v56 }
 0x143   :  { %v716_v23 = vsel %vm595_vm15, %v715_v13, %v714_v63  ;;  %v537_v7 = vadd.s32 %v536_v0, %v532_v31  ;;  %v327_v19 = vsel %vm319_vm11, %v5347_v56, %v326_v5  ;;  %v332_v50 = vsel %vm318_vm7, %v329_v43, %v331_v26 }
 0x144   :  { %v719_v52 = vsel %vm594_vm14, %v4381_v51, %v716_v23  ;;  %v336_v24 = vand.u32 65535, %v332_v50  ;;  %v334_v54 = vand.u32 65535, %v5361_v32  ;;  %v337_v25 = vshrl.u32 %v332_v50, 16 }
 0x145   :  { %v721_v60 = vmul.f32 %v719_v52, %v719_v52  ;;  %v538_v38 = vadd.s32 536870912, %v537_v7  ;;  %v1663_v35 = vadd.s32 3, %v720_v30  ;;  %v328_v9 = vsel %vm318_vm7, %v325_v61, %v327_v19 }
 0x146   :  { %v335_v47 = vshrl.u32 %v5361_v32, 16  ;;  %v339_v49 = vmul.u32 %v337_v25, %v334_v54  ;;  %v5389_v12 = vand.u32 3, %v720_v30  ;;  %v338_v15 = vmul.u32 %v336_v24, %v334_v54 }
 0x147   :  { %v722_v2 = vmul.f32 -0.001358992, %v721_v60  ;;  %v729_v18 = vmul.f32 -0.00019511016, %v721_v60  ;;  %v5385_v11 = vshrl.u32 %v538_v38, 30  ;;  %v1664_v62 = vand.u32 3, %v1663_v35 }
 0x148   :  { %v5387_v34 = vmul.u32 %v336_v24, %v335_v47  ;;  %v342_v29 = vshll.u32 %v339_v49, 16  ;;  %v359_v3 = vshrl.u32 %v328_v9, 16  ;;  %v358_v55 = vand.u32 65535, %v328_v9 }
 0x149   :  { %v723_v10 = vadd.f32 0.041655596, %v722_v2  ;;  %v730_v45 = vadd.f32 0.008332121, %v729_v18  ;;  %v540_v41 = vshll.u32 %v5385_v11, 30  ;;  %v341_v37 = vmul.u32 %v337_v25, %v335_v47 }
 0x14a   :  { %v344_v20 = vshll.u32 %v5387_v34, 16  ;;  %vm346_vm2 = vc.u32 %v338_v15, %v342_v29  ;;  %v348_v57 = vadd.s32 %v342_v29, %v338_v15  ;;  %vm739_vm13 = vcmp.eq.s32.totalorder %v5389_v12, 0 }
 0x14b   :  { %v724_v40 = vmul.f32 %v723_v10, %v721_v60  ;;  %v731_v44 = vmul.f32 %v730_v45, %v721_v60  ;;  %v5392_v22 = vsub.s32 %v537_v7, %v540_v41  ;;  %vm742_vm3 = vcmp.eq.s32.totalorder %v5389_v12, 2 }
 0x14c   :  { %v347_v53 = vsel %vm346_vm2, 1, %v4076_v4  ;;  %vm350_vm4 = vc.u32 %v348_v57, %v344_v20  ;;  %v5400_v59 = vmul.u32 %v359_v3, %v334_v54  ;;  %vm738_vm15 = vcmp.lt.s32.totalorder %v5389_v12, 2 }
 0x14d   :  { %v725_v33 = vadd.f32 -0.4999988, %v724_v40  ;;  %v732_v6 = vadd.f32 -0.16666654, %v731_v44  ;;  %vm542_vm5 = vcmp.lt.s32.totalorder %v5392_v22, 0  ;;  %v543_v27 = vsub.s32 0, %v5392_v22 }
 0x14e   :  { %v349_v26 = vadd.s32 %v347_v53, %v341_v37  ;;  %vm736_vm6 = vweird.f32 %v4381_v51  ;;  %vm1665_vm9 = vcmp.lt.s32.totalorder %v1664_v62, 2  ;;  %vm1666_vm12 = vcmp.eq.s32.totalorder %v1664_v62, 0  ;;  %v2753_v51 = vld [vmem:[%s6326_s14 + $0x20] sm:$0xff] }
 0x14f   :  { %v726_v58 = vmul.f32 %v725_v33, %v721_v60  ;;  %v733_v48 = vmul.f32 %v732_v6, %v721_v60  ;;  %v544_v63 = vsel %vm542_vm5, %v543_v27, %v5392_v22  ;;  %v5405_v31 = vmul.u32 %v358_v55, %v335_v47  ;;  %2795 = vperm.xlu1 %4033, %v2753_v51  }
 0x150   :  { %v545_v5 = vclz %v544_v63  ;;  %vm1669_vm14 = vcmp.eq.s32.totalorder %v1664_v62, 2  ;;  %v351_v30 = vsel %vm350_vm4, 1, %v4076_v4  ;;  %v322_v61 = vsel %vm320_vm8, %v5347_v56, 2102212464 }
 0x151   :  { %v727_v17 = vadd.f32 1.0, %v726_v58  ;;  %v734_v13 = vadd.f32 1.0, %v733_v48  ;;  %v345_v43 = vshrl.u32 %v5387_v34, 16  ;;  %v360_v23 = vmul.u32 %v358_v55, %v334_v54 }
 0x152   :  { %v3867_v0 = vadd.s32 4294967294, %v545_v5  ;;  %v353_v50 = vadd.s32 %v351_v30, %v349_v26  ;;  %v364_v24 = vshll.u32 %v5400_v59, 16  ;;  %v343_v60 = vshrl.u32 %v339_v49, 16 }
 0x153   :  { %v735_v7 = vmul.f32 %v734_v13, %v719_v52  ;;  %v743_v19 = vxor.u32 2147483648, %v727_v17  ;;  %v363_v38 = vmul.u32 %v359_v3, %v335_v47  ;;  %v366_v25 = vshll.u32 %v5405_v31, 16 }
 0x154   :  { %vm3868_vm2 = vcmp.lt.s32.totalorder %v3867_v0, 0  ;;  %v354_v52 = vadd.s32 %v353_v50, %v343_v60  ;;  %vm368_vm8 = vc.u32 %v360_v23, %v364_v24  ;;  %v370_v47 = vadd.s32 %v364_v24, %v360_v23 }
 0x155   :  { %v740_v35 = vxor.u32 2147483648, %v735_v7  ;;  %v1671_v9 = vsel %vm1669_vm14, %v743_v19, %v735_v7  ;;  %v744_v2 = vsel %vm742_vm3, %v743_v19, %v735_v7  ;;  %v548_v18 = vsel %vm3868_vm2, 0, %v3867_v0 }
 0x156   :  { %v549_v56 = vsub.s32 32, %v548_v18  ;;  %v550_v34 = vshll.u32 %v5392_v22, %v548_v18  ;;  %v553_v54 = vsub.s32 4294967266, %v548_v18  ;;  %v355_v44 = vadd.s32 %v354_v52, %v345_v43 }
 0x157   :  { %v1668_v10 = vsel %vm1666_vm12, %v727_v17, %v740_v35  ;;  %v741_v45 = vsel %vm739_vm13, %v727_v17, %v740_v35  ;;  %v369_v22 = vsel %vm368_vm8, 1, %v4076_v4  ;;  %vm372_vm5 = vc.u32 %v370_v47, %v366_v25 }
 0x158   :  { %v1672_v49 = vsel %vm1665_vm9, %v1668_v10, %v1671_v9  ;;  %v745_v41 = vsel %vm738_vm15, %v741_v45, %v744_v2  ;;  %v551_v15 = vshrl.u32 %v5319_v42, %v549_v56  ;;  %v554_v29 = vadd.s32 127, %v553_v54 }
 0x159   :  { %v1673_v3 = vsel %vm736_vm6, nan, %v1672_v49  ;;  %v746_v40 = vsel %vm736_vm6, nan, %v745_v41  ;;  %v371_v37 = vadd.s32 %v369_v22, %v363_v38  ;;  %v301_v42 = vshrl.u32 %v6355_v28, %v4635_v46 }
 0x15a   :  { %2272 = vmatpush.msra.mxu1 %v1673_v3  ;;  %4003 = vmatpush.msra.mxu3 %v1673_v3  ;;  %v552_v55 = vor.u32 %v551_v15, %v550_v34  ;;  %v555_v62 = vshll.u32 %v554_v29, 23  ;;  %v373_v12 = vsel %vm372_vm5, 1, %v4076_v4  ;;  %v374_v20 = vadd.s32 %v370_v47, %v366_v25 }
 0x15b   :  { %2433 = vmatpush.msra.mxu0 %v746_v40  ;;  %4009 = vmatpush.msrb.mxu2 %v746_v40  ;;  %v365_v33 = vshrl.u32 %v5400_v59, 16  ;;  %v375_v6 = vadd.s32 %v373_v12, %v371_v37  ;;  %v321_v27 = vsel %vm317_vm1, %v301_v42, %v5342_v14  ;;  %v323_v46 = vsel %vm319_vm11, %v5345_v8, %v322_v61 }
 0x15c   :  { %v556_v57 = vor.u32 4788187, %v555_v62  ;;  %v5442_v28 = vadd.s32 %v374_v20, %v355_v44  ;;  %vm380_vm13 = vc.u32 %v355_v44, %v374_v20  ;;  %v559_v53 = vcvt.s32.f32 %v552_v55 }
 0x15d   :  { %v367_v58 = vshrl.u32 %v5405_v31, 16  ;;  %v376_v48 = vadd.s32 %v375_v6, %v365_v33  ;;  %v324_v59 = vsel %vm318_vm7, %v321_v27, %v323_v46  ;;  %vm441_vm1 = vcmp.lt.s32.totalorder %v4504_v21, 0 }
 0x15e   :  { %v557_v4 = vand.u32 2147483647, %v556_v57  ;;  %v563_v14 = vsub.s32 4, %v5385_v11  ;;  %v378_v8 = vmul.u32 %v5361_v32, %v324_v59  ;;  %vm440_vm11 = vcmp.le.f32.partialorder %v439_v39, 0.7853982 }
 0x15f   :  { %v377_v26 = vadd.s32 %v376_v48, %v367_v58  ;;  %vm582_vm2 = vweird.f32 %v4504_v21  ;;  %vm287_vm8 = vcmp.lt.s32.totalorder %v4525_v36, 0  ;;  %vm286_vm5 = vcmp.le.f32.partialorder %v285_v16, 0.7853982 }
 0x160   :  { %v560_v63 = vmul.f32 %v559_v53, %v557_v4  ;;  %v564_v1 = vsel %vm441_vm1, %v563_v14, %v5385_v11 }
 0x161   :  { %v381_v17 = vadd.s32 1, %v377_v26  ;;  %v566_v50 = vsel %vm440_vm11, 0, %v564_v1 }
 0x162   :  { %v561_v5 = vxor.u32 2147483648, %v560_v63  ;;  %v1508_v25 = vadd.s32 3, %v566_v50  ;;  %v583_v54 = vand.u32 3, %v566_v50  ;;  %v165_v50 = vpop.f32.mrf.mxu1 }
 0x163   :  { %v382_v30 = vsel %vm380_vm13, %v381_v17, %v377_v26  ;;  %v2770_v17 = vld [vmem:[%s6326_s14 + $0xa8] sm:$0xff] }
 0x164   :  { %v562_v13 = vsel %vm441_vm1, %v561_v5, %v560_v63  ;;  %v383_v0 = vadd.s32 %v382_v30, %v378_v8  ;;  %v1509_v34 = vand.u32 3, %v1508_v25  ;;  %vm588_vm4 = vcmp.eq.s32.totalorder %v583_v54, 2 }
 0x165   :  { %v565_v31 = vsel %vm440_vm11, %v4504_v21, %v562_v13  ;;  %vm584_vm9 = vcmp.lt.s32.totalorder %v583_v54, 2  ;;  %vm585_vm12 = vcmp.eq.s32.totalorder %v583_v54, 0  ;;  %v2751_v21 = vld [vmem:[%s6326_s14 + $0x10] sm:$0xff]  ;;  %v2765_v54 = vld [vmem:[%s6326_s14 + $0x80] sm:$0xff] }
 0x166   :  { %v567_v61 = vmul.f32 %v565_v31, %v565_v31  ;;  %v384_v43 = vadd.s32 536870912, %v383_v0  ;;  %vm1514_vm3 = vcmp.eq.s32.totalorder %v1509_v34, 2  ;;  %vm1511_vm6 = vcmp.eq.s32.totalorder %v1509_v34, 0  ;;  %2785 = vperm.xlu1 %4033, %v2751_v21   ;;  %v2168_v21 = vld [vmem:[%s6323_s11 + $0x28] sm:$0xff] }
 0x167   :  { %vm1510_vm14 = vcmp.lt.s32.totalorder %v1509_v34, 2 }
 0x168   :  { %v568_v23 = vmul.f32 -0.001358992, %v567_v61  ;;  %v575_v7 = vmul.f32 -0.00019511016, %v567_v61  ;;  %v5454_v19 = vshrl.u32 %v384_v43, 30 }
 0x16a   :  { %v569_v24 = vadd.f32 0.041655596, %v568_v23  ;;  %v576_v60 = vadd.f32 0.008332121, %v575_v7  ;;  %v386_v32 = vshll.u32 %v5454_v19, 30 }
 0x16b   :  { %v4035_v7 = vld [vmem:[%s6318_s6] ss:$0 sm:$0xff] }
 0x16c   :  { %v570_v38 = vmul.f32 %v569_v24, %v567_v61  ;;  %v577_v39 = vmul.f32 %v576_v60, %v567_v61  ;;  %v387_v35 = vsub.s32 %v383_v0, %v386_v32  ;;  %v166_v32 = vadd.f32 %v4035_v7, %v165_v50  ;;  %v2180_v7 = vld [vmem:[%s6323_s11 + $0x88] sm:$0xff] }
 0x16d   :  { %v2148_v50 = vld [vmem:[%s6322_s10 + $0x48] sm:$0xff] }
 0x16e   :  { %v571_v9 = vadd.f32 -0.4999988, %v570_v38  ;;  %v578_v2 = vadd.f32 -0.16666654, %v577_v39  ;;  %vm388_vm7 = vcmp.lt.s32.totalorder %v387_v35, 0  ;;  %v389_v18 = vsub.s32 0, %v387_v35  ;;  %2880 = vperm.xlu1 %4033, %v2770_v17  }
 0x16f   :  { %v2145_v17 = vld [vmem:[%s6322_s10 + $0x30] sm:$0xff] }
 0x170   :  { %v572_v56 = vmul.f32 %v571_v9, %v567_v61  ;;  %v579_v11 = vmul.f32 %v578_v2, %v567_v61  ;;  %v390_v52 = vsel %vm388_vm7, %v389_v18, %v387_v35  ;;  %v168_v9 = vmax.f32 %v166_v32, 0.0  ;;  %v2161_v32 = vld [vmem:[%s6322_s10 + $0xb0] sm:$0xff] }
 0x171   :  { %v391_v47 = vclz %v390_v52 }
 0x172   :  { %v573_v10 = vadd.f32 1.0, %v572_v56  ;;  %v580_v45 = vadd.f32 1.0, %v579_v11  ;;  %3862 = vmatmul.msk.f32.vlgmr.msra.gmra.mxu2 %vm144_vm10, %v168_v9  ;;  %v2151_v9 = vld [vmem:[%s6322_s10 + $0x60] sm:$0xff] }
 0x173   :  { %v3864_v15 = vadd.s32 4294967294, %v391_v47 }
 0x174   :  { %v581_v49 = vmul.f32 %v580_v45, %v565_v31  ;;  %v589_v41 = vxor.u32 2147483648, %v573_v10 }
 0x175   :  { %vm3865_vm15 = vcmp.lt.s32.totalorder %v3864_v15, 0 }
 0x176   :  { %v586_v29 = vxor.u32 2147483648, %v581_v49  ;;  %v1516_v3 = vsel %vm1514_vm3, %v589_v41, %v581_v49  ;;  %v590_v40 = vsel %vm588_vm4, %v589_v41, %v581_v49  ;;  %v394_v44 = vsel %vm3865_vm15, 0, %v3864_v15  ;;  %v2163_v15 = vld [vmem:[%s6323_s11] sm:$0xff] }
 0x177   :  { %v395_v62 = vsub.s32 32, %v394_v44  ;;  %v399_v12 = vsub.s32 4294967266, %v394_v44  ;;  %v396_v51 = vshll.u32 %v387_v35, %v394_v44  ;;  %vm428_vm15 = vweird.f32 %v4525_v36  ;;  %v2172_v44 = vld [vmem:[%s6323_s11 + $0x48] sm:$0xff] }
 0x178   :  { %v1513_v22 = vsel %vm1511_vm6, %v573_v10, %v586_v29  ;;  %v587_v55 = vsel %vm585_vm12, %v573_v10, %v586_v29  ;;  %v2171_v29 = vld [vmem:[%s6323_s11 + $0x40] sm:$0xff]  ;;  %vm3736_vm6 = vcmask 254976  }
 0x179   :  { %v1517_v37 = vsel %vm1510_vm14, %v1513_v22, %v1516_v3  ;;  %v591_v42 = vsel %vm584_vm9, %v587_v55, %v590_v40  ;;  %v397_v33 = vshrl.u32 %v5442_v28, %v395_v62  ;;  %v400_v6 = vadd.s32 127, %v399_v12  ;;  %v2139_v3 = vld [vmem:[%s6322_s10] sm:$0xff]  ;;  %v2164_v40 = vld [vmem:[%s6323_s11 + $0x8] sm:$0xff]  ;;  %v3225_v55 = vld [vmem:[%s6328_s16 + $0x50] sm:$0xff] }
 0x17a   :  { %v1518_v20 = vsel %vm582_vm2, nan, %v1517_v37  ;;  %v592_v57 = vsel %vm582_vm2, nan, %v591_v42  ;;  %v409_v28 = vsub.s32 4, %v5454_v19  ;;  %v2140_v22 = vld [vmem:[%s6322_s10 + $0x8] sm:$0xff]  ;;  %v2165_v62 = vld [vmem:[%s6323_s11 + $0x10] sm:$0xff]  ;;  %v3222_v12 = vld [vmem:[%s6328_s16 + $0x38] sm:$0xff] }
 0x17b   :  { %2273 = vmatpush.msra.mxu1 %v1518_v20  ;;  %4004 = vmatpush.msra.mxu3 %v1518_v20  ;;  %v398_v27 = vor.u32 %v397_v33, %v396_v51  ;;  %v401_v46 = vshll.u32 %v400_v6, 23  ;;  %v2173_v37 = vld [vmem:[%s6323_s11 + $0x50] sm:$0xff]  ;;  %v2166_v20 = vld [vmem:[%s6323_s11 + $0x18] sm:$0xff]  ;;  %v3219_v6 = vld [vmem:[%s6328_s16 + $0x20] sm:$0xff] }
 0x17c   :  { %2434 = vmatpush.msra.mxu0 %v592_v57  ;;  %4010 = vmatpush.msrb.mxu2 %v592_v57  ;;  %v410_v14 = vsel %vm287_vm8, %v409_v28, %v5454_v19  ;;  %v2768_v19 = vld [vmem:[%s6326_s14 + $0x98] sm:$0xff]  ;;  %v2141_v42 = vld [vmem:[%s6322_s10 + $0x10] sm:$0xff]  ;;  %v2156_v28 = vld [vmem:[%s6322_s10 + $0x88] sm:$0xff] }
 0x17d   :  { %v402_v4 = vor.u32 4788187, %v401_v46  ;;  %v405_v58 = vcvt.s32.f32 %v398_v27  ;;  %v412_v30 = vsel %vm286_vm5, 0, %v410_v14  ;;  %2870 = vperm.xlu1 %4033, %v2768_v19   ;;  %v2174_v57 = vld [vmem:[%s6323_s11 + $0x58] sm:$0xff]  ;;  %v2167_v27 = vld [vmem:[%s6323_s11 + $0x20] sm:$0xff]  ;;  %v2157_v14 = vld [vmem:[%s6322_s10 + $0x90] sm:$0xff] }
 0x17e   :  { %v1353_v43 = vadd.s32 3, %v412_v30  ;;  %v429_v39 = vand.u32 3, %v412_v30  ;;  %v2142_v51 = vld [vmem:[%s6322_s10 + $0x18] sm:$0xff]  ;;  %v2175_v46 = vld [vmem:[%s6323_s11 + $0x60] sm:$0xff]  ;;  %v2160_v19 = vld [vmem:[%s6322_s10 + $0xa8] sm:$0xff] }
 0x17f   :  { %v403_v53 = vand.u32 2147483647, %v402_v4  ;;  %v2154_v33 = vld [vmem:[%s6322_s10 + $0x78] sm:$0xff]  ;;  %v2143_v4 = vld [vmem:[%s6322_s10 + $0x20] sm:$0xff] }
 0x180   :  { %v1354_v38 = vand.u32 3, %v1353_v43  ;;  %vm434_vm1 = vcmp.eq.s32.totalorder %v429_v39, 2  ;;  %vm431_vm7 = vcmp.eq.s32.totalorder %v429_v39, 0  ;;  %vm430_vm4 = vcmp.lt.s32.totalorder %v429_v39, 2  ;;  %v2178_v30 = vld [vmem:[%s6323_s11 + $0x78] sm:$0xff]  ;;  %v2147_v43 = vld [vmem:[%s6322_s10 + $0x40] sm:$0xff] }
 0x181   :  { %v406_v48 = vmul.f32 %v405_v58, %v403_v53  ;;  %v2155_v53 = vld [vmem:[%s6322_s10 + $0x80] sm:$0xff]  ;;  %v3217_v58 = vld [vmem:[%s6328_s16 + $0x10] sm:$0xff]  ;;  %v2150_v39 = vld [vmem:[%s6322_s10 + $0x58] sm:$0xff] }
 0x182   :  { %vm1359_vm13 = vcmp.eq.s32.totalorder %v1354_v38, 2  ;;  %vm1356_vm11 = vcmp.eq.s32.totalorder %v1354_v38, 0  ;;  %vm1355_vm3 = vcmp.lt.s32.totalorder %v1354_v38, 2  ;;  %v2182_v38 = vld [vmem:[%s6323_s11 + $0x98] sm:$0xff] }
 0x183   :  { %v407_v63 = vxor.u32 2147483648, %v406_v48 }
 0x185   :  { %v408_v59 = vsel %vm287_vm8, %v407_v63, %v406_v48  ;;  %2855 = vperm.xlu1 %4033, %v2765_v54   ;;  %v2176_v48 = vld [vmem:[%s6323_s11 + $0x68] sm:$0xff]  ;;  %v4036_v54 = vld [vmem:[%s6320_s8] ss:$0 sm:$0xff] }
 0x186   :  { %v411_v26 = vsel %vm286_vm5, %v4525_v36, %v408_v59  ;;  %v3228_v36 = vld [vmem:[%s6328_s16 + $0x68] sm:$0xff] }
 0x187   :  { %v413_v5 = vmul.f32 %v411_v26, %v411_v26  ;;  %v2144_v63 = vld [vmem:[%s6322_s10 + $0x28] sm:$0xff] }
 0x188   :  { %v3236_v59 = vld [vmem:[%s6328_s16 + $0xa8] sm:$0xff] }
 0x189   :  { %v414_v8 = vmul.f32 -0.001358992, %v413_v5  ;;  %v421_v13 = vmul.f32 -0.00019511016, %v413_v5 }
 0x18b   :  { %v415_v31 = vadd.f32 0.041655596, %v414_v8  ;;  %v422_v0 = vadd.f32 0.008332121, %v421_v13  ;;  %v3234_v8 = vld [vmem:[%s6328_s16 + $0x98] sm:$0xff] }
 0x18c   :  { %v2170_v13 = vld [vmem:[%s6323_s11 + $0x38] sm:$0xff] }
 0x18d   :  { %v416_v61 = vmul.f32 %v415_v31, %v413_v5  ;;  %v423_v1 = vmul.f32 %v422_v0, %v413_v5  ;;  %3306 = vperm.xlu1 %4033, %v3228_v36   ;;  %v2146_v31 = vld [vmem:[%s6322_s10 + $0x38] sm:$0xff] }
 0x18e   :  { %v2158_v0 = vld [vmem:[%s6322_s10 + $0x98] sm:$0xff] }
 0x18f   :  { %v417_v16 = vadd.f32 -0.4999988, %v416_v61  ;;  %v424_v23 = vadd.f32 -0.16666654, %v423_v1  ;;  %v3231_v61 = vld [vmem:[%s6328_s16 + $0x80] sm:$0xff] }
 0x190   :  { %v2179_v1 = vld [vmem:[%s6323_s11 + $0x80] sm:$0xff] }
 0x191   :  { %v418_v24 = vmul.f32 %v417_v16, %v413_v5  ;;  %v425_v60 = vmul.f32 %v424_v23, %v413_v5  ;;  %v2177_v5 = vld [vmem:[%s6323_s11 + $0x70] sm:$0xff]  ;;  %v2159_v16 = vld [vmem:[%s6322_s10 + $0xa0] sm:$0xff] }
 0x192   :  { %v3643_v23 = vld [vmem:[%s6330_s18 + $0x10] sm:$0xff] }
 0x193   :  { %v419_v25 = vadd.f32 1.0, %v418_v24  ;;  %v426_v35 = vadd.f32 1.0, %v425_v60  ;;  %v2181_v24 = vld [vmem:[%s6323_s11 + $0x90] sm:$0xff] }
 0x194   :  { %v2149_v60 = vld [vmem:[%s6322_s10 + $0x50] sm:$0xff] }
 0x195   :  { %v427_v2 = vmul.f32 %v426_v35, %v411_v26  ;;  %v435_v18 = vxor.u32 2147483648, %v419_v25  ;;  %3291 = vperm.xlu1 %4033, %v3225_v55   ;;  %v2169_v26 = vld [vmem:[%s6323_s11 + $0x30] sm:$0xff]  ;;  %v2183_v35 = vld [vmem:[%s6323_s11 + $0xa0] sm:$0xff] }
 0x197   :  { %v432_v56 = vxor.u32 2147483648, %v427_v2  ;;  %v1361_v11 = vsel %vm1359_vm13, %v435_v18, %v427_v2  ;;  %v436_v34 = vsel %vm434_vm1, %v435_v18, %v427_v2  ;;  %v2184_v2 = vld [vmem:[%s6323_s11 + $0xa8] sm:$0xff] }
 0x198   :  { %v2152_v18 = vld [vmem:[%s6322_s10 + $0x68] sm:$0xff] }
 0x199   :  { %v1358_v52 = vsel %vm1356_vm11, %v419_v25, %v432_v56  ;;  %v433_v10 = vsel %vm431_vm7, %v419_v25, %v432_v56  ;;  %v2162_v25 = vld [vmem:[%s6322_s10 + $0xb8] sm:$0xff]  ;;  %v2185_v56 = vld [vmem:[%s6323_s11 + $0xb0] sm:$0xff] }
 0x19a   :  { %v1362_v45 = vsel %vm1355_vm3, %v1358_v52, %v1361_v11  ;;  %v437_v47 = vsel %vm430_vm4, %v433_v10, %v436_v34  ;;  %v2153_v11 = vld [vmem:[%s6322_s10 + $0x70] sm:$0xff]  ;;  %v2186_v34 = vld [vmem:[%s6323_s11 + $0xb8] sm:$0xff]  ;;  %vm3817_vm3 = vcmask 261120  }
 0x19b   :  { %v1363_v49 = vsel %vm428_vm15, nan, %v1362_v45  ;;  %v438_v41 = vsel %vm428_vm15, nan, %v437_v47 }
 0x19c   :  { %2274 = vmatpush.msra.mxu1 %v1363_v49  ;;  %4005 = vmatpush.msra.mxu3 %v1363_v49 }
 0x19d   :  { %2435 = vmatpush.msra.mxu0 %v438_v41  ;;  %4011 = vmatpush.msrb.mxu2 %v438_v41 }
 0x19e   :  { %3899 = vmatmul.msk.f32.vlgmr.msra.gmra.mxu1 %vm68_vm0, %v2163_v15  ;;  %3907 = vmatmul.msk.f32.vlgmr.msra.gmra.mxu3 %vm68_vm0, %v2171_v29 }
 0x19f   :  { %3923 = vmatmul.msk.f32.vlgmr.msra.gmra.mxu0 %vm68_vm0, %v2139_v3  ;;  %3276 = vperm.xlu1 %4033, %v3222_v12  }
 0x1a0   :  { %3938 = vmatmul.msk.f32.vlgmr.msrb.gmra.mxu2 %vm68_vm0, %v2154_v33 }
 0x1a6   :  { %3900 = vmatmul.msk.f32.gmra.mxu1 %vm68_vm0, %v2164_v40  ;;  %3908 = vmatmul.msk.f32.gmra.mxu3 %vm68_vm0, %v2172_v44 }
 0x1a7   :  { %3924 = vmatmul.msk.f32.gmra.mxu0 %vm68_vm0, %v2140_v22  ;;  %3261 = vperm.xlu1 %4033, %v3219_v6  }
 0x1a8   :  { %3939 = vmatmul.msk.f32.gmra.mxu2 %vm68_vm0, %v2155_v53 }
 0x1ae   :  { %3901 = vmatmul.msk.f32.gmra.mxu1 %vm68_vm0, %v2165_v62  ;;  %3909 = vmatmul.msk.f32.gmra.mxu3 %vm68_vm0, %v2173_v37 }
 0x1af   :  { %3925 = vmatmul.msk.f32.gmra.mxu0 %vm68_vm0, %v2141_v42  ;;  %3251 = vperm.xlu1 %4033, %v3217_v58  }
 0x1b0   :  { %3940 = vmatmul.msk.f32.gmra.mxu2 %vm68_vm0, %v2156_v28  ;;  %v2601_v28 = vpop.permute.xlu1 %2600 }
 0x1b6   :  { %3902 = vmatmul.msk.f32.gmra.mxu1 %vm68_vm0, %v2166_v20  ;;  %3910 = vmatmul.msk.f32.gmra.mxu3 %vm68_vm0, %v2174_v57 }
 0x1b7   :  { %3926 = vmatmul.msk.f32.gmra.mxu0 %vm68_vm0, %v2142_v51  ;;  %3346 = vperm.xlu1 %4033, %v3236_v59  }
 0x1b8   :  { %3941 = vmatmul.msk.f32.gmra.mxu2 %vm68_vm0, %v2157_v14 }
 0x1be   :  { %3903 = vmatmul.msk.f32.gmra.mxu1 %vm68_vm0, %v2167_v27  ;;  %3911 = vmatmul.msk.f32.gmra.mxu3 %vm68_vm0, %v2175_v46 }
 0x1bf   :  { %3927 = vmatmul.msk.f32.gmra.mxu0 %vm68_vm0, %v2143_v4  ;;  %3336 = vperm.xlu1 %4033, %v3234_v8   ;;  %v2611_v4 = vpop.permute.xlu2 %2610 }
 0x1c0   :  { %3942 = vmatmul.msk.f32.gmra.mxu2 %vm68_vm0, %v2158_v0 }
 0x1c6   :  { %3904 = vmatmul.msk.f32.gmra.mxu1 %vm68_vm0, %v2168_v21  ;;  %3912 = vmatmul.msk.f32.gmra.mxu3 %vm68_vm0, %v2176_v48 }
 0x1c7   :  { %3928 = vmatmul.msk.f32.gmra.mxu0 %vm68_vm0, %v2144_v63  ;;  %3321 = vperm.xlu1 %4033, %v3231_v61   ;;  %v2606_v63 = vpop.permute.xlu0 %2605 }
 0x1c8   :  { %3943 = vmatmul.msk.f32.gmra.mxu2 %vm68_vm0, %v2159_v16 }
 0x1ce   :  { %3905 = vmatmul.msk.f32.gmra.mxu1 %vm68_vm0, %v2169_v26  ;;  %3913 = vmatmul.msk.f32.gmra.mxu3 %vm68_vm0, %v2177_v5 }
 0x1cf   :  { %3929 = vmatmul.msk.f32.gmra.mxu0 %vm68_vm0, %v2145_v17  ;;  %3657 = vperm.xlu1 %4033, %v3643_v23   ;;  %v2591_v8 = vpop.permute.xlu0 %2590 }
 0x1d0   :  { %3944 = vmatmul.msk.f32.gmra.mxu2 %vm68_vm0, %v2160_v19 }
 0x1d6   :  { %3906 = vmatmul.msk.f32.gmra.mxu1 %vm68_vm0, %v2170_v13  ;;  %3914 = vmatmul.msk.f32.gmra.mxu3 %vm68_vm0, %v2178_v30  ;;  %v2596_v13 = vpop.permute.xlu2 %2595  ;;  %v2586_v30 = vpop.permute.xlu1 %2585 }
 0x1d7   :  { %3930 = vmatmul.msk.f32.gmra.mxu0 %vm68_vm0, %v2146_v31 }
 0x1d8   :  { %3945 = vmatmul.msk.f32.gmra.mxu2 %vm68_vm0, %v2161_v32 }
 0x1de   :  { %3915 = vmatmul.msk.f32.gmra.mxu3 %vm68_vm0, %v2179_v1  ;;  %v2581_v23 = vpop.permute.xlu2 %2580 }
 0x1df   :  { %3931 = vmatmul.msk.f32.gmra.mxu0 %vm68_vm0, %v2147_v43  ;;  %v5752_v43 = vpop.permute.xlu0 %2650 }
 0x1e0   :  { %3946 = vmatmul.msk.f32.gmra.mxu2 %vm68_vm0, %v2162_v25 }
 0x1e6   :  { %3916 = vmatmul.msk.f32.gmra.mxu3 %vm68_vm0, %v2180_v7  ;;  %v2576_v7 = vpop.permute.xlu1 %2575 }
 0x1e7   :  { %3932 = vmatmul.msk.f32.gmra.mxu0 %vm68_vm0, %v2148_v50  ;;  %v2571_v32 = vpop.permute.xlu0 %2570 }
 0x1ee   :  { %3917 = vmatmul.msk.f32.gmra.mxu3 %vm68_vm0, %v2181_v24 }
 0x1ef   :  { %3933 = vmatmul.msk.f32.gmra.mxu0 %vm68_vm0, %v2149_v60 }
 0x1f5   :  { %v201_v52 = vpop.f32.mrf.mxu2 }
 0x1f6   :  { %3918 = vmatmul.msk.f32.gmra.mxu3 %vm68_vm0, %v2182_v38  ;;  %v5704_v10 = vadd.f32 %v4036_v54, %v201_v52  ;;  %v2646_v38 = vpop.permute.xlu2 %2645 }
 0x1f7   :  { %3934 = vmatmul.msk.f32.gmra.mxu0 %vm68_vm0, %v2150_v39  ;;  %v2641_v39 = vpop.permute.xlu1 %2640 }
 0x1f8   :  { %6363 = vst [vmem:[#allocation6_spill] sm:$0xff] %v5704_v10  ;;  %v3735_v47 = vmul.f32 %v5704_v10, %v5704_v10 }
 0x1fa   :  { %v3737_v49 = vsel %vm3736_vm6, %v3735_v47, 0.0 }
 0x1fb   :  { %3738 = vadd.xlane.f32.xlu0 %v3737_v49 }
 0x1fe   :  { %3919 = vmatmul.msk.f32.gmra.mxu3 %vm68_vm0, %v2183_v35 }
 0x1ff   :  { %3935 = vmatmul.msk.f32.gmra.mxu0 %vm68_vm0, %v2151_v9 }
 0x206   :  { %3920 = vmatmul.msk.f32.gmra.mxu3 %vm68_vm0, %v2184_v2 }
 0x207   :  { %3936 = vmatmul.msk.f32.gmra.mxu0 %vm68_vm0, %v2152_v18  ;;  %v5756_v18 = vpop.permute.xlu0 %2635 }
 0x20e   :  { %3921 = vmatmul.msk.f32.gmra.mxu3 %vm68_vm0, %v2185_v56  ;;  %v2566_v56 = vpop.permute.xlu2 %2565 }
 0x20f   :  { %3937 = vmatmul.msk.f32.gmra.mxu0 %vm68_vm0, %v2153_v11 }
 0x216   :  { %3922 = vmatmul.msk.f32.gmra.mxu3 %vm68_vm0, %v2186_v34  ;;  %v2561_v34 = vpop.permute.xlu1 %2560 }
 0x21b   :  { %v5728_v20 = vpop.f32.mrf.mxu1 }
 0x21c   :  { %v5706_v45 = vpop.f32.mrf.mxu0  ;;  %6366 = vst [vmem:[#allocation9_spill] sm:$0xff] %v5728_v20 }
 0x21d   :  { %6364 = vst [vmem:[#allocation7_spill] sm:$0xff] %v5706_v45 }
 0x221   :  { %v5710_v41 = vpop.f32.mrf.mxu3 }
 0x223   :  { %v2482_v37 = vpop.f32.mrf.mxu2  ;;  %v5734_v6 = vpop.f32.mrf.mxu1 }
 0x224   :  { %v5712_v15 = vpop.f32.mrf.mxu0  ;;  %6368 = vst [vmem:[#allocation11_spill] sm:$0xff] %v5734_v6 }
 0x225   :  { %6365 = vst [vmem:[#allocation8_spill] sm:$0xff] %v5712_v15 }
 0x229   :  { %v5714_v29 = vpop.f32.mrf.mxu3 }
 0x22b   :  { %v5730_v51 = vpop.f32.mrf.mxu2  ;;  %v5740_v26 = vpop.f32.mrf.mxu1 }
 0x22c   :  { %v5716_v3 = vpop.f32.mrf.mxu0  ;;  %6367 = vst [vmem:[#allocation10_spill] sm:$0xff] %v5730_v51  ;;  %v2556_v51 = vpop.permute.xlu0 %2555 }
 0x231   :  { %v5718_v36 = vpop.f32.mrf.mxu3 }
 0x233   :  { %v5736_v53 = vpop.f32.mrf.mxu2  ;;  %v5746_v31 = vpop.f32.mrf.mxu1 }
 0x234   :  { %v5720_v40 = vpop.f32.mrf.mxu0  ;;  %6369 = vst [vmem:[#allocation12_spill] sm:$0xff] %v5736_v53 }
 0x239   :  { %v2309_v44 = vpop.f32.mrf.mxu3 }
 0x23b   :  { %v5742_v17 = vpop.f32.mrf.mxu2  ;;  %v2288_v50 = vpop.f32.mrf.mxu1 }
 0x23c   :  { %v5722_v22 = vpop.f32.mrf.mxu0 }
 0x241   :  { %v2312_v55 = vpop.f32.mrf.mxu3 }
 0x243   :  { %v5748_v61 = vpop.f32.mrf.mxu2  ;;  %v2291_v25 = vpop.f32.mrf.mxu1 }
 0x244   :  { %v5724_v62 = vpop.f32.mrf.mxu0 }
 0x249   :  { %v2315_v42 = vpop.f32.mrf.mxu3 }
 0x24b   :  { %v2497_v24 = vpop.f32.mrf.mxu2  ;;  %v2294_v54 = vpop.f32.mrf.mxu1 }
 0x24c   :  { %v5726_v12 = vpop.f32.mrf.mxu0 }
 0x251   :  { %v2318_v57 = vpop.f32.mrf.mxu3 }
 0x253   :  { %v2500_v9 = vpop.f32.mrf.mxu2 }
 0x254   :  { %v5732_v33 = vpop.f32.mrf.mxu0 }
 0x259   :  { %v2321_v27 = vpop.f32.mrf.mxu3 }
 0x25a   :  { %v2483_v46 = vadd.f32 %v2482_v37, %v2321_v27 }
 0x25b   :  { %v2503_v27 = vpop.f32.mrf.mxu2 }
 0x25c   :  { %v2668_v58 = vadd.f32 %v2611_v4, %v2483_v46  ;;  %v2461_v21 = vpop.f32.mrf.mxu0 }
 0x25e   :  { %v2692_v48 = vmax.f32 %v2668_v58, 0.0 }
 0x260   :  { %2965 = vmatpush.msrb.mxu1 %v2692_v48 }
 0x261   :  { %v5738_v59 = vpop.f32.mrf.mxu3 }
 0x262   :  { %6370 = vst [vmem:[#allocation13_spill] sm:$0xff] %v5738_v59  ;;  %v2631_v59 = vpop.permute.xlu2 %2630 }
 0x264   :  { %v2464_v5 = vpop.f32.mrf.mxu0 }
 0x265   :  { %v2465_v15 = vadd.f32 %v2464_v5, %v5714_v29 }
 0x269   :  { %v5744_v14 = vpop.f32.mrf.mxu3 }
 0x26c   :  { %v2467_v0 = vpop.f32.mrf.mxu0 }
 0x26d   :  { %v2468_v48 = vadd.f32 %v2467_v0, %v5718_v36  ;;  %v2662_v36 = vadd.f32 %v2581_v23, %v2465_v15 }
 0x271   :  { %v5750_v1 = vpop.f32.mrf.mxu3 }
 0x274   :  { %v2470_v16 = vpop.f32.mrf.mxu0 }
 0x275   :  { %v2471_v46 = vadd.f32 %v2470_v16, %v2309_v44  ;;  %v2456_v16 = vadd.f32 %v5726_v12, %v2294_v54 }
 0x277   :  { %v2664_v6 = vadd.f32 %v2591_v8, %v2471_v46  ;;  %v2659_v12 = vadd.f32 %v2566_v56, %v2456_v16  ;;  %v6372_v56 = vld [vmem:[#allocation11_spill] sm:$0xff] }
 0x279   :  { %v5754_v19 = vpop.f32.mrf.mxu3 }
 0x27c   :  { %v2473_v60 = vpop.f32.mrf.mxu0 }
 0x27d   :  { %v2474_v49 = vadd.f32 %v2473_v60, %v2312_v55  ;;  %v2462_v55 = vadd.f32 %v2461_v21, %v5710_v41  ;;  %v2453_v41 = vadd.f32 %v5724_v62, %v2291_v25 }
 0x27f   :  { %v2665_v10 = vadd.f32 %v2596_v13, %v2474_v49  ;;  %v2506_v13 = vpop.f32.mrf.mxu2  ;;  %v2661_v29 = vadd.f32 %v2576_v7, %v2462_v55  ;;  %v2658_v25 = vadd.f32 %v2561_v34, %v2453_v41  ;;  %v6373_v34 = vld [vmem:[#allocation8_spill] sm:$0xff] }
 0x280   :  { %v2441_v54 = vadd.f32 %v6373_v34, %v6372_v56  ;;  %v2708_v41 = vld [vmem:[%s6325_s13 + $0x38] sm:$0xff]  ;;  %v2733_v56 = vld [vmem:[%s6325_s13 + $0x100] sm:$0xff] }
 0x281   :  { %v2336_v35 = vpop.f32.mrf.mxu3  ;;  %v2689_v44 = vmax.f32 %v2665_v10, 0.0  ;;  %v2686_v10 = vmax.f32 %v2662_v36, 0.0  ;;  %v2685_v23 = vmax.f32 %v2661_v29, 0.0  ;;  %v2701_v29 = vld [vmem:[%s6325_s13] sm:$0xff] }
 0x284   :  { %v2476_v2 = vpop.f32.mrf.mxu0 }
 0x285   :  { %v2477_v52 = vadd.f32 %v2476_v2, %v2315_v42  ;;  %v2626_v42 = vpop.permute.xlu1 %2625  ;;  %v2297_v2 = vpop.f32.mrf.mxu1 }
 0x287   :  { %v2666_v4 = vadd.f32 %v2601_v28, %v2477_v52  ;;  %v2688_v28 = vmax.f32 %v2664_v6, 0.0  ;;  %v6375_v52 = vld [vmem:[#allocation10_spill] sm:$0xff] }
 0x289   :  { %v2339_v11 = vpop.f32.mrf.mxu3  ;;  %v2690_v53 = vmax.f32 %v2666_v4, 0.0 }
 0x28a   :  { %v2501_v8 = vadd.f32 %v2500_v9, %v2339_v11  ;;  %v2495_v9 = vadd.f32 %v5748_v61, %v5754_v19  ;;  %v2683_v61 = vmax.f32 %v2659_v12, 0.0  ;;  %v6371_v19 = vld [vmem:[#allocation12_spill] sm:$0xff] }
 0x28b   :  { %v2715_v12 = vld [vmem:[%s6325_s13 + $0x70] sm:$0xff] }
 0x28c   :  { %v2479_v47 = vpop.f32.mrf.mxu0  ;;  %v2674_v11 = vadd.f32 %v2641_v39, %v2501_v8  ;;  %v2489_v39 = vadd.f32 %v6371_v19, %v5744_v14  ;;  %v2706_v8 = vld [vmem:[%s6325_s13 + $0x28] sm:$0xff]  ;;  %v2732_v19 = vld [vmem:[%s6325_s13 + $0xf8] sm:$0xff] }
 0x28d   :  { %v2480_v37 = vadd.f32 %v2479_v47, %v2318_v57  ;;  %v2663_v57 = vadd.f32 %v2586_v30, %v2468_v48  ;;  %v2551_v30 = vpop.permute.xlu2 %2550  ;;  %v2546_v7 = vpop.permute.xlu1 %2545 }
 0x28f   :  { %v2667_v58 = vadd.f32 %v2606_v63, %v2480_v37  ;;  %v2459_v63 = vadd.f32 %v5732_v33, %v2297_v2  ;;  %v2687_v5 = vmax.f32 %v2663_v57, 0.0  ;;  %v2498_v33 = vadd.f32 %v2497_v24, %v2336_v35 }
 0x291   :  { %v2342_v45 = vpop.f32.mrf.mxu3  ;;  %v2691_v20 = vmax.f32 %v2667_v58, 0.0  ;;  %v2660_v21 = vadd.f32 %v2571_v32, %v2459_v63  ;;  %v2447_v32 = vadd.f32 %v5720_v40, %v5746_v31  ;;  %v2672_v40 = vadd.f32 %v2631_v59, %v2495_v9  ;;  %v2720_v9 = vld [vmem:[%s6325_s13 + $0x98] sm:$0xff] }
 0x292   :  { %v2504_v0 = vadd.f32 %v2503_v27, %v2342_v45  ;;  %v2450_v45 = vadd.f32 %v5722_v22, %v2288_v50  ;;  %v2673_v22 = vadd.f32 %v5756_v18, %v2498_v33  ;;  %v2698_v31 = vmax.f32 %v2674_v11, 0.0  ;;  %v6374_v18 = vld [vmem:[#allocation13_spill] sm:$0xff]  ;;  %v2719_v11 = vld [vmem:[%s6325_s13 + $0x90] sm:$0xff] }
 0x293   :  { %2966 = vmatpush.msrb.mxu1 %v2691_v20  ;;  %v2684_v24 = vmax.f32 %v2660_v21, 0.0  ;;  %v2486_v47 = vadd.f32 %v6375_v52, %v6374_v18  ;;  %v2696_v4 = vmax.f32 %v2672_v40, 0.0  ;;  %v2707_v21 = vld [vmem:[%s6325_s13 + $0x30] sm:$0xff]  ;;  %v2712_v33 = vld [vmem:[%s6325_s13 + $0x58] sm:$0xff]  ;;  %v2734_v40 = vld [vmem:[%s6325_s13 + $0x108] sm:$0xff] }
 0x294   :  { %v2675_v15 = vadd.f32 %v2646_v38, %v2504_v0  ;;  %v2444_v38 = vadd.f32 %v5716_v3, %v5740_v26  ;;  %v2657_v35 = vadd.f32 %v2556_v51, %v2450_v45  ;;  %v2697_v3 = vmax.f32 %v2673_v22, 0.0  ;;  %v6376_v51 = vld [vmem:[#allocation9_spill] sm:$0xff]  ;;  %v6377_v26 = vld [vmem:[#allocation7_spill] sm:$0xff] }
 0x295   :  { %2967 = vmatpush.msrb.mxu1 %v2690_v53  ;;  %v2621_v53 = vpop.permute.xlu0 %2620  ;;  %v2438_v37 = vadd.f32 %v6377_v26, %v6376_v51  ;;  %v2616_v58 = vpop.permute.xlu2 %2615  ;;  %v2702_v0 = vld [vmem:[%s6325_s13 + $0x8] sm:$0xff]  ;;  %v2716_v45 = vld [vmem:[%s6325_s13 + $0x78] sm:$0xff]  ;;  %v2725_v22 = vld [vmem:[%s6325_s13 + $0xc0] sm:$0xff] }
 0x296   :  { %v2699_v50 = vmax.f32 %v2675_v15, 0.0  ;;  %v2655_v27 = vadd.f32 %v2546_v7, %v2444_v38  ;;  %v2681_v59 = vmax.f32 %v2657_v35, 0.0  ;;  %v2670_v46 = vadd.f32 %v2621_v53, %v2489_v39  ;;  %v2536_v55 = vpop.permute.xlu1 %2535  ;;  %v2709_v53 = vld [vmem:[%s6325_s13 + $0x40] sm:$0xff]  ;;  %v2711_v15 = vld [vmem:[%s6325_s13 + $0x50] sm:$0xff]  ;;  %v2730_v35 = vld [vmem:[%s6325_s13 + $0xe8] sm:$0xff] }
 0x297   :  { %2968 = vmatpush.msrb.mxu1 %v2689_v44  ;;  %v2669_v57 = vadd.f32 %v2616_v58, %v2486_v47  ;;  %v2653_v44 = vadd.f32 %v2536_v55, %v2438_v37  ;;  %v2717_v7 = vld [vmem:[%s6325_s13 + $0x80] sm:$0xff]  ;;  %v2727_v38 = vld [vmem:[%s6325_s13 + $0xd0] sm:$0xff]  ;;  %v2738_v47 = vld [vmem:[%s6325_s13 + $0x128] sm:$0xff] }
 0x298   :  { %v2679_v63 = vmax.f32 %v2655_v27, 0.0  ;;  %v2694_v36 = vmax.f32 %v2670_v46, 0.0  ;;  %v2731_v39 = vld [vmem:[%s6325_s13 + $0xf0] sm:$0xff]  ;;  %v2740_v27 = vld [vmem:[%s6325_s13 + $0x138] sm:$0xff]  ;;  %v2742_v58 = vld [vmem:[%s6325_s13 + $0x148] sm:$0xff] }
 0x299   :  { %2969 = vmatpush.msrb.mxu1 %v2688_v28  ;;  %v2345_v20 = vpop.f32.mrf.mxu3  ;;  %v2677_v16 = vmax.f32 %v2653_v44, 0.0  ;;  %v2744_v44 = vld [vmem:[%s6325_s13 + $0x158] sm:$0xff] }
 0x29a   :  { %v2507_v60 = vadd.f32 %v2506_v13, %v2345_v20  ;;  %v2693_v13 = vmax.f32 %v2669_v57, 0.0  ;;  %v2704_v20 = vld [vmem:[%s6325_s13 + $0x18] sm:$0xff] }
 0x29b   :  { %2970 = vmatpush.msrb.mxu1 %v2687_v5  ;;  %v2703_v5 = vld [vmem:[%s6325_s13 + $0x10] sm:$0xff] }
 0x29c   :  { %v2676_v6 = vadd.f32 %v5752_v43, %v2507_v60  ;;  %v2492_v43 = vadd.f32 %v5742_v17, %v5750_v1  ;;  %v2656_v17 = vadd.f32 %v2551_v30, %v2447_v32  ;;  %v2682_v1 = vmax.f32 %v2658_v25, 0.0  ;;  %v2705_v60 = vld [vmem:[%s6325_s13 + $0x20] sm:$0xff]  ;;  %v2724_v25 = vld [vmem:[%s6325_s13 + $0xb8] sm:$0xff] }
 0x29d   :  { %2971 = vmatpush.msrb.mxu1 %v2686_v10  ;;  %v2541_v14 = vpop.permute.xlu0 %2540  ;;  %v2710_v10 = vld [vmem:[%s6325_s13 + $0x48] sm:$0xff]  ;;  %v2713_v30 = vld [vmem:[%s6325_s13 + $0x60] sm:$0xff]  ;;  %v5928_v51 = vpop.permute.xlu2 %2850 }
 0x29e   :  { %v2700_v62 = vmax.f32 %v2676_v6, 0.0  ;;  %v2671_v49 = vadd.f32 %v2626_v42, %v2492_v43  ;;  %v2654_v48 = vadd.f32 %v2541_v14, %v2441_v54  ;;  %v2680_v2 = vmax.f32 %v2656_v17, 0.0  ;;  %v2714_v6 = vld [vmem:[%s6325_s13 + $0x68] sm:$0xff]  ;;  %v2721_v32 = vld [vmem:[%s6325_s13 + $0xa0] sm:$0xff]  ;;  %v2736_v54 = vld [vmem:[%s6325_s13 + $0x118] sm:$0xff] }
 0x29f   :  { %2972 = vmatpush.msrb.mxu1 %v2685_v23  ;;  %v2718_v23 = vld [vmem:[%s6325_s13 + $0x88] sm:$0xff]  ;;  %v2739_v14 = vld [vmem:[%s6325_s13 + $0x130] sm:$0xff] }
 0x2a0   :  { %3062 = vmatpush.msra.mxu2 %v2700_v62  ;;  %v2695_v42 = vmax.f32 %v2671_v49, 0.0  ;;  %v2678_v28 = vmax.f32 %v2654_v48, 0.0  ;;  %v2722_v62 = vld [vmem:[%s6325_s13 + $0xa8] sm:$0xff] }
 0x2a1   :  { %2973 = vmatpush.msrb.mxu1 %v2684_v24  ;;  %v2723_v24 = vld [vmem:[%s6325_s13 + $0xb0] sm:$0xff]  ;;  %v2726_v43 = vld [vmem:[%s6325_s13 + $0xc8] sm:$0xff] }
 0x2a2   :  { %3063 = vmatpush.msra.mxu2 %v2699_v50  ;;  %v2728_v50 = vld [vmem:[%s6325_s13 + $0xd8] sm:$0xff] }
 0x2a3   :  { %2974 = vmatpush.msrb.mxu1 %v2683_v61  ;;  %v2729_v61 = vld [vmem:[%s6325_s13 + $0xe0] sm:$0xff] }
 0x2a4   :  { %3064 = vmatpush.msra.mxu2 %v2698_v31 }
 0x2a5   :  { %2975 = vmatpush.msrb.mxu1 %v2682_v1  ;;  %v2735_v1 = vld [vmem:[%s6325_s13 + $0x110] sm:$0xff]  ;;  %v5915_v18 = vpop.permute.xlu0 %2845 }
 0x2a6   :  { %3065 = vmatpush.msra.mxu2 %v2697_v3  ;;  %v2737_v3 = vld [vmem:[%s6325_s13 + $0x120] sm:$0xff] }
 0x2a7   :  { %2976 = vmatpush.msrb.mxu1 %v2681_v59 }
 0x2a8   :  { %3066 = vmatpush.msra.mxu2 %v2696_v4  ;;  %v5945_v4 = vpop.permute.xlu2 %2835 }
 0x2a9   :  { %2977 = vmatpush.msrb.mxu1 %v2680_v2  ;;  %v2741_v2 = vld [vmem:[%s6325_s13 + $0x140] sm:$0xff] }
 0x2aa   :  { %3067 = vmatpush.msra.mxu2 %v2695_v42  ;;  %v2841_v42 = vpop.permute.xlu1 %2840 }
 0x2ab   :  { %2978 = vmatpush.msrb.mxu1 %v2679_v63 }
 0x2ac   :  { %3068 = vmatpush.msra.mxu2 %v2694_v36  ;;  %v2743_v36 = vld [vmem:[%s6325_s13 + $0x150] sm:$0xff] }
 0x2ad   :  { %2979 = vmatpush.msrb.mxu1 %v2678_v28  ;;  %v5932_v37 = vpop.permute.xlu0 %2830 }
 0x2ae   :  { %3069 = vmatpush.msra.mxu2 %v2693_v13 }
 0x2af   :  { %2980 = vmatpush.msrb.mxu1 %v2677_v16  ;;  %3947 = vmatmul.msk.f32.vlgmr.msra.gmra.mxu2 %vm144_vm10, %v2702_v0 }
 0x2b0   :  { %2981 = vmatmul.f32.vlgmr.msrb.gmra.mxu1 %v2701_v29  ;;  %v5964_v28 = vpop.permute.xlu2 %2820 }
 0x2b5   :  { %v2816_v55 = vpop.permute.xlu0 %2815 }
 0x2b7   :  { %3948 = vmatmul.msk.f32.gmra.mxu2 %vm144_vm10, %v2704_v20  ;;  %v2746_v20 = vld [vmem:[%s6325_s13 + $0x168] sm:$0xff] }
 0x2b8   :  { %2984 = vmatmul.f32.gmra.mxu1 %v2703_v5 }
 0x2bd   :  { %v2801_v13 = vpop.permute.xlu0 %2800 }
 0x2bf   :  { %3949 = vmatmul.msk.f32.gmra.mxu2 %vm144_vm10, %v2706_v8  ;;  %v2745_v8 = vld [vmem:[%s6325_s13 + $0x160] sm:$0xff] }
 0x2c0   :  { %2987 = vmatmul.f32.gmra.mxu1 %v2705_v60  ;;  %v2826_v60 = vpop.permute.xlu1 %2825 }
 0x2c7   :  { %3950 = vmatmul.msk.f32.gmra.mxu2 %vm144_vm10, %v2708_v41  ;;  %v2806_v41 = vpop.permute.xlu2 %2805 }
 0x2c8   :  { %2990 = vmatmul.f32.gmra.mxu1 %v2707_v21 }
 0x2cf   :  { %3951 = vmatmul.msk.f32.gmra.mxu2 %vm144_vm10, %v2710_v10 }
 0x2d0   :  { %2993 = vmatmul.f32.gmra.mxu1 %v2709_v53 }
 0x2d7   :  { %3952 = vmatmul.msk.f32.gmra.mxu2 %vm144_vm10, %v2712_v33  ;;  %v2748_v33 = vld [vmem:[%s6325_s13 + $0x178] sm:$0xff] }
 0x2d8   :  { %2996 = vmatmul.f32.gmra.mxu1 %v2711_v15 }
 0x2df   :  { %3953 = vmatmul.msk.f32.gmra.mxu2 %vm144_vm10, %v2714_v6  ;;  %v2747_v6 = vld [vmem:[%s6325_s13 + $0x170] sm:$0xff]  ;;  %s6378_s13 = sld [smem:[#allocation14_spill]] }
 0x2e0   :  { %2999 = vmatmul.f32.gmra.mxu1 %v2713_v30  ;;  %v2811_v30 = vpop.permute.xlu1 %2810 }
 0x2e7   :  { %3954 = vmatmul.msk.f32.gmra.mxu2 %vm144_vm10, %v2716_v45 }
 0x2e8   :  { %3002 = vmatmul.f32.gmra.mxu1 %v2715_v12 }
 0x2ef   :  { %3955 = vmatmul.msk.f32.gmra.mxu2 %vm144_vm10, %v2718_v23 }
 0x2f0   :  { %3005 = vmatmul.f32.gmra.mxu1 %v2717_v7 }
 0x2f7   :  { %3956 = vmatmul.msk.f32.gmra.mxu2 %vm144_vm10, %v2720_v9 }
 0x2f8   :  { %3008 = vmatmul.f32.gmra.mxu1 %v2719_v11 }
 0x2ff   :  { %3957 = vmatmul.msk.f32.gmra.mxu2 %vm144_vm10, %v2722_v62 }
 0x300   :  { %3011 = vmatmul.f32.gmra.mxu1 %v2721_v32 }
 0x307   :  { %3958 = vmatmul.msk.f32.gmra.mxu2 %vm144_vm10, %v2724_v25 }
 0x308   :  { %3014 = vmatmul.f32.gmra.mxu1 %v2723_v24 }
 0x30f   :  { %3959 = vmatmul.msk.f32.gmra.mxu2 %vm144_vm10, %v2726_v43 }
 0x310   :  { %3017 = vmatmul.f32.gmra.mxu1 %v2725_v22 }
 0x317   :  { %3960 = vmatmul.msk.f32.gmra.mxu2 %vm144_vm10, %v2728_v50  ;;  %v2796_v50 = vpop.permute.xlu1 %2795 }
 0x318   :  { %3020 = vmatmul.f32.gmra.mxu1 %v2727_v38 }
 0x31f   :  { %3961 = vmatmul.msk.f32.gmra.mxu2 %vm144_vm10, %v2730_v35 }
 0x320   :  { %3023 = vmatmul.f32.gmra.mxu1 %v2729_v61  ;;  %v2786_v61 = vpop.permute.xlu1 %2785 }
 0x327   :  { %3962 = vmatmul.msk.f32.gmra.mxu2 %vm144_vm10, %v2732_v19 }
 0x328   :  { %3026 = vmatmul.f32.gmra.mxu1 %v2731_v39 }
 0x32d   :  { %v5898_v31 = vpop.f32.mrf.mxu1 }
 0x32f   :  { %3963 = vmatmul.msk.f32.gmra.mxu2 %vm144_vm10, %v2734_v40 }
 0x330   :  { %3029 = vmatmul.f32.gmra.mxu1 %v2733_v56  ;;  %v5987_v56 = vpop.permute.xlu1 %2880 }
 0x332   :  { %v5904_v34 = vpop.f32.mrf.mxu2 }
 0x335   :  { %v5909_v17 = vpop.f32.mrf.mxu1 }
 0x337   :  { %3964 = vmatmul.msk.f32.gmra.mxu2 %vm144_vm10, %v2736_v54 }
 0x338   :  { %3032 = vmatmul.f32.gmra.mxu1 %v2735_v1 }
 0x33a   :  { %v5917_v52 = vpop.f32.mrf.mxu2 }
 0x33d   :  { %v5922_v49 = vpop.f32.mrf.mxu1 }
 0x33f   :  { %3965 = vmatmul.msk.f32.gmra.mxu2 %vm144_vm10, %v2738_v47 }
 0x340   :  { %3035 = vmatmul.f32.gmra.mxu1 %v2737_v3  ;;  %v5989_v3 = vpop.permute.xlu1 %2870 }
 0x342   :  { %v5930_v26 = vpop.f32.mrf.mxu2 }
 0x345   :  { %v5937_v59 = vpop.f32.mrf.mxu1 }
 0x347   :  { %3966 = vmatmul.msk.f32.gmra.mxu2 %vm144_vm10, %v2740_v27 }
 0x348   :  { %3038 = vmatmul.f32.gmra.mxu1 %v2739_v14 }
 0x34a   :  { %v5943_v46 = vpop.f32.mrf.mxu2 }
 0x34d   :  { %v5950_v48 = vpop.f32.mrf.mxu1 }
 0x34f   :  { %3967 = vmatmul.msk.f32.gmra.mxu2 %vm144_vm10, %v2742_v58 }
 0x350   :  { %3041 = vmatmul.f32.gmra.mxu1 %v2741_v2 }
 0x352   :  { %v5956_v57 = vpop.f32.mrf.mxu2 }
 0x355   :  { %v2997_v63 = vpop.f32.mrf.mxu1 }
 0x356   :  { %v2998_v0 = vadd.f32 %v2997_v63, %v2801_v13 }
 0x357   :  { %3968 = vmatmul.msk.f32.gmra.mxu2 %vm144_vm10, %v2744_v44 }
 0x358   :  { %3044 = vmatmul.f32.gmra.mxu1 %v2743_v36 }
 0x35a   :  { %v3086_v16 = vpop.f32.mrf.mxu2 }
 0x35b   :  { %v5967_v29 = vadd.f32 %v3086_v16, %v2998_v0 }
 0x35d   :  { %v3000_v5 = vpop.f32.mrf.mxu1 }
 0x35e   :  { %v3001_v21 = vadd.f32 %v3000_v5, %v2806_v41  ;;  %v2856_v41 = vpop.permute.xlu1 %2855 }
 0x35f   :  { %3969 = vmatmul.msk.f32.gmra.mxu2 %vm144_vm10, %v2746_v20 }
 0x360   :  { %3047 = vmatmul.f32.gmra.mxu1 %v2745_v8  ;;  %v2791_v8 = vpop.permute.xlu2 %2790 }
 0x362   :  { %v3089_v10 = vpop.f32.mrf.mxu2 }
 0x363   :  { %v5976_v53 = vadd.f32 %v3089_v10, %v3001_v21 }
 0x365   :  { %v3003_v15 = vpop.f32.mrf.mxu1 }
 0x366   :  { %v3004_v45 = vadd.f32 %v3003_v15, %v2811_v30 }
 0x367   :  { %3970 = vmatmul.msk.f32.gmra.mxu2 %vm144_vm10, %v2748_v33 }
 0x368   :  { %3050 = vmatmul.f32.gmra.mxu1 %v2747_v6 }
 0x36a   :  { %v3092_v12 = vpop.f32.mrf.mxu2 }
 0x36b   :  { %v5985_v23 = vadd.f32 %v3092_v12, %v3004_v45 }
 0x36d   :  { %v3006_v7 = vpop.f32.mrf.mxu1 }
 0x36e   :  { %v3007_v9 = vadd.f32 %v3006_v7, %v2816_v55 }
 0x372   :  { %v3095_v11 = vpop.f32.mrf.mxu2 }
 0x373   :  { %v3096_v62 = vadd.f32 %v3095_v11, %v3007_v9  ;;  %v2886_v9 = vpop.permute.xlu2 %2885 }
 0x375   :  { %v3009_v32 = vpop.f32.mrf.mxu1 }
 0x376   :  { %v3010_v33 = vadd.f32 %v3009_v32, %v5964_v28  ;;  %v2995_v28 = vadd.f32 %v5950_v48, %v2796_v50  ;;  %v3150_v32 = vmax.f32 %v5985_v23, 0.0 }
 0x37a   :  { %v3098_v25 = vpop.f32.mrf.mxu2 }
 0x37b   :  { %v3099_v30 = vadd.f32 %v3098_v25, %v3010_v33  ;;  %v2992_v25 = vadd.f32 %v5937_v59, %v2791_v8  ;;  %v3175_v8 = vld [vmem:[%s6327_s15 + $0x40] sm:$0xff] }
 0x37d   :  { %v3012_v24 = vpop.f32.mrf.mxu1  ;;  %v3152_v7 = vmax.f32 %v3099_v30, 0.0 }
 0x37e   :  { %v3013_v21 = vadd.f32 %v3012_v24, %v2826_v60  ;;  %v2891_v60 = vpop.permute.xlu0 %2890  ;;  %v3151_v24 = vmax.f32 %v3096_v62, 0.0  ;;  %v3148_v62 = vmax.f32 %v5967_v29, 0.0 }
 0x382   :  { %v3101_v43 = vpop.f32.mrf.mxu2 }
 0x383   :  { %v3102_v15 = vadd.f32 %v3101_v43, %v3013_v21 }
 0x385   :  { %v3015_v22 = vpop.f32.mrf.mxu1  ;;  %v3153_v12 = vmax.f32 %v3102_v15, 0.0 }
 0x386   :  { %v3016_v16 = vadd.f32 %v3015_v22, %v5932_v37  ;;  %v3084_v22 = vadd.f32 %v5956_v57, %v2995_v28  ;;  %v2781_v48 = vpop.permute.xlu0 %2780 }
 0x387   :  { %v2986_v23 = vadd.f32 %v5909_v17, %v2781_v48  ;;  %v3189_v48 = vld [vmem:[%s6327_s15 + $0xb0] sm:$0xff] }
 0x388   :  { %v3147_v59 = vmax.f32 %v3084_v22, 0.0  ;;  %v3172_v22 = vld [vmem:[%s6327_s15 + $0x28] sm:$0xff] }
 0x38a   :  { %v3104_v38 = vpop.f32.mrf.mxu2 }
 0x38d   :  { %v3018_v35 = vpop.f32.mrf.mxu1 }
 0x38e   :  { %v3019_v63 = vadd.f32 %v3018_v35, %v5945_v4  ;;  %v2989_v35 = vadd.f32 %v5922_v49, %v2786_v61 }
 0x392   :  { %v3107_v19 = vpop.f32.mrf.mxu2 }
 0x393   :  { %v3108_v20 = vadd.f32 %v3107_v19, %v3019_v63  ;;  %v3081_v19 = vadd.f32 %v5943_v46, %v2992_v25  ;;  %v2876_v63 = vpop.permute.xlu0 %2875  ;;  %v3183_v25 = vld [vmem:[%s6327_s15 + $0x80] sm:$0xff] }
 0x395   :  { %v3021_v39 = vpop.f32.mrf.mxu1  ;;  %v3155_v4 = vmax.f32 %v3108_v20, 0.0  ;;  %v3146_v49 = vmax.f32 %v3081_v19, 0.0  ;;  %v3187_v19 = vld [vmem:[%s6327_s15 + $0xa0] sm:$0xff] }
 0x396   :  { %v3022_v2 = vadd.f32 %v3021_v39, %v2841_v42  ;;  %v3078_v39 = vadd.f32 %v5930_v26, %v2989_v35  ;;  %v3167_v26 = vld [vmem:[%s6327_s15] sm:$0xff]  ;;  %v3174_v35 = vld [vmem:[%s6327_s15 + $0x38] sm:$0xff] }
 0x398   :  { %v3145_v29 = vmax.f32 %v3078_v39, 0.0  ;;  %v3180_v39 = vld [vmem:[%s6327_s15 + $0x68] sm:$0xff] }
 0x39a   :  { %v3110_v40 = vpop.f32.mrf.mxu2 }
 0x39b   :  { %v3111_v36 = vadd.f32 %v3110_v40, %v3022_v2  ;;  %v2776_v40 = vpop.permute.xlu2 %2775  ;;  %v2861_v30 = vpop.permute.xlu0 %2860 }
 0x39c   :  { %v2983_v57 = vadd.f32 %v5898_v31, %v2776_v40  ;;  %v3182_v40 = vld [vmem:[%s6327_s15 + $0x78] sm:$0xff] }
 0x39d   :  { %v3024_v54 = vpop.f32.mrf.mxu1  ;;  %v3156_v10 = vmax.f32 %v3111_v36, 0.0 }
 0x39e   :  { %v3025_v27 = vadd.f32 %v3024_v54, %v5915_v18  ;;  %v3105_v18 = vadd.f32 %v3104_v38, %v3016_v16  ;;  %v3149_v38 = vmax.f32 %v5976_v53, 0.0  ;;  %v3075_v53 = vadd.f32 %v5917_v52, %v2986_v23  ;;  %v3169_v52 = vld [vmem:[%s6327_s15 + $0x10] sm:$0xff]  ;;  %v3191_v23 = vld [vmem:[%s6327_s15 + $0xc0] sm:$0xff] }
 0x39f   :  { %v3072_v46 = vadd.f32 %v5904_v34, %v2983_v57  ;;  %v3195_v57 = vld [vmem:[%s6327_s15 + $0xe0] sm:$0xff] }
 0x3a0   :  { %v3154_v37 = vmax.f32 %v3105_v18, 0.0  ;;  %v3144_v61 = vmax.f32 %v3075_v53, 0.0  ;;  %v3184_v53 = vld [vmem:[%s6327_s15 + $0x88] sm:$0xff] }
 0x3a1   :  { %v3143_v17 = vmax.f32 %v3072_v46, 0.0  ;;  %v3186_v46 = vld [vmem:[%s6327_s15 + $0x98] sm:$0xff] }
 0x3a2   :  { %v3113_v1 = vpop.f32.mrf.mxu2 }
 0x3a3   :  { %v3114_v55 = vadd.f32 %v3113_v1, %v3025_v27  ;;  %v2866_v33 = vpop.permute.xlu2 %2865 }
 0x3a5   :  { %v3027_v47 = vpop.f32.mrf.mxu1  ;;  %v3157_v5 = vmax.f32 %v3114_v55, 0.0  ;;  %v3173_v55 = vld [vmem:[%s6327_s15 + $0x30] sm:$0xff] }
 0x3a6   :  { %v3028_v14 = vadd.f32 %v3027_v47, %v5928_v51 }
 0x3aa   :  { %v3116_v58 = vpop.f32.mrf.mxu2 }
 0x3ab   :  { %v3117_v44 = vadd.f32 %v3116_v58, %v3028_v14  ;;  %v3171_v14 = vld [vmem:[%s6327_s15 + $0x20] sm:$0xff] }
 0x3ad   :  { %v3158_v13 = vmax.f32 %v3117_v44, 0.0  ;;  %v3030_v0 = vpop.f32.mrf.mxu1 }
 0x3ae   :  { %v3031_v51 = vadd.f32 %v3030_v0, %v2856_v41 }
 0x3af   :  { %3431 = vmatpush.msrb.mxu3 %v3158_v13 }
 0x3b1   :  { %3432 = vmatpush.msrb.mxu3 %v3157_v5 }
 0x3b2   :  { %v3119_v42 = vpop.f32.mrf.mxu2 }
 0x3b3   :  { %v5996_v6 = vadd.f32 %v3119_v42, %v3031_v51  ;;  %3433 = vmatpush.msrb.mxu3 %v3156_v10 }
 0x3b5   :  { %v5998_v45 = vpop.f32.mrf.mxu1  ;;  %3434 = vmatpush.msrb.mxu3 %v3155_v4 }
 0x3b7   :  { %3435 = vmatpush.msrb.mxu3 %v3154_v37  ;;  %v3034_v37 = vadd.f32 %v5998_v45, %v2861_v30  ;;  %v3179_v45 = vld [vmem:[%s6327_s15 + $0x60] sm:$0xff] }
 0x3b9   :  { %3436 = vmatpush.msrb.mxu3 %v3153_v12 }
 0x3ba   :  { %v6000_v11 = vpop.f32.mrf.mxu2 }
 0x3bb   :  { %3437 = vmatpush.msrb.mxu3 %v3152_v7  ;;  %v3177_v7 = vld [vmem:[%s6327_s15 + $0x50] sm:$0xff] }
 0x3bd   :  { %v6004_v43 = vpop.f32.mrf.mxu1  ;;  %3438 = vmatpush.msrb.mxu3 %v3151_v24 }
 0x3be   :  { %v3037_v15 = vadd.f32 %v6004_v43, %v2866_v33  ;;  %v3168_v43 = vld [vmem:[%s6327_s15 + $0x8] sm:$0xff] }
 0x3bf   :  { %3439 = vmatpush.msrb.mxu3 %v3150_v32  ;;  %v3159_v32 = vmax.f32 %v5996_v6, 0.0  ;;  %v3170_v6 = vld [vmem:[%s6327_s15 + $0x18] sm:$0xff] }
 0x3c1   :  { %3440 = vmatpush.msrb.mxu3 %v3149_v38  ;;  %v3185_v38 = vld [vmem:[%s6327_s15 + $0x90] sm:$0xff] }
 0x3c2   :  { %v3125_v50 = vpop.f32.mrf.mxu2 }
 0x3c3   :  { %3441 = vmatpush.msrb.mxu3 %v3148_v62  ;;  %v3126_v12 = vadd.f32 %v3125_v50, %v3037_v15  ;;  %v3176_v62 = vld [vmem:[%s6327_s15 + $0x48] sm:$0xff]  ;;  %v3178_v50 = vld [vmem:[%s6327_s15 + $0x58] sm:$0xff] }
 0x3c5   :  { %v3039_v54 = vpop.f32.mrf.mxu1  ;;  %3442 = vmatpush.msrb.mxu3 %v3147_v59  ;;  %v3161_v24 = vmax.f32 %v3126_v12, 0.0  ;;  %v3193_v59 = vld [vmem:[%s6327_s15 + $0xd0] sm:$0xff]  ;;  %v3200_v12 = vld [vmem:[%s6327_s15 + $0x108] sm:$0xff] }
 0x3c6   :  { %v3040_v10 = vadd.f32 %v3039_v54, %v5989_v3  ;;  %v3123_v3 = vadd.f32 %v6000_v11, %v3034_v37  ;;  %v3181_v11 = vld [vmem:[%s6327_s15 + $0x70] sm:$0xff]  ;;  %v6103_v54 = vpop.permute.xlu2 %3316  ;;  %v3211_v37 = vld [vmem:[%s6327_s15 + $0x160] sm:$0xff] }
 0x3c7   :  { %3443 = vmatpush.msrb.mxu3 %v3146_v49  ;;  %v3197_v49 = vld [vmem:[%s6327_s15 + $0xf0] sm:$0xff] }
 0x3c8   :  { %v3160_v28 = vmax.f32 %v3123_v3, 0.0 }
 0x3c9   :  { %3444 = vmatpush.msrb.mxu3 %v3145_v29 }
 0x3ca   :  { %v3128_v1 = vpop.f32.mrf.mxu2 }
 0x3cb   :  { %3445 = vmatpush.msrb.mxu3 %v3144_v61  ;;  %v3129_v4 = vadd.f32 %v3128_v1, %v3040_v10  ;;  %v3199_v61 = vld [vmem:[%s6327_s15 + $0x100] sm:$0xff]  ;;  %v3188_v1 = vld [vmem:[%s6327_s15 + $0xa8] sm:$0xff]  ;;  %v3209_v10 = vld [vmem:[%s6327_s15 + $0x150] sm:$0xff] }
 0x3cd   :  { %v3042_v47 = vpop.f32.mrf.mxu1  ;;  %3446 = vmatpush.msrb.mxu3 %v3143_v17  ;;  %v6122_v17 = vpop.permute.xlu0 %3311 }
 0x3ce   :  { %3447 = vmatmul.f32.vlgmr.msrb.gmra.mxu3 %v3167_v26  ;;  %v3043_v41 = vadd.f32 %v3042_v47, %v2876_v63  ;;  %v6113_v29 = vpop.permute.xlu2 %3301 }
 0x3d2   :  { %v3131_v31 = vpop.f32.mrf.mxu2 }
 0x3d3   :  { %v3132_v51 = vadd.f32 %v3131_v31, %v3043_v41  ;;  %v3201_v31 = vld [vmem:[%s6327_s15 + $0x110] sm:$0xff] }
 0x3d5   :  { %v3045_v34 = vpop.f32.mrf.mxu1 }
 0x3d6   :  { %3450 = vmatmul.f32.gmra.mxu3 %v3169_v52  ;;  %v3046_v16 = vadd.f32 %v3045_v34, %v5987_v56  ;;  %v6124_v26 = vpop.permute.xlu2 %3286  ;;  %v3190_v52 = vld [vmem:[%s6327_s15 + $0xb8] sm:$0xff]  ;;  %v6133_v34 = vpop.permute.xlu0 %3296 }
 0x3da   :  { %v3134_v27 = vpop.f32.mrf.mxu2 }
 0x3db   :  { %v3135_v21 = vadd.f32 %v3134_v27, %v3046_v16 }
 0x3dd   :  { %v3048_v58 = vpop.f32.mrf.mxu1  ;;  %v3164_v56 = vmax.f32 %v3135_v21, 0.0 }
 0x3de   :  { %3453 = vmatmul.f32.gmra.mxu3 %v3171_v14  ;;  %v3049_v36 = vadd.f32 %v3048_v58, %v2886_v9  ;;  %v3162_v9 = vmax.f32 %v3129_v4, 0.0  ;;  %v6135_v14 = vpop.permute.xlu2 %3271  ;;  %v3203_v58 = vld [vmem:[%s6327_s15 + $0x120] sm:$0xff]  ;;  %v6146_v63 = vpop.permute.xlu0 %3281 }
 0x3e2   :  { %v3137_v2 = vpop.f32.mrf.mxu2 }
 0x3e3   :  { %v3138_v20 = vadd.f32 %v3137_v2, %v3049_v36  ;;  %v3192_v2 = vld [vmem:[%s6327_s15 + $0xc8] sm:$0xff]  ;;  %v3205_v36 = vld [vmem:[%s6327_s15 + $0x130] sm:$0xff] }
 0x3e5   :  { %v3051_v44 = vpop.f32.mrf.mxu1  ;;  %v3165_v42 = vmax.f32 %v3138_v20, 0.0 }
 0x3e6   :  { %3456 = vmatmul.f32.gmra.mxu3 %v3173_v55  ;;  %v3052_v13 = vadd.f32 %v3051_v44, %v2891_v60  ;;  %v3163_v60 = vmax.f32 %v3132_v51, 0.0  ;;  %v6144_v55 = vpop.permute.xlu1 %3306  ;;  %v3267_v41 = vpop.permute.xlu0 %3266  ;;  %v3198_v51 = vld [vmem:[%s6327_s15 + $0xf8] sm:$0xff] }
 0x3ea   :  { %v3140_v0 = vpop.f32.mrf.mxu2 }
 0x3eb   :  { %v3141_v5 = vadd.f32 %v3140_v0, %v3052_v13  ;;  %v3194_v13 = vld [vmem:[%s6327_s15 + $0xd8] sm:$0xff]  ;;  %v3257_v0 = vpop.permute.xlu2 %3256 }
 0x3ed   :  { %v3166_v18 = vmax.f32 %v3141_v5, 0.0  ;;  %v3207_v5 = vld [vmem:[%s6327_s15 + $0x140] sm:$0xff] }
 0x3ee   :  { %3459 = vmatmul.f32.gmra.mxu3 %v3175_v8  ;;  %v6155_v20 = vpop.permute.xlu1 %3291  ;;  %v3196_v8 = vld [vmem:[%s6327_s15 + $0xe8] sm:$0xff]  ;;  %v6173_v33 = vpop.permute.xlu0 %3356 }
 0x3ef   :  { %3528 = vmatpush.msrb.mxu0 %v3166_v18 }
 0x3f1   :  { %3529 = vmatpush.msrb.mxu0 %v3165_v42 }
 0x3f3   :  { %3530 = vmatpush.msrb.mxu0 %v3164_v56  ;;  %v6164_v21 = vpop.permute.xlu2 %3351 }
 0x3f5   :  { %3531 = vmatpush.msrb.mxu0 %v3163_v60 }
 0x3f6   :  { %3462 = vmatmul.f32.gmra.mxu3 %v3177_v7  ;;  %v3277_v42 = vpop.permute.xlu1 %3276  ;;  %v3247_v3 = vpop.permute.xlu0 %3246 }
 0x3f7   :  { %3532 = vmatpush.msrb.mxu0 %v3162_v9 }
 0x3f9   :  { %3533 = vmatpush.msrb.mxu0 %v3161_v24 }
 0x3fb   :  { %3534 = vmatpush.msrb.mxu0 %v3160_v28  ;;  %v3242_v15 = vpop.permute.xlu2 %3241  ;;  %v3213_v28 = vld [vmem:[%s6327_s15 + $0x170] sm:$0xff] }
 0x3fd   :  { %3535 = vmatpush.msrb.mxu0 %v3159_v32  ;;  %v3202_v32 = vld [vmem:[%s6327_s15 + $0x118] sm:$0xff] }
 0x3fe   :  { %3465 = vmatmul.f32.gmra.mxu3 %v3179_v45  ;;  %3971 = vmatmul.msk.f32.vlgmr.msrb.gmra.mxu0 %vm144_vm10, %v3168_v43  ;;  %v3262_v7 = vpop.permute.xlu1 %3261 }
 0x406   :  { %3468 = vmatmul.f32.gmra.mxu3 %v3181_v11  ;;  %3972 = vmatmul.msk.f32.gmra.mxu0 %vm144_vm10, %v3170_v6  ;;  %v3252_v11 = vpop.permute.xlu1 %3251 }
 0x40e   :  { %3471 = vmatmul.f32.gmra.mxu3 %v3183_v25  ;;  %3973 = vmatmul.msk.f32.gmra.mxu0 %vm144_vm10, %v3172_v22  ;;  %v3204_v22 = vld [vmem:[%s6327_s15 + $0x128] sm:$0xff] }
 0x416   :  { %3474 = vmatmul.f32.gmra.mxu3 %v3185_v38  ;;  %3974 = vmatmul.msk.f32.gmra.mxu0 %vm144_vm10, %v3174_v35 }
 0x41e   :  { %3477 = vmatmul.f32.gmra.mxu3 %v3187_v19  ;;  %3975 = vmatmul.msk.f32.gmra.mxu0 %vm144_vm10, %v3176_v62 }
 0x426   :  { %3480 = vmatmul.f32.gmra.mxu3 %v3189_v48  ;;  %3976 = vmatmul.msk.f32.gmra.mxu0 %vm144_vm10, %v3178_v50  ;;  %v3206_v48 = vld [vmem:[%s6327_s15 + $0x138] sm:$0xff] }
 0x42e   :  { %3483 = vmatmul.f32.gmra.mxu3 %v3191_v23  ;;  %3977 = vmatmul.msk.f32.gmra.mxu0 %vm144_vm10, %v3180_v39 }
 0x436   :  { %3486 = vmatmul.f32.gmra.mxu3 %v3193_v59  ;;  %3978 = vmatmul.msk.f32.gmra.mxu0 %vm144_vm10, %v3182_v40  ;;  %v3208_v40 = vld [vmem:[%s6327_s15 + $0x148] sm:$0xff] }
 0x43e   :  { %3489 = vmatmul.f32.gmra.mxu3 %v3195_v57  ;;  %3979 = vmatmul.msk.f32.gmra.mxu0 %vm144_vm10, %v3184_v53 }
 0x446   :  { %3492 = vmatmul.f32.gmra.mxu3 %v3197_v49  ;;  %3980 = vmatmul.msk.f32.gmra.mxu0 %vm144_vm10, %v3186_v46 }
 0x44e   :  { %3495 = vmatmul.f32.gmra.mxu3 %v3199_v61  ;;  %3981 = vmatmul.msk.f32.gmra.mxu0 %vm144_vm10, %v3188_v1  ;;  %v3210_v61 = vld [vmem:[%s6327_s15 + $0x158] sm:$0xff] }
 0x451   :  { %v3448_v47 = vpop.f32.mrf.mxu3 }
 0x452   :  { %v3449_v4 = vadd.f32 %v3448_v47, %v3242_v15 }
 0x456   :  { %3498 = vmatmul.f32.gmra.mxu3 %v3201_v31  ;;  %3982 = vmatmul.msk.f32.gmra.mxu0 %vm144_vm10, %v3190_v52  ;;  %v3212_v52 = vld [vmem:[%s6327_s15 + $0x168] sm:$0xff] }
 0x459   :  { %v3451_v27 = vpop.f32.mrf.mxu3 }
 0x45a   :  { %v3452_v9 = vadd.f32 %v3451_v27, %v3247_v3 }
 0x45e   :  { %3501 = vmatmul.f32.gmra.mxu3 %v3203_v58  ;;  %3983 = vmatmul.msk.f32.gmra.mxu0 %vm144_vm10, %v3192_v2 }
 0x461   :  { %v3454_v44 = vpop.f32.mrf.mxu3 }
 0x462   :  { %v3455_v6 = vadd.f32 %v3454_v44, %v3252_v11 }
 0x466   :  { %3504 = vmatmul.f32.gmra.mxu3 %v3205_v36  ;;  %3984 = vmatmul.msk.f32.gmra.mxu0 %vm144_vm10, %v3194_v13  ;;  %v3214_v36 = vld [vmem:[%s6327_s15 + $0x178] sm:$0xff] }
 0x469   :  { %v3457_v16 = vpop.f32.mrf.mxu3 }
 0x46a   :  { %v3458_v19 = vadd.f32 %v3457_v16, %v3257_v0 }
 0x46e   :  { %3507 = vmatmul.f32.gmra.mxu3 %v3207_v5  ;;  %3985 = vmatmul.msk.f32.gmra.mxu0 %vm144_vm10, %v3196_v8 }
 0x471   :  { %v3460_v18 = vpop.f32.mrf.mxu3 }
 0x472   :  { %v3461_v39 = vadd.f32 %v3460_v18, %v3262_v7 }
 0x476   :  { %3510 = vmatmul.f32.gmra.mxu3 %v3209_v10  ;;  %3986 = vmatmul.msk.f32.gmra.mxu0 %vm144_vm10, %v3198_v51 }
 0x479   :  { %v3463_v56 = vpop.f32.mrf.mxu3 }
 0x47a   :  { %v3464_v53 = vadd.f32 %v3463_v56, %v3267_v41 }
 0x47b   :  { %v3537_v30 = vpop.f32.mrf.mxu0 }
 0x47c   :  { %v6181_v60 = vadd.f32 %v3537_v30, %v3449_v4  ;;  %v6229_v30 = vpop.permute.xlu1 %3346 }
 0x47e   :  { %3513 = vmatmul.f32.gmra.mxu3 %v3211_v37  ;;  %3987 = vmatmul.msk.f32.gmra.mxu0 %vm144_vm10, %v3200_v12 }
 0x481   :  { %v3466_v43 = vpop.f32.mrf.mxu3 }
 0x482   :  { %v3467_v47 = vadd.f32 %v3466_v43, %v6135_v14 }
 0x483   :  { %v3540_v24 = vpop.f32.mrf.mxu0 }
 0x484   :  { %v6190_v45 = vadd.f32 %v3540_v24, %v3452_v9  ;;  %v6231_v7 = vpop.permute.xlu1 %3336 }
 0x486   :  { %3516 = vmatmul.f32.gmra.mxu3 %v3213_v28  ;;  %3988 = vmatmul.msk.f32.gmra.mxu0 %vm144_vm10, %v3202_v32 }
 0x489   :  { %v3469_v35 = vpop.f32.mrf.mxu3 }
 0x48a   :  { %v3470_v2 = vadd.f32 %v3469_v35, %v3277_v42 }
 0x48b   :  { %v3543_v25 = vpop.f32.mrf.mxu0 }
 0x48c   :  { %v6196_v38 = vadd.f32 %v3543_v25, %v3455_v6 }
 0x48e   :  { %3989 = vmatmul.msk.f32.gmra.mxu0 %vm144_vm10, %v3204_v22 }
 0x491   :  { %v3472_v23 = vpop.f32.mrf.mxu3 }
 0x492   :  { %v3473_v0 = vadd.f32 %v3472_v23, %v6146_v63 }
 0x493   :  { %v3546_v62 = vpop.f32.mrf.mxu0 }
 0x494   :  { %v6202_v50 = vadd.f32 %v3546_v62, %v3458_v19  ;;  %v3322_v62 = vpop.permute.xlu1 %3321 }
 0x496   :  { %3990 = vmatmul.msk.f32.gmra.mxu0 %vm144_vm10, %v3206_v48 }
 0x499   :  { %v3475_v49 = vpop.f32.mrf.mxu3 }
 0x49b   :  { %v3549_v59 = vpop.f32.mrf.mxu0 }
 0x49c   :  { %v6208_v57 = vadd.f32 %v3549_v59, %v3461_v39 }
 0x49e   :  { %3991 = vmatmul.msk.f32.gmra.mxu0 %vm144_vm10, %v3208_v40 }
 0x4a1   :  { %v3478_v58 = vpop.f32.mrf.mxu3 }
 0x4a3   :  { %v3552_v46 = vpop.f32.mrf.mxu0 }
 0x4a4   :  { %v6214_v1 = vadd.f32 %v3552_v46, %v3464_v53 }
 0x4a6   :  { %3992 = vmatmul.msk.f32.gmra.mxu0 %vm144_vm10, %v3210_v61 }
 0x4a9   :  { %v3481_v14 = vpop.f32.mrf.mxu3 }
 0x4aa   :  { %v3482_v22 = vadd.f32 %v3481_v14, %v6133_v34  ;;  %v3611_v14 = vmax.f32 %v6196_v38, 0.0  ;;  %v3635_v38 = vld [vmem:[%s6329_s17 + $0x10] sm:$0xff] }
 0x4ab   :  { %v3555_v31 = vpop.f32.mrf.mxu0 }
 0x4ac   :  { %v6221_v27 = vadd.f32 %v3555_v31, %v3467_v47 }
 0x4ae   :  { %3993 = vmatmul.msk.f32.gmra.mxu0 %vm144_vm10, %v3212_v52 }
 0x4b1   :  { %v3484_v8 = vpop.f32.mrf.mxu3 }
 0x4b2   :  { %v3485_v11 = vadd.f32 %v3484_v8, %v6113_v29 }
 0x4b3   :  { %v3558_v44 = vpop.f32.mrf.mxu0 }
 0x4b4   :  { %v3559_v13 = vadd.f32 %v3558_v44, %v3470_v2  ;;  %v3613_v44 = vmax.f32 %v6208_v57, 0.0 }
 0x4b6   :  { %3994 = vmatmul.msk.f32.gmra.mxu0 %vm144_vm10, %v3214_v36  ;;  %v3616_v52 = vmax.f32 %v3559_v13, 0.0  ;;  %v3612_v36 = vmax.f32 %v6202_v50, 0.0  ;;  %v3610_v13 = vmax.f32 %v6190_v45, 0.0  ;;  %v3637_v45 = vld [vmem:[%s6329_s17 + $0x20] sm:$0xff] }
 0x4b9   :  { %v3487_v18 = vpop.f32.mrf.mxu3 }
 0x4ba   :  { %v3488_v28 = vadd.f32 %v3487_v18, %v6144_v55  ;;  %v3476_v55 = vadd.f32 %v3475_v49, %v6124_v26  ;;  %v3615_v26 = vmax.f32 %v6221_v27, 0.0  ;;  %v3614_v49 = vmax.f32 %v6214_v1, 0.0  ;;  %v3633_v1 = vld [vmem:[%s6329_s17] sm:$0xff] }
 0x4bb   :  { %v3561_v16 = vpop.f32.mrf.mxu0  ;;  %v3609_v27 = vmax.f32 %v6181_v60, 0.0 }
 0x4bc   :  { %v3562_v5 = vadd.f32 %v3561_v16, %v3473_v0 }
 0x4be   :  { %v3617_v31 = vmax.f32 %v3562_v5, 0.0 }
 0x4c1   :  { %v3490_v15 = vpop.f32.mrf.mxu3 }
 0x4c2   :  { %v3491_v3 = vadd.f32 %v3490_v15, %v6122_v17  ;;  %v3479_v17 = vadd.f32 %v3478_v58, %v6155_v20 }
 0x4c3   :  { %v3564_v41 = vpop.f32.mrf.mxu0 }
 0x4c4   :  { %v3565_v34 = vadd.f32 %v3564_v41, %v3476_v55  ;;  %v3639_v41 = vld [vmem:[%s6329_s17 + $0x30] sm:$0xff] }
 0x4c6   :  { %v3618_v47 = vmax.f32 %v3565_v34, 0.0 }
 0x4c9   :  { %v3493_v4 = vpop.f32.mrf.mxu3 }
 0x4ca   :  { %v3494_v63 = vadd.f32 %v3493_v4, %v6103_v54 }
 0x4cb   :  { %v3567_v10 = vpop.f32.mrf.mxu0 }
 0x4cc   :  { %v3568_v59 = vadd.f32 %v3567_v10, %v3479_v17  ;;  %v3342_v10 = vpop.permute.xlu0 %3341 }
 0x4ce   :  { %v3619_v61 = vmax.f32 %v3568_v59, 0.0 }
 0x4d1   :  { %v3496_v37 = vpop.f32.mrf.mxu3 }
 0x4d2   :  { %v3497_v54 = vadd.f32 %v3496_v37, %v3322_v62 }
 0x4d3   :  { %v3570_v51 = vpop.f32.mrf.mxu0 }
 0x4d4   :  { %v3571_v48 = vadd.f32 %v3570_v51, %v3482_v22 }
 0x4d6   :  { %v3620_v46 = vmax.f32 %v3571_v48, 0.0  ;;  %v3638_v48 = vld [vmem:[%s6329_s17 + $0x28] sm:$0xff] }
 0x4d9   :  { %v6235_v9 = vpop.f32.mrf.mxu3 }
 0x4db   :  { %v3573_v42 = vpop.f32.mrf.mxu0 }
 0x4dc   :  { %v3574_v35 = vadd.f32 %v3573_v42, %v3485_v11 }
 0x4de   :  { %v3621_v40 = vmax.f32 %v3574_v35, 0.0 }
 0x4e1   :  { %v3502_v53 = vpop.f32.mrf.mxu3 }
 0x4e3   :  { %v3576_v56 = vpop.f32.mrf.mxu0 }
 0x4e4   :  { %v3577_v6 = vadd.f32 %v3576_v56, %v3488_v28 }
 0x4e6   :  { %v3622_v23 = vmax.f32 %v3577_v6, 0.0 }
 0x4e9   :  { %v3505_v58 = vpop.f32.mrf.mxu3 }
 0x4eb   :  { %v3579_v12 = vpop.f32.mrf.mxu0 }
 0x4ec   :  { %v3580_v32 = vadd.f32 %v3579_v12, %v3491_v3 }
 0x4ee   :  { %v3623_v19 = vmax.f32 %v3580_v32, 0.0 }
 0x4f1   :  { %v3508_v0 = vpop.f32.mrf.mxu3 }
 0x4f2   :  { %v3509_v12 = vadd.f32 %v3508_v0, %v3342_v10 }
 0x4f3   :  { %v3582_v24 = vpop.f32.mrf.mxu0 }
 0x4f4   :  { %v3583_v43 = vadd.f32 %v3582_v24, %v3494_v63  ;;  %v3506_v24 = vadd.f32 %v3505_v58, %v6231_v7 }
 0x4f6   :  { %v3624_v25 = vmax.f32 %v3583_v43, 0.0  ;;  %v3332_v43 = vpop.permute.xlu2 %3331 }
 0x4f7   :  { %v3503_v11 = vadd.f32 %v3502_v53, %v3332_v43 }
 0x4f8   :  { %3677 = vmatpush.msrb.mxu2 %v3624_v25 }
 0x4f9   :  { %v3511_v57 = vpop.f32.mrf.mxu3 }
 0x4fa   :  { %3678 = vmatpush.msrb.mxu2 %v3623_v19  ;;  %v3512_v4 = vadd.f32 %v3511_v57, %v6229_v30 }
 0x4fb   :  { %v3585_v39 = vpop.f32.mrf.mxu0 }
 0x4fc   :  { %v6242_v29 = vadd.f32 %v3585_v39, %v3497_v54  ;;  %3679 = vmatpush.msrb.mxu2 %v3622_v23  ;;  %v3634_v54 = vld [vmem:[%s6329_s17 + $0x8] sm:$0xff]  ;;  %v3640_v23 = vld [vmem:[%s6329_s17 + $0x38] sm:$0xff] }
 0x4fe   :  { %3680 = vmatpush.msrb.mxu2 %v3621_v40  ;;  %v3625_v17 = vmax.f32 %v6242_v29, 0.0  ;;  %v3648_v34 = vpop.permute.xlu2 %3647 }
 0x500   :  { %3681 = vmatpush.msrb.mxu2 %v3620_v46 }
 0x501   :  { %v3514_v60 = vpop.f32.mrf.mxu3 }
 0x502   :  { %3682 = vmatpush.msrb.mxu2 %v3619_v61  ;;  %v3515_v51 = vadd.f32 %v3514_v60, %v6164_v21  ;;  %v3327_v21 = vpop.permute.xlu0 %3326 }
 0x503   :  { %v3588_v20 = vpop.f32.mrf.mxu0 }
 0x504   :  { %3683 = vmatpush.msrb.mxu2 %v3618_v47  ;;  %v3658_v47 = vpop.permute.xlu1 %3657 }
 0x506   :  { %3684 = vmatpush.msrb.mxu2 %v3617_v31 }
 0x508   :  { %3685 = vmatpush.msrb.mxu2 %v3616_v52 }
 0x509   :  { %v3517_v18 = vpop.f32.mrf.mxu3 }
 0x50a   :  { %3686 = vmatpush.msrb.mxu2 %v3615_v26  ;;  %v3518_v15 = vadd.f32 %v3517_v18, %v6173_v33  ;;  %v3500_v33 = vadd.f32 %v6235_v9, %v3327_v21  ;;  %v3636_v9 = vld [vmem:[%s6329_s17 + $0x18] sm:$0xff]  ;;  %v3653_v40 = vpop.permute.xlu0 %3652 }
 0x50b   :  { %v3591_v2 = vpop.f32.mrf.mxu0 }
 0x50c   :  { %3687 = vmatpush.msrb.mxu2 %v3614_v49  ;;  %v3592_v22 = vadd.f32 %v3591_v2, %v3503_v11  ;;  %v3589_v35 = vadd.f32 %v3588_v20, %v3500_v33  ;;  %v3813_v33 = vstv %s6378_s13 }
 0x50e   :  { %3688 = vmatpush.msrb.mxu2 %v3613_v44  ;;  %v3627_v62 = vmax.f32 %v3592_v22, 0.0  ;;  %v3626_v7 = vmax.f32 %v3589_v35, 0.0 }
 0x510   :  { %3689 = vmatpush.msrb.mxu2 %v3612_v36 }
 0x512   :  { %3690 = vmatpush.msrb.mxu2 %v3611_v14  ;;  %v3739_v46 = vpop.xlane.xlu0 %3738  ;;  %v3663_v14 = vpop.permute.xlu2 %3662 }
 0x513   :  { %v3594_v16 = vpop.f32.mrf.mxu0  ;;  %4039 = vrsqrt.f32 %v3739_v46  ;;  %vm3747_vm0 = vcmp.eq.f32.partialorder %v3739_v46, inf }
 0x514   :  { %3691 = vmatpush.msrb.mxu2 %v3610_v13  ;;  %v3595_v6 = vadd.f32 %v3594_v16, %v3506_v24 }
 0x516   :  { %3692 = vmatpush.msrb.mxu2 %v3609_v27  ;;  %v3628_v19 = vmax.f32 %v3595_v6, 0.0 }
 0x517   :  { %3693 = vmatmul.f32.vlgmr.msrb.gmra.mxu2 %v3633_v1 }
 0x519   :  { %v4040_v36 = vpop.eup %4039 }
 0x51a   :  { %v3741_v1 = vmul.f32 %v4040_v36, %v3739_v46 }
 0x51b   :  { %v3597_v50 = vpop.f32.mrf.mxu0 }
 0x51c   :  { %v3598_v28 = vadd.f32 %v3597_v50, %v3509_v12  ;;  %v3750_v12 = vand.u32 2147483648, %v3739_v46 }
 0x51e   :  { %v3629_v30 = vmax.f32 %v3598_v28, 0.0 }
 0x51f   :  { %3696 = vmatmul.f32.gmra.mxu2 %v3635_v38 }
 0x523   :  { %v3600_v5 = vpop.f32.mrf.mxu0 }
 0x524   :  { %v3601_v3 = vadd.f32 %v3600_v5, %v3512_v4 }
 0x526   :  { %v3630_v25 = vmax.f32 %v3601_v3, 0.0 }
 0x527   :  { %3699 = vmatmul.f32.gmra.mxu2 %v3637_v45  ;;  %v3742_v45 = vmul.f32 %v4040_v36, %v3741_v1 }
 0x52b   :  { %v3603_v8 = vpop.f32.mrf.mxu0 }
 0x52c   :  { %v3604_v56 = vadd.f32 %v3603_v8, %v3515_v51 }
 0x52e   :  { %v3631_v32 = vmax.f32 %v3604_v56, 0.0 }
 0x52f   :  { %3702 = vmatmul.f32.gmra.mxu2 %v3639_v41  ;;  %v3743_v41 = vmul.f32 0.5, %v3742_v45 }
 0x531   :  { %v3744_v51 = vsub.f32 1.5, %v3743_v41 }
 0x533   :  { %v3606_v42 = vpop.f32.mrf.mxu0  ;;  %v3745_v4 = vmul.f32 %v4040_v36, %v3744_v51 }
 0x534   :  { %v3607_v37 = vadd.f32 %v3606_v42, %v3518_v15 }
 0x536   :  { %v3632_v63 = vmax.f32 %v3607_v37, 0.0  ;;  %v3746_v37 = vmul.f32 %v3745_v4, %v3739_v46 }
 0x538   :  { %3714 = vmatpush.msra.mxu1 %v3632_v63  ;;  %v3748_v63 = vsel %vm3747_vm0, %v3739_v46, %v3746_v37 }
 0x53a   :  { %3715 = vmatpush.msra.mxu1 %v3631_v32 }
 0x53c   :  { %3716 = vmatpush.msra.mxu1 %v3630_v25 }
 0x53e   :  { %3717 = vmatpush.msra.mxu1 %v3629_v30  ;;  %v3814_v30 = vmul.f32 1.442695, %v3813_v33 }
 0x540   :  { %3718 = vmatpush.msra.mxu1 %v3628_v19 }
 0x542   :  { %3719 = vmatpush.msra.mxu1 %v3627_v62 }
 0x544   :  { %3720 = vmatpush.msra.mxu1 %v3626_v7 }
 0x546   :  { %3721 = vmatpush.msra.mxu1 %v3625_v17 }
 0x547   :  { %3995 = vmatmul.msk.f32.vlgmr.msra.gmra.mxu1 %vm144_vm10, %v3634_v54 }
 0x54f   :  { %3996 = vmatmul.msk.f32.gmra.mxu1 %vm144_vm10, %v3636_v9 }
 0x557   :  { %3997 = vmatmul.msk.f32.gmra.mxu1 %vm144_vm10, %v3638_v48 }
 0x55f   :  { %3998 = vmatmul.msk.f32.gmra.mxu1 %vm144_vm10, %v3640_v23  ;;  %vm3749_vm10 = vcmp.eq.f32.partialorder %v3739_v46, 0.0 }
 0x560   :  { %v3751_v28 = vsel %vm3749_vm10, %v3750_v12, %v3748_v63 }
 0x561   :  { %v3752_v11 = vmax.f32 %v3751_v28, 1e-12 }
 0x563   :  { %vm3758_vm1 = vweird.f32 %v3752_v11 }
 0x59a   :  { %v3694_v39 = vpop.f32.mrf.mxu2 }
 0x59b   :  { %v3695_v31 = vadd.f32 %v3694_v39, %v3648_v34 }
 0x5a2   :  { %v3697_v55 = vpop.f32.mrf.mxu2 }
 0x5a3   :  { %v3698_v61 = vadd.f32 %v3697_v55, %v3653_v40 }
 0x5aa   :  { %v3700_v53 = vpop.f32.mrf.mxu2 }
 0x5ab   :  { %v3701_v52 = vadd.f32 %v3700_v53, %v3658_v47  ;;  %v3764_v47 = vand.u32 2147483648, %v3752_v11 }
 0x5ad   :  { %v3765_v36 = vor.u32 1.1754944e-38, %v3764_v47 }
 0x5b2   :  { %v3703_v2 = vpop.f32.mrf.mxu2 }
 0x5b3   :  { %v3704_v0 = vadd.f32 %v3703_v2, %v3663_v14 }
 0x5c4   :  { %v3723_v59 = vpop.f32.mrf.mxu1 }
 0x5c5   :  { %v6287_v26 = vadd.f32 %v3723_v59, %v3695_v31  ;;  %v3762_v31 = vand.u32 2147483647, %v3752_v11 }
 0x5c7   :  { %v3768_v13 = vmul.f32 %v6287_v26, %v6287_v26  ;;  %vm3763_vm7 = vcmp.eq.f32.partialorder %v3762_v31, 8.507059e+37 }
 0x5cc   :  { %v3726_v29 = vpop.f32.mrf.mxu1 }
 0x5cd   :  { %v6285_v58 = vadd.f32 %v3726_v29, %v3698_v61 }
 0x5cf   :  { %v3769_v44 = vmul.f32 %v6285_v58, %v6285_v58 }
 0x5d1   :  { %v3772_v57 = vadd.f32 %v3769_v44, %v3768_v13 }
 0x5d4   :  { %v3729_v20 = vpop.f32.mrf.mxu1 }
 0x5d5   :  { %v6289_v49 = vadd.f32 %v3729_v20, %v3701_v52 }
 0x5d7   :  { %v3770_v16 = vmul.f32 %v6289_v49, %v6289_v49 }
 0x5d9   :  { %v3773_v38 = vadd.f32 %v3772_v57, %v3770_v16  ;;  %v6379_v16 = vld [vmem:[#allocation6_spill] sm:$0xff] }
 0x5dc   :  { %v3732_v27 = vpop.f32.mrf.mxu1 }
 0x5dd   :  { %v6297_v50 = vadd.f32 %v3732_v27, %v3704_v0 }
 0x5df   :  { %v3771_v5 = vmul.f32 %v6297_v50, %v6297_v50 }
 0x5e1   :  { %v3774_v60 = vadd.f32 %v3773_v38, %v3771_v5 }
 0x5e3   :  { %v3775_v8 = vrot.slane %v3774_v60, 4 }
 0x5e5   :  { %v3776_v18 = vadd.f32 %v3775_v8, %v3774_v60 }
 0x5e7   :  { %v3777_v10 = vrot.slane %v3776_v18, 2 }
 0x5e9   :  { %v3778_v15 = vadd.f32 %v3777_v10, %v3776_v18 }
 0x5eb   :  { %v3779_v42 = vrot.slane %v3778_v15, 1 }
 0x5ed   :  { %v3780_v56 = vadd.f32 %v3779_v42, %v3778_v15 }
 0x5ef   :  { %4041 = vrsqrt.f32 %v3780_v56  ;;  %vm3788_vm9 = vcmp.eq.f32.partialorder %v3780_v56, inf  ;;  %v3791_v22 = vand.u32 2147483648, %v3780_v56  ;;  %vm3790_vm12 = vcmp.eq.f32.partialorder %v3780_v56, 0.0 }
 0x5f0   :  { %4043 = vrcp.f32 %v3752_v11 }
 0x5f1   :  { %4045 = vpow2.f32 %v3814_v30 }
 0x5f5   :  { %v4042_v3 = vpop.eup %4041 }
 0x5f6   :  { %v3782_v24 = vmul.f32 %v4042_v3, %v3780_v56  ;;  %v4044_v7 = vpop.eup %4043 }
 0x5f7   :  { %v3754_v17 = vmul.f32 %v4044_v7, %v3752_v11  ;;  %v4046_v54 = vpop.eup %4045  ;;  %vm3759_vm5 = vweird.f32 %v4044_v7 }
 0x5f8   :  { %v3783_v32 = vmul.f32 %v4042_v3, %v3782_v24  ;;  %4012 = vpush %v4046_v54  ;;  %vm3760_vm11 = vmor %vm3758_vm1, %vm3759_vm5 }
 0x5f9   :  { %v3755_v48 = vsub.f32 1.0, %v3754_v17 }
 0x5fa   :  { %v3784_v43 = vmul.f32 0.5, %v3783_v32 }
 0x5fb   :  { %v3756_v59 = vmul.f32 %v4044_v7, %v3755_v48 }
 0x5fc   :  { %v3785_v6 = vsub.f32 1.5, %v3784_v43 }
 0x5fd   :  { %v3757_v46 = vadd.f32 %v4044_v7, %v3756_v59 }
 0x5fe   :  { %v3786_v25 = vmul.f32 %v4042_v3, %v3785_v6 }
 0x5ff   :  { %v3761_v2 = vsel %vm3760_vm11, %v4044_v7, %v3757_v46 }
 0x600   :  { %v3787_v21 = vmul.f32 %v3786_v25, %v3780_v56  ;;  %v3766_v0 = vsel %vm3763_vm7, %v3765_v36, %v3761_v2 }
 0x601   :  { %v3767_v27 = vmul.f32 %v3766_v0, %v6379_v16 }
 0x602   :  { %v3789_v35 = vsel %vm3788_vm9, %v3780_v56, %v3787_v21 }
 0x603   :  { %v3792_v19 = vsel %vm3790_vm12, %v3791_v22, %v3789_v35 }
 0x604   :  { %v3793_v62 = vmax.f32 %v3792_v19, 1e-12 }
 0x606   :  { %4047 = vrcp.f32 %v3793_v62  ;;  %v3805_v55 = vand.u32 2147483648, %v3793_v62  ;;  %v3803_v29 = vand.u32 2147483647, %v3793_v62  ;;  %vm3799_vm2 = vweird.f32 %v3793_v62 }
 0x608   :  { %v3806_v34 = vor.u32 1.1754944e-38, %v3805_v55  ;;  %vm3804_vm13 = vcmp.eq.f32.partialorder %v3803_v29, 8.507059e+37 }
 0x60c   :  { %v4048_v9 = vpop.eup %4047 }
 0x60d   :  { %v3795_v23 = vmul.f32 %v4048_v9, %v3793_v62  ;;  %vm3800_vm14 = vweird.f32 %v4048_v9 }
 0x60e   :  { %vm3801_vm8 = vmor %vm3799_vm2, %vm3800_vm14 }
 0x60f   :  { %v3796_v39 = vsub.f32 1.0, %v3795_v23 }
 0x611   :  { %v3797_v40 = vmul.f32 %v4048_v9, %v3796_v39 }
 0x613   :  { %v3798_v53 = vadd.f32 %v4048_v9, %v3797_v40 }
 0x615   :  { %v3802_v61 = vsel %vm3801_vm8, %v4048_v9, %v3798_v53 }
 0x616   :  { %v3807_v20 = vsel %vm3804_vm13, %v3806_v34, %v3802_v61 }
 0x617   :  { %v3811_v52 = vmul.f32 %v3807_v20, %v6297_v50  ;;  %v3810_v44 = vmul.f32 %v3807_v20, %v6289_v49  ;;  %v3809_v14 = vmul.f32 %v3807_v20, %v6285_v58  ;;  %v3808_v13 = vmul.f32 %v3807_v20, %v6287_v26 }
 0x619   :  { %3833 = vmatpush.msra.mxu2 %v3811_v52 }
 0x61b   :  { %3834 = vmatpush.msra.mxu2 %v3810_v44 }
 0x61d   :  { %3835 = vmatpush.msra.mxu2 %v3809_v14 }
 0x61f   :  { %3836 = vmatpush.msra.mxu2 %v3808_v13 }
 0x620   :  { %3999 = vmatmul.msk.f32.vlgmr.msra.gmra.mxu2 %vm3817_vm3, %v3767_v27 }
 0x629   :  { %s4013_s16 = spop %4012 }
 0x62a   :  { %v3841_v1 = vstv %s4013_s16 }
 0x6a3   :  { %v3838_v49 = vpop.f32.mrf.mxu2 }
 0x6a4   :  { %v3842_v57 = vmul.f32 %v3841_v1, %v3838_v49 }
 0x6a6   :  { %3843 = vst [vmem:[#allocation3] sm:$0x3] %v3842_v57 }
 0x6a7   :  { %3854 = dma.vmem_to_hbm [thread:$0]  %s3850_s27, 32, %s3852_s29, [#allocation4]  }
 0x6a8   :  { %4073 = dma.done.wait [#allocation4], 32  }
 0x6a9   :  { %4074 = vsyncadd [#allocation4], 4294967264 }
 0x6aa   :  { %3859 = vsyncpa [#allocation4], 1 }

</bundles_post_ra>
